<compile_context>
chip_gen: v7x
topology: tpu7x:2x2x1
jax: 0.10.0
libtpu: 0.0.40
codegen_flags: <defaults>
</compile_context>

<pallas_src>
import functools

import numpy as np
import jax
import jax.numpy as jnp
from jax.experimental import pallas as pl
from jax.experimental.pallas import tpu as pltpu

BN_EPS = 1e-5

# Target MXU M dimension (rows of the folded im2col matmul) per grid step.  Larger tiles
# amortize the ~0.35us/step overhead; VMEM stays modest because the LHS is built on the
# fly from the resident row slabs.
TARGET_M = 1024
BN_APPLY_ROW_TILE = 2048


# ---------------------------------------------------------------------------
# Static helpers
# ---------------------------------------------------------------------------
def _pick_row_tile(total_rows, m_per_row, target_m=TARGET_M):
    """Largest divisor t of total_rows with t * m_per_row <= target_m (>= 1)."""
    cap = max(1, target_m // max(1, m_per_row))
    best = 1
    for t in range(1, total_rows + 1):
        if total_rows % t == 0 and t <= cap:
            best = t
    return best


def _largest_divisor(n, cap):
    cands = [d for d in range(1, n + 1)
             if n % d == 0 and d <= cap and (d == n or d % 8 == 0)]
    return max(cands) if cands else n


def _vmem_limit_bytes():
    cap = 64 * 1024 * 1024
    try:
        cap = int(getattr(pltpu.get_tpu_info(), "vmem_capacity_bytes", cap))
    except Exception:
        pass
    # Leave headroom: <= 3/4 of physical VMEM, capped at 96 MiB (v5e/v6e), floor 32 MiB.
    return int(max(32 * 1024 * 1024, min(3 * cap // 4, 96 * 1024 * 1024)))


# ---------------------------------------------------------------------------
# Stage 1: Conv2d(cin, cmid, 3, stride=1, pad=1) + partial BN1 stats
# ---------------------------------------------------------------------------
def _conv1_kernel(p00_ref, p01_ref, p10_ref, p11_ref, w_ref,
                  ye_ref, yo_ref, st_ref, *, trh, whalf, cin, cmid):
    """One tile of 2*trh image rows: folded 9-tap MXU matmul + per-tile (sum, sum_sq).

    Inputs are the 4 stride-2 quarter-phases of the zero-padded input so every tap is a
    contiguous bf16 ref slice.  The output is written row-parity split (even rows -> ye,
    odd rows -> yo) with each row's columns stored [even cols | odd cols]; stage 2 relies
    on this layout to build its stride-2 taps with contiguous slices only.
    """
    phases = (p00_ref, p01_ref, p10_ref, p11_ref)
    k0 = pl.program_id(1) * trh
    if trh % 8 == 0:
        k0 = pl.multiple_of(k0, 8)

    def group_lhs(a_out, b_out):
        # Output pixels at y1 rows 2k+a_out (k in [k0, k0+trh)) and cols 2m+b_out.
        taps = []
        for dy in range(3):
            a_in = (a_out + dy) & 1
            ra = (a_out + dy) >> 1
            for dx in range(3):
                b_in = (b_out + dx) & 1
                rb = (b_out + dx) >> 1
                ph = phases[a_in * 2 + b_in]
                taps.append(ph[0, pl.ds(k0 + ra, trh), pl.ds(rb, whalf), :])
        return jnp.concatenate(taps, axis=-1)              # (trh, whalf, 9*cin) bf16

    # Per row: [even cols | odd cols]; even rows block then odd rows block along M.
    lhs_even_rows = jnp.concatenate([group_lhs(0, 0), group_lhs(0, 1)], axis=1)
    lhs_odd_rows = jnp.concatenate([group_lhs(1, 0), group_lhs(1, 1)], axis=1)
    lhs = jnp.concatenate([lhs_even_rows, lhs_odd_rows], axis=0)
    lhs = lhs.reshape(2 * trh * 2 * whalf, 9 * cin)        # bf16, no casts

    acc = jnp.dot(lhs, w_ref[...], preferred_element_type=jnp.float32)
    m_half = trh * 2 * whalf
    # NOTE: cout/cmid < 128 keeps these stores lane-masked; lane-dense repacking of the
    # conv output needs an in-kernel (M, C)->(M*C/128, 128) relayout (left to a future
    # rev; the final BN2-apply kernel below already stores lane-dense).
    ye_ref[...] = acc[:m_half].reshape(1, trh, 2 * whalf, cmid).astype(ye_ref.dtype)
    yo_ref[...] = acc[m_half:].reshape(1, trh, 2 * whalf, cmid).astype(yo_ref.dtype)
    s = jnp.sum(acc, axis=0, keepdims=True)
    ss = jnp.sum(acc * acc, axis=0, keepdims=True)
    st_ref[...] = jnp.concatenate([s, ss], axis=0).reshape(st_ref.shape)


def _conv1_bn_stats(phases_bf16, w_flat_bf16, trh):
    p00 = phases_bf16[0]
    n, hph, wph, cin = p00.shape          # hph = h/2 + 1, wph = w/2 + 1
    hhalf, whalf = hph - 1, wph - 1
    cmid = w_flat_bf16.shape[-1]
    n_tiles = hhalf // trh
    w_full = 2 * whalf
    m_total = n * 2 * hhalf * w_full
    flops = 2 * m_total * 9 * cin * cmid
    bytes_accessed = int(4 * p00.size * 2 + w_flat_bf16.size * 2 + m_total * cmid * 2)
    # The ch_in-channel input phases are tiny, so they stay whole-image resident; all
    # large tensors (outputs) are row-tiled.
    phase_spec = pl.BlockSpec((1, hph, wph, cin), lambda i, j: (i, 0, 0, 0))
    out_y = jax.ShapeDtypeStruct((n, hhalf, w_full, cmid), jnp.bfloat16)
    kern = functools.partial(_conv1_kernel, trh=trh, whalf=whalf, cin=cin, cmid=cmid)
    return pl.pallas_call(
        kern,
        out_shape=(out_y, out_y,
                   jax.ShapeDtypeStruct((n, n_tiles, 2, cmid), jnp.float32)),
        grid=(n, n_tiles),
        in_specs=[phase_spec, phase_spec, phase_spec, phase_spec,
                  pl.BlockSpec((9 * cin, cmid), lambda i, j: (0, 0))],
        out_specs=(pl.BlockSpec((1, trh, w_full, cmid), lambda i, j: (i, j, 0, 0)),
                   pl.BlockSpec((1, trh, w_full, cmid), lambda i, j: (i, j, 0, 0)),
                   pl.BlockSpec((1, 1, 2, cmid), lambda i, j: (i, j, 0, 0))),
        compiler_params=pltpu.CompilerParams(
            dimension_semantics=("parallel", "parallel"),
            vmem_limit_bytes=_vmem_limit_bytes()),
        cost_estimate=pl.CostEstimate(flops=flops, transcendentals=0,
                                      bytes_accessed=bytes_accessed),
    )(*phases_bf16, w_flat_bf16)


# ---------------------------------------------------------------------------
# Stage 2 (fused): BN1 scale/shift + ReLU + Conv2d(cmid, cout, 3, stride=2, pad=1)
#                  + partial BN2 stats
# ---------------------------------------------------------------------------
def _conv2_fused_kernel(ye_ref, yo_ref, halo_ref, s1_ref, b1_ref, w_ref,
                        y_ref, st_ref, *, tr, ws2, cmid):
    """ye/yo: raw stage-1 output split by row parity, columns stored [even | odd].
    halo: raw y1 row (2*r0 - 1) for this tile (ignored for the first tile, where that
    row is the zero padding of the stride-2 conv)."""
    def act(raw):                                           # BN1 affine + ReLU, f32 math
        a = jnp.maximum(raw.astype(jnp.float32) * s1_ref[...] + b1_ref[...], 0.0)
        return a.astype(jnp.bfloat16)

    even = act(ye_ref[0])                                   # (tr, 2*ws2, cmid) y1 rows 2i
    odd = act(yo_ref[0])                                    # (tr, 2*ws2, cmid) y1 rows 2i+1
    halo = act(halo_ref[0])                                 # (1,  2*ws2, cmid) y1 row 2r0-1
    halo = jnp.where(pl.program_id(1) == 0, jnp.zeros_like(halo), halo)
    odd_ext = jnp.concatenate([halo, odd], axis=0)          # index i -> y1 row 2(r0+i)-1

    zcol = jnp.zeros((tr, 1, cmid), jnp.bfloat16)

    def col_taps(rows):       # rows: (tr, 2*ws2, cmid) with [even | odd] column layout
        e = rows[:, :ws2, :]                                # y1 cols 2j      (dx = 1)
        o = rows[:, ws2:, :]                                # y1 cols 2j+1    (dx = 2)
        o_shift = jnp.concatenate([zcol, o[:, :ws2 - 1, :]], axis=1)  # 2j-1  (dx = 0)
        return (o_shift, e, o)

    row_taps = (odd_ext[:tr], even, odd_ext[1:tr + 1])      # y1 rows 2i-1, 2i, 2i+1
    taps = []
    for dy in range(3):
        taps.extend(col_taps(row_taps[dy]))
    lhs = jnp.concatenate(taps, axis=-1).reshape(tr * ws2, 9 * cmid)

    acc = jnp.dot(lhs, w_ref[...], preferred_element_type=jnp.float32)
    y_ref[...] = acc.reshape(1, tr, ws2, acc.shape[-1]).astype(y_ref.dtype)
    s = jnp.sum(acc, axis=0, keepdims=True)
    ss = jnp.sum(acc * acc, axis=0, keepdims=True)
    st_ref[...] = jnp.concatenate([s, ss], axis=0).reshape(st_ref.shape)


def _conv2_fused_bn_stats(ye, yo, halo, scale1, shift1, w_flat_bf16, tr):
    n, hhalf, w_full, cmid = ye.shape
    ws2 = w_full // 2
    cout = w_flat_bf16.shape[-1]
    n_tiles = hhalf // tr
    m_total = n * hhalf * ws2
    flops = 2 * m_total * 9 * cmid * cout
    bytes_accessed = int((ye.size + yo.size + halo.size) * 2
                         + w_flat_bf16.size * 2 + m_total * cout * 2)
    act_spec = pl.BlockSpec((1, tr, w_full, cmid), lambda i, j: (i, j, 0, 0))
    kern = functools.partial(_conv2_fused_kernel, tr=tr, ws2=ws2, cmid=cmid)
    return pl.pallas_call(
        kern,
        out_shape=(jax.ShapeDtypeStruct((n, hhalf, ws2, cout), jnp.bfloat16),
                   jax.ShapeDtypeStruct((n, n_tiles, 2, cout), jnp.float32)),
        grid=(n, n_tiles),
        in_specs=[act_spec, act_spec,
                  pl.BlockSpec((1, 1, w_full, cmid), lambda i, j: (i, j, 0, 0)),
                  pl.BlockSpec((1, cmid), lambda i, j: (0, 0)),
                  pl.BlockSpec((1, cmid), lambda i, j: (0, 0)),
                  pl.BlockSpec((9 * cmid, cout), lambda i, j: (0, 0))],
        out_specs=(pl.BlockSpec((1, tr, ws2, cout), lambda i, j: (i, j, 0, 0)),
                   pl.BlockSpec((1, 1, 2, cout), lambda i, j: (i, j, 0, 0))),
        compiler_params=pltpu.CompilerParams(
            dimension_semantics=("parallel", "parallel"),
            vmem_limit_bytes=_vmem_limit_bytes()),
        cost_estimate=pl.CostEstimate(flops=flops, transcendentals=0,
                                      bytes_accessed=bytes_accessed),
    )(ye, yo, halo, scale1, shift1, w_flat_bf16)


# ---------------------------------------------------------------------------
# BatchNorm parameter reduction + final elementwise apply
# ---------------------------------------------------------------------------
def _bn_scale_shift(stats, count, gamma, beta):
    """Reduce per-tile (sum, sum_sq) -> per-channel affine scale/shift (f32)."""
    s = jnp.sum(stats[:, :, 0, :], axis=(0, 1))
    ss = jnp.sum(stats[:, :, 1, :], axis=(0, 1))
    mean = s / count
    # E[x^2]-mean^2 in f32 with a clamp; fine at these activation scales.
    var = jnp.maximum(ss / count - mean * mean, 0.0)
    scale = gamma * jax.lax.rsqrt(var + BN_EPS)
    shift = beta - mean * scale
    return scale, shift


def _scale_shift_relu_kernel(y_ref, scale_ref, shift_ref, o_ref):
    y = y_ref[...].astype(jnp.float32)
    o_ref[...] = jnp.maximum(y * scale_ref[...] + shift_ref[...], 0.0).astype(o_ref.dtype)


def _bn_relu_apply(y2d, scale, shift, out_dtype):
    """Elementwise y*scale + shift, ReLU with lane-dense (rows, 128) packing."""
    m, c = y2d.shape
    if c % 128 != 0 and 128 % c == 0 and (m * c) % 128 == 0:
        y_pack = y2d.reshape(-1, 128)                       # lane-dense, unmasked stores
        rep = 128 // c
        sc = jnp.tile(scale.reshape(1, c), (1, rep))
        sh = jnp.tile(shift.reshape(1, c), (1, rep))
    else:
        y_pack = y2d                                        # c % 128 == 0 is already dense
        sc = scale.reshape(1, c)
        sh = shift.reshape(1, c)
    r, l = y_pack.shape
    tb = _largest_divisor(r, BN_APPLY_ROW_TILE)
    out = pl.pallas_call(
        _scale_shift_relu_kernel,
        out_shape=jax.ShapeDtypeStruct((r, l), out_dtype),
        grid=(r // tb,),
        in_specs=[pl.BlockSpec((tb, l), lambda i: (i, 0)),
                  pl.BlockSpec((1, l), lambda i: (0, 0)),
                  pl.BlockSpec((1, l), lambda i: (0, 0))],
        out_specs=pl.BlockSpec((tb, l), lambda i: (i, 0)),
        compiler_params=pltpu.CompilerParams(dimension_semantics=("parallel",)),
    )(y_pack, sc, sh)
    return out.reshape(m, c)


# ---------------------------------------------------------------------------
# DoubleConv forward (training-mode BatchNorm, like a fresh nn.Module)
# ---------------------------------------------------------------------------
def double_conv_forward(x_nchw, params, s1_row_tile=None, s2_row_tile=None):
    """Pallas implementation of DoubleConv.forward.  x_nchw: (N, Cin, H, W) float32."""
    w1, g1, b1, w2, g2, b2 = params
    x = jnp.transpose(x_nchw, (0, 2, 3, 1)).astype(jnp.bfloat16)   # NCHW -> NHWC bf16
    n, h, w, cin = x.shape
    assert h % 2 == 0 and w % 2 == 0, "even spatial dims assumed for the stride-2 stage"
    cmid, cout = w1.shape[-1], w2.shape[-1]
    hh, wh = h // 2, w // 2

    # ---- Stage 1: conv1 + BN1 batch statistics -----------------------------------
    xp = jnp.pad(x, ((0, 0), (1, 1), (1, 1), (0, 0)))
    phases = tuple(xp[:, a::2, b::2, :] for a in (0, 1) for b in (0, 1))  # tiny views
    w1f = w1.reshape(9 * cin, cmid).astype(jnp.bfloat16)
    trh = s1_row_tile if s1_row_tile is not None else _pick_row_tile(hh, 2 * w)
    assert hh % trh == 0
    ye, yo, st1 = _conv1_bn_stats(phases, w1f, trh)         # raw conv1 output, bf16
    scale1, shift1 = _bn_scale_shift(st1, n * h * w, g1, b1)

    # ---- Stage 2: fused BN1-apply + ReLU + conv2 (stride 2) + BN2 statistics ------
    tr2 = s2_row_tile if s2_row_tile is not None else _pick_row_tile(hh, wh)
    assert hh % tr2 == 0
    # Per-tile top halo row (y1 row 2*r0 - 1); the first tile's halo is the zero pad and
    # its content is ignored in-kernel.
    halo = jnp.concatenate(
        [jnp.zeros((n, 1, w, cmid), jnp.bfloat16),
         yo[:, tr2 - 1:hh - 1:tr2, :, :]], axis=1)
    w2f = w2.reshape(9 * cmid, cout).astype(jnp.bfloat16)
    y2_raw, st2 = _conv2_fused_bn_stats(
        ye, yo, halo, scale1.reshape(1, cmid), shift1.reshape(1, cmid), w2f, tr2)
    scale2, shift2 = _bn_scale_shift(st2, n * hh * wh, g2, b2)

    # ---- BN2 apply + ReLU (lane-dense elementwise), back to NCHW f32 --------------
    y2 = _bn_relu_apply(y2_raw.reshape(n * hh * wh, cout), scale2, shift2, jnp.float32)
    y2 = y2.reshape(n, hh, wh, cout)
    # TODO(synk): fold the final NHWC->NCHW transpose into the BN2-apply kernel.
    return jnp.transpose(y2, (0, 3, 1, 2))


# ---------------------------------------------------------------------------
# Pure-JAX f32 reference for verification
# ---------------------------------------------------------------------------
def double_conv_reference(x_nchw, params):
    w1, g1, b1, w2, g2, b2 = params
    x = jnp.transpose(x_nchw, (0, 2, 3, 1))

    def conv(x, w, stride):
        return jax.lax.conv_general_dilated(
            x, w, window_strides=(stride, stride), padding=((1, 1), (1, 1)),
            dimension_numbers=("NHWC", "HWIO", "NHWC"),
            precision=jax.lax.Precision.HIGHEST)

    def bn_relu(y, g, b):
        mean = jnp.mean(y, axis=(0, 1, 2), keepdims=True)
        var = jnp.mean((y - mean) ** 2, axis=(0, 1, 2), keepdims=True)
        return jnp.maximum((y - mean) * jax.lax.rsqrt(var + BN_EPS) * g + b, 0.0)

    y = bn_relu(conv(x, w1, 1), g1, b1)
    y = bn_relu(conv(y, w2, 2), g2, b2)
    return jnp.transpose(y, (0, 3, 1, 2))


if __name__ == "__main__":
    # Module config: DoubleConv(ch_in=4, ch_out=8) -> ch_mid defaults to 8.
    N, CH_IN, H, W = 2, 4, 16, 16
    CH_MID, CH_OUT = 8, 8

    key = jax.random.PRNGKey(0)
    kx, k1, k2, kg1, kb1, kg2, kb2 = jax.random.split(key, 7)

    x = jax.random.normal(kx, (N, CH_IN, H, W), dtype=jnp.float32)
    w1 = 0.1 * jax.random.normal(k1, (3, 3, CH_IN, CH_MID), dtype=jnp.float32)
    w2 = 0.1 * jax.random.normal(k2, (3, 3, CH_MID, CH_OUT), dtype=jnp.float32)
    g1 = 1.0 + 0.1 * jax.random.normal(kg1, (CH_MID,), dtype=jnp.float32)
    b1 = 0.1 * jax.random.normal(kb1, (CH_MID,), dtype=jnp.float32)
    g2 = 1.0 + 0.1 * jax.random.normal(kg2, (CH_OUT,), dtype=jnp.float32)
    b2 = 0.1 * jax.random.normal(kb2, (CH_OUT,), dtype=jnp.float32)
    params = (w1, g1, b1, w2, g2, b2)

    ref = jax.block_until_ready(double_conv_reference(x, params))

    # Production path: large tiles picked by the heuristic (single tile at this toy size).
    out_big = jax.block_until_ready(jax.jit(double_conv_forward)(x, params))
    assert out_big.shape == (N, CH_OUT, H // 2, W // 2), out_big.shape

    # Multi-tile path: force several row tiles so the cross-tile BN reduction and the
    # stage-2 halo logic are exercised at this toy size.
    fwd_small = jax.jit(functools.partial(double_conv_forward,
                                          s1_row_tile=4, s2_row_tile=4))
    out_small = jax.block_until_ready(fwd_small(x, params))

    # Tolerance reflects bf16 matmul operands / bf16 intermediate storage (f32
    # accumulation and BN math) across two stacked conv+BN stages vs an f32 reference.
    for name, out in (("big-tile", out_big), ("multi-tile", out_small)):
        if not np.allclose(np.asarray(out), np.asarray(ref), atol=5e-2, rtol=5e-2):
            diff = np.max(np.abs(np.asarray(out) - np.asarray(ref)))
            raise AssertionError(
                f"Pallas DoubleConv mismatch ({name}) vs JAX reference, max|diff|={diff}")

    print("KERNEL_OK")
</pallas_src>

<mosaic_0001>
module attributes {stable_mosaic.version = 11 : i64} {
  func.func @_conv1_kernel(%arg0: i32, %arg1: i32, %arg2: memref<1x9x9x4xbf16, #tpu.memory_space<vmem>>, %arg3: memref<1x9x9x4xbf16, #tpu.memory_space<vmem>>, %arg4: memref<1x9x9x4xbf16, #tpu.memory_space<vmem>>, %arg5: memref<1x9x9x4xbf16, #tpu.memory_space<vmem>>, %arg6: memref<36x8xbf16, #tpu.memory_space<vmem>>, %arg7: memref<1x8x16x8xbf16, #tpu.memory_space<vmem>>, %arg8: memref<1x8x16x8xbf16, #tpu.memory_space<vmem>>, %arg9: memref<1x1x2x8xf32, #tpu.memory_space<vmem>>) attributes {dimension_semantics = [#tpu.dimension_semantics<parallel>, #tpu.dimension_semantics<parallel>], iteration_bounds = array<i64: 2, 1>, scalar_prefetch = 0 : i64, scratch_operands = 0 : i64, tpu.core_type = #tpu.core_type<tc>, window_params = [{transform_indices = @transform_0, window_bounds = array<i64: 1, 9, 9, 4>}, {transform_indices = @transform_1, window_bounds = array<i64: 1, 9, 9, 4>}, {transform_indices = @transform_2, window_bounds = array<i64: 1, 9, 9, 4>}, {transform_indices = @transform_3, window_bounds = array<i64: 1, 9, 9, 4>}, {pipeline_mode = #tpu.pipeline_mode<synchronous>, transform_indices = @transform_4, window_bounds = array<i64: 36, 8>}, {transform_indices = @transform_5, window_bounds = array<i64: 1, 8, 16, 8>}, {transform_indices = @transform_6, window_bounds = array<i64: 1, 8, 16, 8>}, {transform_indices = @transform_7, window_bounds = array<i64: 1, 1, 2, 8>}]} {
    %c8_i32 = arith.constant 8 : i32
    %0 = arith.muli %arg1, %c8_i32 : i32
    %1 = tpu.assume_multiple %0, 8 : i32
    %c0_i32 = arith.constant 0 : i32
    %2 = arith.addi %1, %c0_i32 : i32
    %c0 = arith.constant 0 : index
    %3 = arith.index_cast %2 : i32 to index
    %c0_0 = arith.constant 0 : index
    %c0_1 = arith.constant 0 : index
    %4 = vector.load %arg2[%c0, %3, %c0_0, %c0_1] : memref<1x9x9x4xbf16, #tpu.memory_space<vmem>>, vector<1x8x8x4xbf16>
    %5 = vector.shape_cast %4 : vector<1x8x8x4xbf16> to vector<8x8x4xbf16>
    %c0_i32_2 = arith.constant 0 : i32
    %6 = arith.addi %1, %c0_i32_2 : i32
    %c0_3 = arith.constant 0 : index
    %7 = arith.index_cast %6 : i32 to index
    %c0_4 = arith.constant 0 : index
    %c0_5 = arith.constant 0 : index
    %8 = vector.load %arg3[%c0_3, %7, %c0_4, %c0_5] : memref<1x9x9x4xbf16, #tpu.memory_space<vmem>>, vector<1x8x8x4xbf16>
    %9 = vector.shape_cast %8 : vector<1x8x8x4xbf16> to vector<8x8x4xbf16>
    %c0_i32_6 = arith.constant 0 : i32
    %10 = arith.addi %1, %c0_i32_6 : i32
    %c0_7 = arith.constant 0 : index
    %11 = arith.index_cast %10 : i32 to index
    %c1 = arith.constant 1 : index
    %c0_8 = arith.constant 0 : index
    %12 = vector.load %arg2[%c0_7, %11, %c1, %c0_8] : memref<1x9x9x4xbf16, #tpu.memory_space<vmem>>, vector<1x8x8x4xbf16>
    %13 = vector.shape_cast %12 : vector<1x8x8x4xbf16> to vector<8x8x4xbf16>
    %c0_i32_9 = arith.constant 0 : i32
    %14 = arith.addi %1, %c0_i32_9 : i32
    %c0_10 = arith.constant 0 : index
    %15 = arith.index_cast %14 : i32 to index
    %c0_11 = arith.constant 0 : index
    %c0_12 = arith.constant 0 : index
    %16 = vector.load %arg4[%c0_10, %15, %c0_11, %c0_12] : memref<1x9x9x4xbf16, #tpu.memory_space<vmem>>, vector<1x8x8x4xbf16>
    %17 = vector.shape_cast %16 : vector<1x8x8x4xbf16> to vector<8x8x4xbf16>
    %c0_i32_13 = arith.constant 0 : i32
    %18 = arith.addi %1, %c0_i32_13 : i32
    %c0_14 = arith.constant 0 : index
    %19 = arith.index_cast %18 : i32 to index
    %c0_15 = arith.constant 0 : index
    %c0_16 = arith.constant 0 : index
    %20 = vector.load %arg5[%c0_14, %19, %c0_15, %c0_16] : memref<1x9x9x4xbf16, #tpu.memory_space<vmem>>, vector<1x8x8x4xbf16>
    %21 = vector.shape_cast %20 : vector<1x8x8x4xbf16> to vector<8x8x4xbf16>
    %c0_i32_17 = arith.constant 0 : i32
    %22 = arith.addi %1, %c0_i32_17 : i32
    %c0_18 = arith.constant 0 : index
    %23 = arith.index_cast %22 : i32 to index
    %c1_19 = arith.constant 1 : index
    %c0_20 = arith.constant 0 : index
    %24 = vector.load %arg4[%c0_18, %23, %c1_19, %c0_20] : memref<1x9x9x4xbf16, #tpu.memory_space<vmem>>, vector<1x8x8x4xbf16>
    %25 = vector.shape_cast %24 : vector<1x8x8x4xbf16> to vector<8x8x4xbf16>
    %c1_i32 = arith.constant 1 : i32
    %26 = arith.addi %1, %c1_i32 : i32
    %c0_21 = arith.constant 0 : index
    %27 = arith.index_cast %26 : i32 to index
    %c0_22 = arith.constant 0 : index
    %c0_23 = arith.constant 0 : index
    %28 = vector.load %arg2[%c0_21, %27, %c0_22, %c0_23] : memref<1x9x9x4xbf16, #tpu.memory_space<vmem>>, vector<1x8x8x4xbf16>
    %29 = vector.shape_cast %28 : vector<1x8x8x4xbf16> to vector<8x8x4xbf16>
    %c1_i32_24 = arith.constant 1 : i32
    %30 = arith.addi %1, %c1_i32_24 : i32
    %c0_25 = arith.constant 0 : index
    %31 = arith.index_cast %30 : i32 to index
    %c0_26 = arith.constant 0 : index
    %c0_27 = arith.constant 0 : index
    %32 = vector.load %arg3[%c0_25, %31, %c0_26, %c0_27] : memref<1x9x9x4xbf16, #tpu.memory_space<vmem>>, vector<1x8x8x4xbf16>
    %33 = vector.shape_cast %32 : vector<1x8x8x4xbf16> to vector<8x8x4xbf16>
    %c1_i32_28 = arith.constant 1 : i32
    %34 = arith.addi %1, %c1_i32_28 : i32
    %c0_29 = arith.constant 0 : index
    %35 = arith.index_cast %34 : i32 to index
    %c1_30 = arith.constant 1 : index
    %c0_31 = arith.constant 0 : index
    %36 = vector.load %arg2[%c0_29, %35, %c1_30, %c0_31] : memref<1x9x9x4xbf16, #tpu.memory_space<vmem>>, vector<1x8x8x4xbf16>
    %37 = vector.shape_cast %36 : vector<1x8x8x4xbf16> to vector<8x8x4xbf16>
    %38 = tpu.concatenate %5, %9, %13, %17, %21, %25, %29, %33, %37 in 2 : vector<8x8x4xbf16>, vector<8x8x4xbf16>, vector<8x8x4xbf16>, vector<8x8x4xbf16>, vector<8x8x4xbf16>, vector<8x8x4xbf16>, vector<8x8x4xbf16>, vector<8x8x4xbf16>, vector<8x8x4xbf16> -> vector<8x8x36xbf16>
    %c0_i32_32 = arith.constant 0 : i32
    %39 = arith.addi %1, %c0_i32_32 : i32
    %c0_33 = arith.constant 0 : index
    %40 = arith.index_cast %39 : i32 to index
    %c0_34 = arith.constant 0 : index
    %c0_35 = arith.constant 0 : index
    %41 = vector.load %arg3[%c0_33, %40, %c0_34, %c0_35] : memref<1x9x9x4xbf16, #tpu.memory_space<vmem>>, vector<1x8x8x4xbf16>
    %42 = vector.shape_cast %41 : vector<1x8x8x4xbf16> to vector<8x8x4xbf16>
    %c0_i32_36 = arith.constant 0 : i32
    %43 = arith.addi %1, %c0_i32_36 : i32
    %c0_37 = arith.constant 0 : index
    %44 = arith.index_cast %43 : i32 to index
    %c1_38 = arith.constant 1 : index
    %c0_39 = arith.constant 0 : index
    %45 = vector.load %arg2[%c0_37, %44, %c1_38, %c0_39] : memref<1x9x9x4xbf16, #tpu.memory_space<vmem>>, vector<1x8x8x4xbf16>
    %46 = vector.shape_cast %45 : vector<1x8x8x4xbf16> to vector<8x8x4xbf16>
    %c0_i32_40 = arith.constant 0 : i32
    %47 = arith.addi %1, %c0_i32_40 : i32
    %c0_41 = arith.constant 0 : index
    %48 = arith.index_cast %47 : i32 to index
    %c1_42 = arith.constant 1 : index
    %c0_43 = arith.constant 0 : index
    %49 = vector.load %arg3[%c0_41, %48, %c1_42, %c0_43] : memref<1x9x9x4xbf16, #tpu.memory_space<vmem>>, vector<1x8x8x4xbf16>
    %50 = vector.shape_cast %49 : vector<1x8x8x4xbf16> to vector<8x8x4xbf16>
    %c0_i32_44 = arith.constant 0 : i32
    %51 = arith.addi %1, %c0_i32_44 : i32
    %c0_45 = arith.constant 0 : index
    %52 = arith.index_cast %51 : i32 to index
    %c0_46 = arith.constant 0 : index
    %c0_47 = arith.constant 0 : index
    %53 = vector.load %arg5[%c0_45, %52, %c0_46, %c0_47] : memref<1x9x9x4xbf16, #tpu.memory_space<vmem>>, vector<1x8x8x4xbf16>
    %54 = vector.shape_cast %53 : vector<1x8x8x4xbf16> to vector<8x8x4xbf16>
    %c0_i32_48 = arith.constant 0 : i32
    %55 = arith.addi %1, %c0_i32_48 : i32
    %c0_49 = arith.constant 0 : index
    %56 = arith.index_cast %55 : i32 to index
    %c1_50 = arith.constant 1 : index
    %c0_51 = arith.constant 0 : index
    %57 = vector.load %arg4[%c0_49, %56, %c1_50, %c0_51] : memref<1x9x9x4xbf16, #tpu.memory_space<vmem>>, vector<1x8x8x4xbf16>
    %58 = vector.shape_cast %57 : vector<1x8x8x4xbf16> to vector<8x8x4xbf16>
    %c0_i32_52 = arith.constant 0 : i32
    %59 = arith.addi %1, %c0_i32_52 : i32
    %c0_53 = arith.constant 0 : index
    %60 = arith.index_cast %59 : i32 to index
    %c1_54 = arith.constant 1 : index
    %c0_55 = arith.constant 0 : index
    %61 = vector.load %arg5[%c0_53, %60, %c1_54, %c0_55] : memref<1x9x9x4xbf16, #tpu.memory_space<vmem>>, vector<1x8x8x4xbf16>
    %62 = vector.shape_cast %61 : vector<1x8x8x4xbf16> to vector<8x8x4xbf16>
    %c1_i32_56 = arith.constant 1 : i32
    %63 = arith.addi %1, %c1_i32_56 : i32
    %c0_57 = arith.constant 0 : index
    %64 = arith.index_cast %63 : i32 to index
    %c0_58 = arith.constant 0 : index
    %c0_59 = arith.constant 0 : index
    %65 = vector.load %arg3[%c0_57, %64, %c0_58, %c0_59] : memref<1x9x9x4xbf16, #tpu.memory_space<vmem>>, vector<1x8x8x4xbf16>
    %66 = vector.shape_cast %65 : vector<1x8x8x4xbf16> to vector<8x8x4xbf16>
    %c1_i32_60 = arith.constant 1 : i32
    %67 = arith.addi %1, %c1_i32_60 : i32
    %c0_61 = arith.constant 0 : index
    %68 = arith.index_cast %67 : i32 to index
    %c1_62 = arith.constant 1 : index
    %c0_63 = arith.constant 0 : index
    %69 = vector.load %arg2[%c0_61, %68, %c1_62, %c0_63] : memref<1x9x9x4xbf16, #tpu.memory_space<vmem>>, vector<1x8x8x4xbf16>
    %70 = vector.shape_cast %69 : vector<1x8x8x4xbf16> to vector<8x8x4xbf16>
    %c1_i32_64 = arith.constant 1 : i32
    %71 = arith.addi %1, %c1_i32_64 : i32
    %c0_65 = arith.constant 0 : index
    %72 = arith.index_cast %71 : i32 to index
    %c1_66 = arith.constant 1 : index
    %c0_67 = arith.constant 0 : index
    %73 = vector.load %arg3[%c0_65, %72, %c1_66, %c0_67] : memref<1x9x9x4xbf16, #tpu.memory_space<vmem>>, vector<1x8x8x4xbf16>
    %74 = vector.shape_cast %73 : vector<1x8x8x4xbf16> to vector<8x8x4xbf16>
    %75 = tpu.concatenate %42, %46, %50, %54, %58, %62, %66, %70, %74 in 2 : vector<8x8x4xbf16>, vector<8x8x4xbf16>, vector<8x8x4xbf16>, vector<8x8x4xbf16>, vector<8x8x4xbf16>, vector<8x8x4xbf16>, vector<8x8x4xbf16>, vector<8x8x4xbf16>, vector<8x8x4xbf16> -> vector<8x8x36xbf16>
    %76 = tpu.concatenate %38, %75 in 1 : vector<8x8x36xbf16>, vector<8x8x36xbf16> -> vector<8x16x36xbf16>
    %c0_i32_68 = arith.constant 0 : i32
    %77 = arith.addi %1, %c0_i32_68 : i32
    %c0_69 = arith.constant 0 : index
    %78 = arith.index_cast %77 : i32 to index
    %c0_70 = arith.constant 0 : index
    %c0_71 = arith.constant 0 : index
    %79 = vector.load %arg4[%c0_69, %78, %c0_70, %c0_71] : memref<1x9x9x4xbf16, #tpu.memory_space<vmem>>, vector<1x8x8x4xbf16>
    %80 = vector.shape_cast %79 : vector<1x8x8x4xbf16> to vector<8x8x4xbf16>
    %c0_i32_72 = arith.constant 0 : i32
    %81 = arith.addi %1, %c0_i32_72 : i32
    %c0_73 = arith.constant 0 : index
    %82 = arith.index_cast %81 : i32 to index
    %c0_74 = arith.constant 0 : index
    %c0_75 = arith.constant 0 : index
    %83 = vector.load %arg5[%c0_73, %82, %c0_74, %c0_75] : memref<1x9x9x4xbf16, #tpu.memory_space<vmem>>, vector<1x8x8x4xbf16>
    %84 = vector.shape_cast %83 : vector<1x8x8x4xbf16> to vector<8x8x4xbf16>
    %c0_i32_76 = arith.constant 0 : i32
    %85 = arith.addi %1, %c0_i32_76 : i32
    %c0_77 = arith.constant 0 : index
    %86 = arith.index_cast %85 : i32 to index
    %c1_78 = arith.constant 1 : index
    %c0_79 = arith.constant 0 : index
    %87 = vector.load %arg4[%c0_77, %86, %c1_78, %c0_79] : memref<1x9x9x4xbf16, #tpu.memory_space<vmem>>, vector<1x8x8x4xbf16>
    %88 = vector.shape_cast %87 : vector<1x8x8x4xbf16> to vector<8x8x4xbf16>
    %c1_i32_80 = arith.constant 1 : i32
    %89 = arith.addi %1, %c1_i32_80 : i32
    %c0_81 = arith.constant 0 : index
    %90 = arith.index_cast %89 : i32 to index
    %c0_82 = arith.constant 0 : index
    %c0_83 = arith.constant 0 : index
    %91 = vector.load %arg2[%c0_81, %90, %c0_82, %c0_83] : memref<1x9x9x4xbf16, #tpu.memory_space<vmem>>, vector<1x8x8x4xbf16>
    %92 = vector.shape_cast %91 : vector<1x8x8x4xbf16> to vector<8x8x4xbf16>
    %c1_i32_84 = arith.constant 1 : i32
    %93 = arith.addi %1, %c1_i32_84 : i32
    %c0_85 = arith.constant 0 : index
    %94 = arith.index_cast %93 : i32 to index
    %c0_86 = arith.constant 0 : index
    %c0_87 = arith.constant 0 : index
    %95 = vector.load %arg3[%c0_85, %94, %c0_86, %c0_87] : memref<1x9x9x4xbf16, #tpu.memory_space<vmem>>, vector<1x8x8x4xbf16>
    %96 = vector.shape_cast %95 : vector<1x8x8x4xbf16> to vector<8x8x4xbf16>
    %c1_i32_88 = arith.constant 1 : i32
    %97 = arith.addi %1, %c1_i32_88 : i32
    %c0_89 = arith.constant 0 : index
    %98 = arith.index_cast %97 : i32 to index
    %c1_90 = arith.constant 1 : index
    %c0_91 = arith.constant 0 : index
    %99 = vector.load %arg2[%c0_89, %98, %c1_90, %c0_91] : memref<1x9x9x4xbf16, #tpu.memory_space<vmem>>, vector<1x8x8x4xbf16>
    %100 = vector.shape_cast %99 : vector<1x8x8x4xbf16> to vector<8x8x4xbf16>
    %c1_i32_92 = arith.constant 1 : i32
    %101 = arith.addi %1, %c1_i32_92 : i32
    %c0_93 = arith.constant 0 : index
    %102 = arith.index_cast %101 : i32 to index
    %c0_94 = arith.constant 0 : index
    %c0_95 = arith.constant 0 : index
    %103 = vector.load %arg4[%c0_93, %102, %c0_94, %c0_95] : memref<1x9x9x4xbf16, #tpu.memory_space<vmem>>, vector<1x8x8x4xbf16>
    %104 = vector.shape_cast %103 : vector<1x8x8x4xbf16> to vector<8x8x4xbf16>
    %c1_i32_96 = arith.constant 1 : i32
    %105 = arith.addi %1, %c1_i32_96 : i32
    %c0_97 = arith.constant 0 : index
    %106 = arith.index_cast %105 : i32 to index
    %c0_98 = arith.constant 0 : index
    %c0_99 = arith.constant 0 : index
    %107 = vector.load %arg5[%c0_97, %106, %c0_98, %c0_99] : memref<1x9x9x4xbf16, #tpu.memory_space<vmem>>, vector<1x8x8x4xbf16>
    %108 = vector.shape_cast %107 : vector<1x8x8x4xbf16> to vector<8x8x4xbf16>
    %c1_i32_100 = arith.constant 1 : i32
    %109 = arith.addi %1, %c1_i32_100 : i32
    %c0_101 = arith.constant 0 : index
    %110 = arith.index_cast %109 : i32 to index
    %c1_102 = arith.constant 1 : index
    %c0_103 = arith.constant 0 : index
    %111 = vector.load %arg4[%c0_101, %110, %c1_102, %c0_103] : memref<1x9x9x4xbf16, #tpu.memory_space<vmem>>, vector<1x8x8x4xbf16>
    %112 = vector.shape_cast %111 : vector<1x8x8x4xbf16> to vector<8x8x4xbf16>
    %113 = tpu.concatenate %80, %84, %88, %92, %96, %100, %104, %108, %112 in 2 : vector<8x8x4xbf16>, vector<8x8x4xbf16>, vector<8x8x4xbf16>, vector<8x8x4xbf16>, vector<8x8x4xbf16>, vector<8x8x4xbf16>, vector<8x8x4xbf16>, vector<8x8x4xbf16>, vector<8x8x4xbf16> -> vector<8x8x36xbf16>
    %c0_i32_104 = arith.constant 0 : i32
    %114 = arith.addi %1, %c0_i32_104 : i32
    %c0_105 = arith.constant 0 : index
    %115 = arith.index_cast %114 : i32 to index
    %c0_106 = arith.constant 0 : index
    %c0_107 = arith.constant 0 : index
    %116 = vector.load %arg5[%c0_105, %115, %c0_106, %c0_107] : memref<1x9x9x4xbf16, #tpu.memory_space<vmem>>, vector<1x8x8x4xbf16>
    %117 = vector.shape_cast %116 : vector<1x8x8x4xbf16> to vector<8x8x4xbf16>
    %c0_i32_108 = arith.constant 0 : i32
    %118 = arith.addi %1, %c0_i32_108 : i32
    %c0_109 = arith.constant 0 : index
    %119 = arith.index_cast %118 : i32 to index
    %c1_110 = arith.constant 1 : index
    %c0_111 = arith.constant 0 : index
    %120 = vector.load %arg4[%c0_109, %119, %c1_110, %c0_111] : memref<1x9x9x4xbf16, #tpu.memory_space<vmem>>, vector<1x8x8x4xbf16>
    %121 = vector.shape_cast %120 : vector<1x8x8x4xbf16> to vector<8x8x4xbf16>
    %c0_i32_112 = arith.constant 0 : i32
    %122 = arith.addi %1, %c0_i32_112 : i32
    %c0_113 = arith.constant 0 : index
    %123 = arith.index_cast %122 : i32 to index
    %c1_114 = arith.constant 1 : index
    %c0_115 = arith.constant 0 : index
    %124 = vector.load %arg5[%c0_113, %123, %c1_114, %c0_115] : memref<1x9x9x4xbf16, #tpu.memory_space<vmem>>, vector<1x8x8x4xbf16>
    %125 = vector.shape_cast %124 : vector<1x8x8x4xbf16> to vector<8x8x4xbf16>
    %c1_i32_116 = arith.constant 1 : i32
    %126 = arith.addi %1, %c1_i32_116 : i32
    %c0_117 = arith.constant 0 : index
    %127 = arith.index_cast %126 : i32 to index
    %c0_118 = arith.constant 0 : index
    %c0_119 = arith.constant 0 : index
    %128 = vector.load %arg3[%c0_117, %127, %c0_118, %c0_119] : memref<1x9x9x4xbf16, #tpu.memory_space<vmem>>, vector<1x8x8x4xbf16>
    %129 = vector.shape_cast %128 : vector<1x8x8x4xbf16> to vector<8x8x4xbf16>
    %c1_i32_120 = arith.constant 1 : i32
    %130 = arith.addi %1, %c1_i32_120 : i32
    %c0_121 = arith.constant 0 : index
    %131 = arith.index_cast %130 : i32 to index
    %c1_122 = arith.constant 1 : index
    %c0_123 = arith.constant 0 : index
    %132 = vector.load %arg2[%c0_121, %131, %c1_122, %c0_123] : memref<1x9x9x4xbf16, #tpu.memory_space<vmem>>, vector<1x8x8x4xbf16>
    %133 = vector.shape_cast %132 : vector<1x8x8x4xbf16> to vector<8x8x4xbf16>
    %c1_i32_124 = arith.constant 1 : i32
    %134 = arith.addi %1, %c1_i32_124 : i32
    %c0_125 = arith.constant 0 : index
    %135 = arith.index_cast %134 : i32 to index
    %c1_126 = arith.constant 1 : index
    %c0_127 = arith.constant 0 : index
    %136 = vector.load %arg3[%c0_125, %135, %c1_126, %c0_127] : memref<1x9x9x4xbf16, #tpu.memory_space<vmem>>, vector<1x8x8x4xbf16>
    %137 = vector.shape_cast %136 : vector<1x8x8x4xbf16> to vector<8x8x4xbf16>
    %c1_i32_128 = arith.constant 1 : i32
    %138 = arith.addi %1, %c1_i32_128 : i32
    %c0_129 = arith.constant 0 : index
    %139 = arith.index_cast %138 : i32 to index
    %c0_130 = arith.constant 0 : index
    %c0_131 = arith.constant 0 : index
    %140 = vector.load %arg5[%c0_129, %139, %c0_130, %c0_131] : memref<1x9x9x4xbf16, #tpu.memory_space<vmem>>, vector<1x8x8x4xbf16>
    %141 = vector.shape_cast %140 : vector<1x8x8x4xbf16> to vector<8x8x4xbf16>
    %c1_i32_132 = arith.constant 1 : i32
    %142 = arith.addi %1, %c1_i32_132 : i32
    %c0_133 = arith.constant 0 : index
    %143 = arith.index_cast %142 : i32 to index
    %c1_134 = arith.constant 1 : index
    %c0_135 = arith.constant 0 : index
    %144 = vector.load %arg4[%c0_133, %143, %c1_134, %c0_135] : memref<1x9x9x4xbf16, #tpu.memory_space<vmem>>, vector<1x8x8x4xbf16>
    %145 = vector.shape_cast %144 : vector<1x8x8x4xbf16> to vector<8x8x4xbf16>
    %c1_i32_136 = arith.constant 1 : i32
    %146 = arith.addi %1, %c1_i32_136 : i32
    %c0_137 = arith.constant 0 : index
    %147 = arith.index_cast %146 : i32 to index
    %c1_138 = arith.constant 1 : index
    %c0_139 = arith.constant 0 : index
    %148 = vector.load %arg5[%c0_137, %147, %c1_138, %c0_139] : memref<1x9x9x4xbf16, #tpu.memory_space<vmem>>, vector<1x8x8x4xbf16>
    %149 = vector.shape_cast %148 : vector<1x8x8x4xbf16> to vector<8x8x4xbf16>
    %150 = tpu.concatenate %117, %121, %125, %129, %133, %137, %141, %145, %149 in 2 : vector<8x8x4xbf16>, vector<8x8x4xbf16>, vector<8x8x4xbf16>, vector<8x8x4xbf16>, vector<8x8x4xbf16>, vector<8x8x4xbf16>, vector<8x8x4xbf16>, vector<8x8x4xbf16>, vector<8x8x4xbf16> -> vector<8x8x36xbf16>
    %151 = tpu.concatenate %113, %150 in 1 : vector<8x8x36xbf16>, vector<8x8x36xbf16> -> vector<8x16x36xbf16>
    %152 = tpu.concatenate %76, %151 in 0 : vector<8x16x36xbf16>, vector<8x16x36xbf16> -> vector<16x16x36xbf16>
    %153 = vector.shape_cast %152 : vector<16x16x36xbf16> to vector<256x36xbf16>
    %c0_140 = arith.constant 0 : index
    %c0_141 = arith.constant 0 : index
    %154 = vector.load %arg6[%c0_140, %c0_141] : memref<36x8xbf16, #tpu.memory_space<vmem>>, vector<36x8xbf16>
    %cst = arith.constant dense<0.000000e+00> : vector<256x8xf32>
    %155 = tpu.matmul %153, %154, %cst {dimension_numbers = #tpu.dot_dimension_numbers<[1], [0], [0], [1], [0, 0, 1, 1], [], []>} : vector<256x36xbf16>, vector<36x8xbf16>, vector<256x8xf32> -> vector<256x8xf32>
    %156 = vector.extract_strided_slice %155 {offsets = [0, 0], sizes = [128, 8], strides = [1, 1]} : vector<256x8xf32> to vector<128x8xf32>
    %157 = vector.shape_cast %156 : vector<128x8xf32> to vector<1x8x16x8xf32>
    %158 = arith.truncf %157 : vector<1x8x16x8xf32> to vector<1x8x16x8xbf16>
    %c0_142 = arith.constant 0 : index
    %c0_143 = arith.constant 0 : index
    %c0_144 = arith.constant 0 : index
    %c0_145 = arith.constant 0 : index
    %159 = vector.load %arg7[%c0_142, %c0_143, %c0_144, %c0_145] : memref<1x8x16x8xbf16, #tpu.memory_space<vmem>>, vector<1x8x16x8xbf16>
    tpu.vector_store %arg7[%c0_142, %c0_143, %c0_144, %c0_145], %158 {strides = array<i32>} : memref<1x8x16x8xbf16, #tpu.memory_space<vmem>>, vector<1x8x16x8xbf16>,
    %160 = vector.extract_strided_slice %155 {offsets = [128, 0], sizes = [128, 8], strides = [1, 1]} : vector<256x8xf32> to vector<128x8xf32>
    %161 = vector.shape_cast %160 : vector<128x8xf32> to vector<1x8x16x8xf32>
    %162 = arith.truncf %161 : vector<1x8x16x8xf32> to vector<1x8x16x8xbf16>
    %c0_146 = arith.constant 0 : index
    %c0_147 = arith.constant 0 : index
    %c0_148 = arith.constant 0 : index
    %c0_149 = arith.constant 0 : index
    %163 = vector.load %arg8[%c0_146, %c0_147, %c0_148, %c0_149] : memref<1x8x16x8xbf16, #tpu.memory_space<vmem>>, vector<1x8x16x8xbf16>
    tpu.vector_store %arg8[%c0_146, %c0_147, %c0_148, %c0_149], %162 {strides = array<i32>} : memref<1x8x16x8xbf16, #tpu.memory_space<vmem>>, vector<1x8x16x8xbf16>,
    %cst_150 = arith.constant dense<0.000000e+00> : vector<8xf32>
    %164 = vector.multi_reduction <add>, %155, %cst_150 [0] : vector<256x8xf32> to vector<8xf32>
    %165 = vector.shape_cast %164 : vector<8xf32> to vector<1x8xf32>
    %166 = arith.mulf %155, %155 : vector<256x8xf32>
    %cst_151 = arith.constant dense<0.000000e+00> : vector<8xf32>
    %167 = vector.multi_reduction <add>, %166, %cst_151 [0] : vector<256x8xf32> to vector<8xf32>
    %168 = vector.shape_cast %167 : vector<8xf32> to vector<1x8xf32>
    %169 = tpu.concatenate %165, %168 in 0 : vector<1x8xf32>, vector<1x8xf32> -> vector<2x8xf32>
    %170 = vector.shape_cast %169 : vector<2x8xf32> to vector<1x1x2x8xf32>
    %c0_152 = arith.constant 0 : index
    %c0_153 = arith.constant 0 : index
    %c0_154 = arith.constant 0 : index
    %c0_155 = arith.constant 0 : index
    %171 = vector.load %arg9[%c0_152, %c0_153, %c0_154, %c0_155] : memref<1x1x2x8xf32, #tpu.memory_space<vmem>>, vector<1x1x2x8xf32>
    tpu.vector_store %arg9[%c0_152, %c0_153, %c0_154, %c0_155], %170 {strides = array<i32>} : memref<1x1x2x8xf32, #tpu.memory_space<vmem>>, vector<1x1x2x8xf32>,
    return
  }
  func.func @transform_0(%arg0: i32, %arg1: i32) -> (i32, i32, i32, i32) {
    %c0_i32 = arith.constant 0 : i32
    %c0_i32_0 = arith.constant 0 : i32
    %c0_i32_1 = arith.constant 0 : i32
    %c0_i32_2 = arith.constant 0 : i32
    return %arg0, %c0_i32, %c0_i32_0, %c0_i32_1 : i32, i32, i32, i32
  }
  func.func @transform_1(%arg0: i32, %arg1: i32) -> (i32, i32, i32, i32) {
    %c0_i32 = arith.constant 0 : i32
    %c0_i32_0 = arith.constant 0 : i32
    %c0_i32_1 = arith.constant 0 : i32
    %c0_i32_2 = arith.constant 0 : i32
    return %arg0, %c0_i32, %c0_i32_0, %c0_i32_1 : i32, i32, i32, i32
  }
  func.func @transform_2(%arg0: i32, %arg1: i32) -> (i32, i32, i32, i32) {
    %c0_i32 = arith.constant 0 : i32
    %c0_i32_0 = arith.constant 0 : i32
    %c0_i32_1 = arith.constant 0 : i32
    %c0_i32_2 = arith.constant 0 : i32
    return %arg0, %c0_i32, %c0_i32_0, %c0_i32_1 : i32, i32, i32, i32
  }
  func.func @transform_3(%arg0: i32, %arg1: i32) -> (i32, i32, i32, i32) {
    %c0_i32 = arith.constant 0 : i32
    %c0_i32_0 = arith.constant 0 : i32
    %c0_i32_1 = arith.constant 0 : i32
    %c0_i32_2 = arith.constant 0 : i32
    return %arg0, %c0_i32, %c0_i32_0, %c0_i32_1 : i32, i32, i32, i32
  }
  func.func @transform_4(%arg0: i32, %arg1: i32) -> (i32, i32) {
    %c0_i32 = arith.constant 0 : i32
    %c0_i32_0 = arith.constant 0 : i32
    %c0_i32_1 = arith.constant 0 : i32
    return %c0_i32, %c0_i32_0 : i32, i32
  }
  func.func @transform_5(%arg0: i32, %arg1: i32) -> (i32, i32, i32, i32) {
    %c0_i32 = arith.constant 0 : i32
    %c0_i32_0 = arith.constant 0 : i32
    %c0_i32_1 = arith.constant 0 : i32
    return %arg0, %arg1, %c0_i32, %c0_i32_0 : i32, i32, i32, i32
  }
  func.func @transform_6(%arg0: i32, %arg1: i32) -> (i32, i32, i32, i32) {
    %c0_i32 = arith.constant 0 : i32
    %c0_i32_0 = arith.constant 0 : i32
    %c0_i32_1 = arith.constant 0 : i32
    return %arg0, %arg1, %c0_i32, %c0_i32_0 : i32, i32, i32, i32
  }
  func.func @transform_7(%arg0: i32, %arg1: i32) -> (i32, i32, i32, i32) {
    %c0_i32 = arith.constant 0 : i32
    %c0_i32_0 = arith.constant 0 : i32
    %c0_i32_1 = arith.constant 0 : i32
    return %arg0, %arg1, %c0_i32, %c0_i32_0 : i32, i32, i32, i32
  }
}

module attributes {stable_mosaic.version = 11 : i64} {
  func.func @_conv2_fused_kernel(%arg0: i32, %arg1: i32, %arg2: memref<1x8x16x8xbf16, #tpu.memory_space<vmem>>, %arg3: memref<1x8x16x8xbf16, #tpu.memory_space<vmem>>, %arg4: memref<1x1x16x8xbf16, #tpu.memory_space<vmem>>, %arg5: memref<1x8xf32, #tpu.memory_space<vmem>>, %arg6: memref<1x8xf32, #tpu.memory_space<vmem>>, %arg7: memref<72x8xbf16, #tpu.memory_space<vmem>>, %arg8: memref<1x8x8x8xbf16, #tpu.memory_space<vmem>>, %arg9: memref<1x1x2x8xf32, #tpu.memory_space<vmem>>) attributes {dimension_semantics = [#tpu.dimension_semantics<parallel>, #tpu.dimension_semantics<parallel>], iteration_bounds = array<i64: 2, 1>, scalar_prefetch = 0 : i64, scratch_operands = 0 : i64, tpu.core_type = #tpu.core_type<tc>, window_params = [{transform_indices = @transform_0, window_bounds = array<i64: 1, 8, 16, 8>}, {transform_indices = @transform_1, window_bounds = array<i64: 1, 8, 16, 8>}, {transform_indices = @transform_2, window_bounds = array<i64: 1, 1, 16, 8>}, {pipeline_mode = #tpu.pipeline_mode<synchronous>, transform_indices = @transform_3, window_bounds = array<i64: 1, 8>}, {pipeline_mode = #tpu.pipeline_mode<synchronous>, transform_indices = @transform_4, window_bounds = array<i64: 1, 8>}, {pipeline_mode = #tpu.pipeline_mode<synchronous>, transform_indices = @transform_5, window_bounds = array<i64: 72, 8>}, {transform_indices = @transform_6, window_bounds = array<i64: 1, 8, 8, 8>}, {transform_indices = @transform_7, window_bounds = array<i64: 1, 1, 2, 8>}]} {
    %c0 = arith.constant 0 : index
    %c0_0 = arith.constant 0 : index
    %c0_1 = arith.constant 0 : index
    %c0_2 = arith.constant 0 : index
    %0 = vector.load %arg2[%c0, %c0_0, %c0_1, %c0_2] : memref<1x8x16x8xbf16, #tpu.memory_space<vmem>>, vector<1x8x16x8xbf16>
    %1 = vector.shape_cast %0 : vector<1x8x16x8xbf16> to vector<8x16x8xbf16>
    %2 = arith.extf %1 : vector<8x16x8xbf16> to vector<8x16x8xf32>
    %c0_3 = arith.constant 0 : index
    %c0_4 = arith.constant 0 : index
    %3 = vector.load %arg5[%c0_3, %c0_4] : memref<1x8xf32, #tpu.memory_space<vmem>>, vector<1x8xf32>
    %4 = vector.shape_cast %3 : vector<1x8xf32> to vector<1x1x8xf32>
    %5 = vector.broadcast %4 : vector<1x1x8xf32> to vector<8x16x8xf32>
    %6 = arith.mulf %2, %5 : vector<8x16x8xf32>
    %c0_5 = arith.constant 0 : index
    %c0_6 = arith.constant 0 : index
    %7 = vector.load %arg6[%c0_5, %c0_6] : memref<1x8xf32, #tpu.memory_space<vmem>>, vector<1x8xf32>
    %8 = vector.shape_cast %7 : vector<1x8xf32> to vector<1x1x8xf32>
    %9 = vector.broadcast %8 : vector<1x1x8xf32> to vector<8x16x8xf32>
    %10 = arith.addf %6, %9 : vector<8x16x8xf32>
    %cst = arith.constant 0.000000e+00 : f32
    %11 = vector.broadcast %cst : f32 to vector<8x16x8xf32>
    %12 = arith.maximumf %10, %11 : vector<8x16x8xf32>
    %13 = arith.truncf %12 : vector<8x16x8xf32> to vector<8x16x8xbf16>
    %c0_7 = arith.constant 0 : index
    %c0_8 = arith.constant 0 : index
    %c0_9 = arith.constant 0 : index
    %c0_10 = arith.constant 0 : index
    %14 = vector.load %arg3[%c0_7, %c0_8, %c0_9, %c0_10] : memref<1x8x16x8xbf16, #tpu.memory_space<vmem>>, vector<1x8x16x8xbf16>
    %15 = vector.shape_cast %14 : vector<1x8x16x8xbf16> to vector<8x16x8xbf16>
    %16 = arith.extf %15 : vector<8x16x8xbf16> to vector<8x16x8xf32>
    %c0_11 = arith.constant 0 : index
    %c0_12 = arith.constant 0 : index
    %17 = vector.load %arg5[%c0_11, %c0_12] : memref<1x8xf32, #tpu.memory_space<vmem>>, vector<1x8xf32>
    %18 = vector.shape_cast %17 : vector<1x8xf32> to vector<1x1x8xf32>
    %19 = vector.broadcast %18 : vector<1x1x8xf32> to vector<8x16x8xf32>
    %20 = arith.mulf %16, %19 : vector<8x16x8xf32>
    %c0_13 = arith.constant 0 : index
    %c0_14 = arith.constant 0 : index
    %21 = vector.load %arg6[%c0_13, %c0_14] : memref<1x8xf32, #tpu.memory_space<vmem>>, vector<1x8xf32>
    %22 = vector.shape_cast %21 : vector<1x8xf32> to vector<1x1x8xf32>
    %23 = vector.broadcast %22 : vector<1x1x8xf32> to vector<8x16x8xf32>
    %24 = arith.addf %20, %23 : vector<8x16x8xf32>
    %cst_15 = arith.constant 0.000000e+00 : f32
    %25 = vector.broadcast %cst_15 : f32 to vector<8x16x8xf32>
    %26 = arith.maximumf %24, %25 : vector<8x16x8xf32>
    %27 = arith.truncf %26 : vector<8x16x8xf32> to vector<8x16x8xbf16>
    %c0_16 = arith.constant 0 : index
    %c0_17 = arith.constant 0 : index
    %c0_18 = arith.constant 0 : index
    %c0_19 = arith.constant 0 : index
    %28 = vector.load %arg4[%c0_16, %c0_17, %c0_18, %c0_19] : memref<1x1x16x8xbf16, #tpu.memory_space<vmem>>, vector<1x1x16x8xbf16>
    %29 = vector.shape_cast %28 : vector<1x1x16x8xbf16> to vector<1x16x8xbf16>
    %30 = arith.extf %29 : vector<1x16x8xbf16> to vector<1x16x8xf32>
    %c0_20 = arith.constant 0 : index
    %c0_21 = arith.constant 0 : index
    %31 = vector.load %arg5[%c0_20, %c0_21] : memref<1x8xf32, #tpu.memory_space<vmem>>, vector<1x8xf32>
    %32 = vector.shape_cast %31 : vector<1x8xf32> to vector<1x1x8xf32>
    %33 = vector.broadcast %32 : vector<1x1x8xf32> to vector<1x16x8xf32>
    %34 = arith.mulf %30, %33 : vector<1x16x8xf32>
    %c0_22 = arith.constant 0 : index
    %c0_23 = arith.constant 0 : index
    %35 = vector.load %arg6[%c0_22, %c0_23] : memref<1x8xf32, #tpu.memory_space<vmem>>, vector<1x8xf32>
    %36 = vector.shape_cast %35 : vector<1x8xf32> to vector<1x1x8xf32>
    %37 = vector.broadcast %36 : vector<1x1x8xf32> to vector<1x16x8xf32>
    %38 = arith.addf %34, %37 : vector<1x16x8xf32>
    %cst_24 = arith.constant 0.000000e+00 : f32
    %39 = vector.broadcast %cst_24 : f32 to vector<1x16x8xf32>
    %40 = arith.maximumf %38, %39 : vector<1x16x8xf32>
    %41 = arith.truncf %40 : vector<1x16x8xf32> to vector<1x16x8xbf16>
    %c0_i32 = arith.constant 0 : i32
    %42 = arith.cmpi eq, %arg1, %c0_i32 : i32
    %cst_25 = arith.constant 0.000000e+00 : bf16
    %43 = vector.broadcast %cst_25 : bf16 to vector<1x16x8xbf16>
    %44 = arith.select %42, %43, %41 : vector<1x16x8xbf16>
    %45 = tpu.concatenate %44, %27 in 0 : vector<1x16x8xbf16>, vector<8x16x8xbf16> -> vector<9x16x8xbf16>
    %cst_26 = arith.constant 0.000000e+00 : bf16
    %46 = vector.broadcast %cst_26 : bf16 to vector<8x1x8xbf16>
    %47 = vector.extract_strided_slice %45 {offsets = [0, 0, 0], sizes = [8, 16, 8], strides = [1, 1, 1]} : vector<9x16x8xbf16> to vector<8x16x8xbf16>
    %48 = vector.extract_strided_slice %45 {offsets = [1, 0, 0], sizes = [8, 16, 8], strides = [1, 1, 1]} : vector<9x16x8xbf16> to vector<8x16x8xbf16>
    %49 = vector.extract_strided_slice %47 {offsets = [0, 0, 0], sizes = [8, 8, 8], strides = [1, 1, 1]} : vector<8x16x8xbf16> to vector<8x8x8xbf16>
    %50 = vector.extract_strided_slice %47 {offsets = [0, 8, 0], sizes = [8, 8, 8], strides = [1, 1, 1]} : vector<8x16x8xbf16> to vector<8x8x8xbf16>
    %51 = vector.extract_strided_slice %50 {offsets = [0, 0, 0], sizes = [8, 7, 8], strides = [1, 1, 1]} : vector<8x8x8xbf16> to vector<8x7x8xbf16>
    %52 = tpu.concatenate %46, %51 in 1 : vector<8x1x8xbf16>, vector<8x7x8xbf16> -> vector<8x8x8xbf16>
    %53 = vector.extract_strided_slice %13 {offsets = [0, 0, 0], sizes = [8, 8, 8], strides = [1, 1, 1]} : vector<8x16x8xbf16> to vector<8x8x8xbf16>
    %54 = vector.extract_strided_slice %13 {offsets = [0, 8, 0], sizes = [8, 8, 8], strides = [1, 1, 1]} : vector<8x16x8xbf16> to vector<8x8x8xbf16>
    %55 = vector.extract_strided_slice %54 {offsets = [0, 0, 0], sizes = [8, 7, 8], strides = [1, 1, 1]} : vector<8x8x8xbf16> to vector<8x7x8xbf16>
    %56 = tpu.concatenate %46, %55 in 1 : vector<8x1x8xbf16>, vector<8x7x8xbf16> -> vector<8x8x8xbf16>
    %57 = vector.extract_strided_slice %48 {offsets = [0, 0, 0], sizes = [8, 8, 8], strides = [1, 1, 1]} : vector<8x16x8xbf16> to vector<8x8x8xbf16>
    %58 = vector.extract_strided_slice %48 {offsets = [0, 8, 0], sizes = [8, 8, 8], strides = [1, 1, 1]} : vector<8x16x8xbf16> to vector<8x8x8xbf16>
    %59 = vector.extract_strided_slice %58 {offsets = [0, 0, 0], sizes = [8, 7, 8], strides = [1, 1, 1]} : vector<8x8x8xbf16> to vector<8x7x8xbf16>
    %60 = tpu.concatenate %46, %59 in 1 : vector<8x1x8xbf16>, vector<8x7x8xbf16> -> vector<8x8x8xbf16>
    %61 = tpu.concatenate %52, %49, %50, %56, %53, %54, %60, %57, %58 in 2 : vector<8x8x8xbf16>, vector<8x8x8xbf16>, vector<8x8x8xbf16>, vector<8x8x8xbf16>, vector<8x8x8xbf16>, vector<8x8x8xbf16>, vector<8x8x8xbf16>, vector<8x8x8xbf16>, vector<8x8x8xbf16> -> vector<8x8x72xbf16>
    %62 = vector.shape_cast %61 : vector<8x8x72xbf16> to vector<64x72xbf16>
    %c0_27 = arith.constant 0 : index
    %c0_28 = arith.constant 0 : index
    %63 = vector.load %arg7[%c0_27, %c0_28] : memref<72x8xbf16, #tpu.memory_space<vmem>>, vector<72x8xbf16>
    %cst_29 = arith.constant dense<0.000000e+00> : vector<64x8xf32>
    %64 = tpu.matmul %62, %63, %cst_29 {dimension_numbers = #tpu.dot_dimension_numbers<[1], [0], [0], [1], [0, 0, 1, 1], [], []>} : vector<64x72xbf16>, vector<72x8xbf16>, vector<64x8xf32> -> vector<64x8xf32>
    %65 = vector.shape_cast %64 : vector<64x8xf32> to vector<1x8x8x8xf32>
    %66 = arith.truncf %65 : vector<1x8x8x8xf32> to vector<1x8x8x8xbf16>
    %c0_30 = arith.constant 0 : index
    %c0_31 = arith.constant 0 : index
    %c0_32 = arith.constant 0 : index
    %c0_33 = arith.constant 0 : index
    %67 = vector.load %arg8[%c0_30, %c0_31, %c0_32, %c0_33] : memref<1x8x8x8xbf16, #tpu.memory_space<vmem>>, vector<1x8x8x8xbf16>
    tpu.vector_store %arg8[%c0_30, %c0_31, %c0_32, %c0_33], %66 {strides = array<i32>} : memref<1x8x8x8xbf16, #tpu.memory_space<vmem>>, vector<1x8x8x8xbf16>,
    %cst_34 = arith.constant dense<0.000000e+00> : vector<8xf32>
    %68 = vector.multi_reduction <add>, %64, %cst_34 [0] : vector<64x8xf32> to vector<8xf32>
    %69 = vector.shape_cast %68 : vector<8xf32> to vector<1x8xf32>
    %70 = arith.mulf %64, %64 : vector<64x8xf32>
    %cst_35 = arith.constant dense<0.000000e+00> : vector<8xf32>
    %71 = vector.multi_reduction <add>, %70, %cst_35 [0] : vector<64x8xf32> to vector<8xf32>
    %72 = vector.shape_cast %71 : vector<8xf32> to vector<1x8xf32>
    %73 = tpu.concatenate %69, %72 in 0 : vector<1x8xf32>, vector<1x8xf32> -> vector<2x8xf32>
    %74 = vector.shape_cast %73 : vector<2x8xf32> to vector<1x1x2x8xf32>
    %c0_36 = arith.constant 0 : index
    %c0_37 = arith.constant 0 : index
    %c0_38 = arith.constant 0 : index
    %c0_39 = arith.constant 0 : index
    %75 = vector.load %arg9[%c0_36, %c0_37, %c0_38, %c0_39] : memref<1x1x2x8xf32, #tpu.memory_space<vmem>>, vector<1x1x2x8xf32>
    tpu.vector_store %arg9[%c0_36, %c0_37, %c0_38, %c0_39], %74 {strides = array<i32>} : memref<1x1x2x8xf32, #tpu.memory_space<vmem>>, vector<1x1x2x8xf32>,
    return
  }
  func.func @transform_0(%arg0: i32, %arg1: i32) -> (i32, i32, i32, i32) {
    %c0_i32 = arith.constant 0 : i32
    %c0_i32_0 = arith.constant 0 : i32
    %c0_i32_1 = arith.constant 0 : i32
    return %arg0, %arg1, %c0_i32, %c0_i32_0 : i32, i32, i32, i32
  }
  func.func @transform_1(%arg0: i32, %arg1: i32) -> (i32, i32, i32, i32) {
    %c0_i32 = arith.constant 0 : i32
    %c0_i32_0 = arith.constant 0 : i32
    %c0_i32_1 = arith.constant 0 : i32
    return %arg0, %arg1, %c0_i32, %c0_i32_0 : i32, i32, i32, i32
  }
  func.func @transform_2(%arg0: i32, %arg1: i32) -> (i32, i32, i32, i32) {
    %c0_i32 = arith.constant 0 : i32
    %c0_i32_0 = arith.constant 0 : i32
    %c0_i32_1 = arith.constant 0 : i32
    return %arg0, %arg1, %c0_i32, %c0_i32_0 : i32, i32, i32, i32
  }
  func.func @transform_3(%arg0: i32, %arg1: i32) -> (i32, i32) {
    %c0_i32 = arith.constant 0 : i32
    %c0_i32_0 = arith.constant 0 : i32
    %c0_i32_1 = arith.constant 0 : i32
    return %c0_i32, %c0_i32_0 : i32, i32
  }
  func.func @transform_4(%arg0: i32, %arg1: i32) -> (i32, i32) {
    %c0_i32 = arith.constant 0 : i32
    %c0_i32_0 = arith.constant 0 : i32
    %c0_i32_1 = arith.constant 0 : i32
    return %c0_i32, %c0_i32_0 : i32, i32
  }
  func.func @transform_5(%arg0: i32, %arg1: i32) -> (i32, i32) {
    %c0_i32 = arith.constant 0 : i32
    %c0_i32_0 = arith.constant 0 : i32
    %c0_i32_1 = arith.constant 0 : i32
    return %c0_i32, %c0_i32_0 : i32, i32
  }
  func.func @transform_6(%arg0: i32, %arg1: i32) -> (i32, i32, i32, i32) {
    %c0_i32 = arith.constant 0 : i32
    %c0_i32_0 = arith.constant 0 : i32
    %c0_i32_1 = arith.constant 0 : i32
    return %arg0, %arg1, %c0_i32, %c0_i32_0 : i32, i32, i32, i32
  }
  func.func @transform_7(%arg0: i32, %arg1: i32) -> (i32, i32, i32, i32) {
    %c0_i32 = arith.constant 0 : i32
    %c0_i32_0 = arith.constant 0 : i32
    %c0_i32_1 = arith.constant 0 : i32
    return %arg0, %arg1, %c0_i32, %c0_i32_0 : i32, i32, i32, i32
  }
}

module attributes {stable_mosaic.version = 11 : i64} {
  func.func @_scale_shift_relu_kernel(%arg0: i32, %arg1: memref<8x128xbf16, #tpu.memory_space<vmem>>, %arg2: memref<1x128xf32, #tpu.memory_space<vmem>>, %arg3: memref<1x128xf32, #tpu.memory_space<vmem>>, %arg4: memref<8x128xf32, #tpu.memory_space<vmem>>) attributes {dimension_semantics = [#tpu.dimension_semantics<parallel>], iteration_bounds = array<i64: 1>, scalar_prefetch = 0 : i64, scratch_operands = 0 : i64, tpu.core_type = #tpu.core_type<tc>, window_params = [{transform_indices = @transform_0, window_bounds = array<i64: 8, 128>}, {pipeline_mode = #tpu.pipeline_mode<synchronous>, transform_indices = @transform_1, window_bounds = array<i64: 1, 128>}, {pipeline_mode = #tpu.pipeline_mode<synchronous>, transform_indices = @transform_2, window_bounds = array<i64: 1, 128>}, {transform_indices = @transform_3, window_bounds = array<i64: 8, 128>}]} {
    %c0 = arith.constant 0 : index
    %c0_0 = arith.constant 0 : index
    %0 = vector.load %arg1[%c0, %c0_0] : memref<8x128xbf16, #tpu.memory_space<vmem>>, vector<8x128xbf16>
    %1 = arith.extf %0 : vector<8x128xbf16> to vector<8x128xf32>
    %c0_1 = arith.constant 0 : index
    %c0_2 = arith.constant 0 : index
    %2 = vector.load %arg2[%c0_1, %c0_2] : memref<1x128xf32, #tpu.memory_space<vmem>>, vector<1x128xf32>
    %3 = vector.broadcast %2 : vector<1x128xf32> to vector<8x128xf32>
    %4 = arith.mulf %1, %3 : vector<8x128xf32>
    %c0_3 = arith.constant 0 : index
    %c0_4 = arith.constant 0 : index
    %5 = vector.load %arg3[%c0_3, %c0_4] : memref<1x128xf32, #tpu.memory_space<vmem>>, vector<1x128xf32>
    %6 = vector.broadcast %5 : vector<1x128xf32> to vector<8x128xf32>
    %7 = arith.addf %4, %6 : vector<8x128xf32>
    %cst = arith.constant 0.000000e+00 : f32
    %8 = vector.broadcast %cst : f32 to vector<8x128xf32>
    %9 = arith.maximumf %7, %8 : vector<8x128xf32>
    %c0_5 = arith.constant 0 : index
    %c0_6 = arith.constant 0 : index
    %10 = vector.load %arg4[%c0_5, %c0_6] : memref<8x128xf32, #tpu.memory_space<vmem>>, vector<8x128xf32>
    tpu.vector_store %arg4[%c0_5, %c0_6], %9 {strides = array<i32>} : memref<8x128xf32, #tpu.memory_space<vmem>>, vector<8x128xf32>,
    return
  }
  func.func @transform_0(%arg0: i32) -> (i32, i32) {
    %c0_i32 = arith.constant 0 : i32
    %c0_i32_0 = arith.constant 0 : i32
    return %arg0, %c0_i32 : i32, i32
  }
  func.func @transform_1(%arg0: i32) -> (i32, i32) {
    %c0_i32 = arith.constant 0 : i32
    %c0_i32_0 = arith.constant 0 : i32
    %c0_i32_1 = arith.constant 0 : i32
    return %c0_i32, %c0_i32_0 : i32, i32
  }
  func.func @transform_2(%arg0: i32) -> (i32, i32) {
    %c0_i32 = arith.constant 0 : i32
    %c0_i32_0 = arith.constant 0 : i32
    %c0_i32_1 = arith.constant 0 : i32
    return %c0_i32, %c0_i32_0 : i32, i32
  }
  func.func @transform_3(%arg0: i32) -> (i32, i32) {
    %c0_i32 = arith.constant 0 : i32
    %c0_i32_0 = arith.constant 0 : i32
    return %arg0, %c0_i32 : i32, i32
  }
}

</mosaic_0001>

<bundles_post_ra>
// kernel: double_conv_forward.5
= control target key start
LH: loop header
LB: loop body
LE: loop exit
PB: predicated region body
PF: predicated region fallthrough
CT: control target
= control target key end

     0   :  { %s72_s0 = inlined_call_operand.vmem [shape: bf16[8,128], index: 0, kind: input, shape index: {}]   ;;  %s73_s1 = inlined_call_operand.vmem [shape: f32[1,128], index: 1, kind: input, shape index: {}]   ;;  %s74_s2 = inlined_call_operand.vmem [shape: f32[1,128], index: 2, kind: input, shape index: {}]   ;;  %s75_s3 = inlined_call_operand.vmem [shape: f32[8,128], index: 3, kind: output, shape index: {}]  }
   0x1   :  { %v14_v0 = vld [vmem:[%s72_s0] sm:$0xf] }
   0x2   :  { %v38_v1 = vld [vmem:[%s73_s1] ss:$0 sm:$0xff]  ;;  %v15_v2 = vunpack.c.l.bf16 %v14_v0 }
   0x3   :  { %v39_v3 = vld [vmem:[%s74_s2] ss:$0 sm:$0xff] }
   0x4   :  { %v23_v4 = vmul.f32 %v38_v1, %v15_v2 }
   0x6   :  { %v31_v5 = vadd.f32 %v39_v3, %v23_v4 }
   0x8   :  { %v32_v6 = vmax.f32 %v31_v5, 0.0 }
   0xa   :  { %33 = vst [vmem:[%s75_s3] sm:$0xff] %v32_v6 }

// kernel: double_conv_forward.4
= control target key start
LH: loop header
LB: loop body
LE: loop exit
PB: predicated region body
PF: predicated region fallthrough
CT: control target
= control target key end

     0   :  { %s1760_s24 = smov 0   ;;  %s1762_s25 = smov 0   ;;  %s2281_s0 = inlined_call_operand.vmem [shape: bf16[2,8,16,8], index: 0, kind: input, shape index: {}]   ;;  %s2282_s1 = inlined_call_operand.vmem [shape: bf16[2,8,16,8], index: 1, kind: input, shape index: {}]   ;;  %s2283_s2 = inlined_call_operand.vmem [shape: bf16[2,1,16,8], index: 2, kind: input, shape index: {}]   ;;  %s2284_s3 = inlined_call_operand.vmem [shape: f32[1,8], index: 3, kind: input, shape index: {}]   ;;  %s2285_s4 = inlined_call_operand.vmem [shape: f32[1,8], index: 4, kind: input, shape index: {}]   ;;  %s2286_s5 = inlined_call_operand.vmem [shape: bf16[72,8], index: 5, kind: input, shape index: {}]   ;;  %s2287_s6 = inlined_call_operand.vmem [shape: bf16[2,8,8,8], index: 6, kind: output, shape index: {0}]   ;;  %s2288_s7 = inlined_call_operand.vmem [shape: f32[2,1,2,8], index: 7, kind: output, shape index: {1}]  }
   0x1   :  { %s1764_s2 = smov 0  }
   0x2 LB: > { %s30_s26 = sadd.s32 1, %s1705_s25  ;;  %p1501_p0 = scmp.ge.s32.totalorder %s1709_s2, 1  ;;  %s1709_s2 = sphi %s1764_s2, %s18_s2   ;;  %s1705_s25 = sphi %s1762_s25, %s2292_s25   ;;  %s1701_s24 = sphi %s1760_s24, %s2291_s24  }
   0x3   : > { %p32_p1 = scmp.ge.s32.totalorder %s30_s26, 2  ;;  %p298_p2 = scmp.lt.s32.totalorder %s1709_s2, 3 }
   0x5   : > { %s2294_s26 = smov (%p32_p1, %s30_s26), 0  ;;  %p299_p3 = pnand %p1501_p0, %p298_p2 }
   0x6   : > { %v1711_v0 = vmov (!%p299_p3), 0   ;;  %s1712_s27 = smov (!%p299_p3), 8   ;;  %p366_p4 = scmp.lt.s32.totalorder (!%p299_p3), %s1701_s24, 1  ;;  %v1793_v4 = vld [vmem:[%s2284_s3] ss:$0 sm:$0xff] (!%p299_p3)  ;;  %vm692_vm0 = vcmask (!%p299_p3), 1040384  }
   0x7   : > { %302 = sbr.rel (%p299_p3) target bundleno = 508 (0x1fc), region = 44  ;;  %801 = vrot.lane.b32.xlu0 (!%p299_p3), %v1711_v0, %s1712_s27  ;;  %v1779_v1 = vrot.slane (!%p299_p3), %v1711_v0, 3  ;;  %v1781_v2 = vrot.slane (!%p299_p3), %v1711_v0, 4  ;;  %s1713_s28 = smov (!%p299_p3), 16   ;;  %v1812_v13 = vld [vmem:[%s2285_s4] ss:$0 sm:$0xff] (!%p299_p3) }
   0x8   : > { %vm693_vm1 = vsmask.f32 (!%p299_p3), 256  ;;  %s1714_s17 = smov (!%p299_p3), 32   ;;  %s1715_s18 = smov (!%p299_p3), 24   ;;  %vm1184_vm3 = vcmask (!%p299_p3), 1043456   ;;  %vm971_vm4 = vcmask (!%p299_p3), 64512  }
   0x9   : > { %v627_v3 = vor.u32 (!%p299_p3), %v1781_v2, %v1779_v1  ;;  %vm1866_vm2 = vmand (!%p299_p3), %vm692_vm0, %vm693_vm1  ;;  %s1716_s19 = smov (!%p299_p3), 40   ;;  %s1717_s22 = smov (!%p299_p3), 48   ;;  %vm996_vm5 = vcmask (!%p299_p3), 130048   ;;  %vm1013_vm6 = vcmask (!%p299_p3), 195584   ;;  %vm1030_vm7 = vcmask (!%p299_p3), 261120  }
   0xa   : > { %s1718_s9 = smov (!%p299_p3), 56   ;;  %vm1047_vm8 = vcmask (!%p299_p3), 326656   ;;  %vm1064_vm9 = vcmask (!%p299_p3), 392192   ;;  %vm1081_vm10 = vcmask (!%p299_p3), 457728   ;;  %vm1098_vm11 = vcmask (!%p299_p3), 523264  }
   0xb   : > { %825 = vrot.lane.b32.xlu0 (!%p299_p3), %v1781_v2, %s1713_s28  ;;  %vm1171_vm12 = vcmask (!%p299_p3), 588800   ;;  %vm1261_vm13 = vcmask (!%p299_p3), 60416   ;;  %vm1322_vm14 = vcmask (!%p299_p3), 58368  }
   0xe   : > { %s2296_s24 = smov (!%p366_p4, %s1701_s24), 1 }
   0xf   : > { %s1528_s29 = sshll.u32 %s2296_s24, 6 }
  0x10   : > { %s1798_s11 = scalar_lea.vmem %s2282_s1, %s1528_s29  ;;  %s1803_s14 = scalar_lea.vmem %s2281_s0, %s1528_s29 }
  0x11   : > { %v1603_v5 = vld [vmem:[%s1798_s11 + $0x8] sm:$0xff]   ;;  %v1565_v6 = vld [vmem:[%s1798_s11] sm:$0xff]   ;;  %v1604_v7 = vld [vmem:[%s1798_s11 + $0x10] sm:$0xff]  }
  0x12   : > { %v1570_v8 = vunpack.c.l.bf16 %v1603_v5  ;;  %v1571_v9 = vunpack.c.h.bf16 %v1603_v5  ;;  %v1566_v10 = vunpack.c.l.bf16 %v1565_v6  ;;  %v1567_v11 = vunpack.c.h.bf16 %v1565_v6  ;;  %v1533_v12 = vld [vmem:[%s1803_s14] sm:$0xff]   ;;  %v1596_v34 = vld [vmem:[%s1803_s14 + $0x8] sm:$0xff]   ;;  %v1597_v39 = vld [vmem:[%s1803_s14 + $0x10] sm:$0xff]  }
  0x13   : > { %v1574_v14 = vunpack.c.l.bf16 %v1604_v7  ;;  %v1575_v15 = vunpack.c.h.bf16 %v1604_v7  ;;  %v1534_v16 = vunpack.c.l.bf16 %v1533_v12  ;;  %v1535_v17 = vunpack.c.h.bf16 %v1533_v12  ;;  %v1598_v51 = vld [vmem:[%s1803_s14 + $0x18] sm:$0xff]  }
  0x14   : > { %v550_v18 = vmul.f32 %v1570_v8, %v1793_v4  ;;  %v551_v19 = vmul.f32 %v1571_v9, %v1793_v4  ;;  %v548_v20 = vmul.f32 %v1566_v10, %v1793_v4  ;;  %v549_v21 = vmul.f32 %v1567_v11, %v1793_v4 }
  0x15   : > { %v552_v22 = vmul.f32 %v1574_v14, %v1793_v4  ;;  %v553_v23 = vmul.f32 %v1575_v15, %v1793_v4  ;;  %v453_v24 = vmul.f32 %v1534_v16, %v1793_v4  ;;  %v454_v25 = vmul.f32 %v1535_v17, %v1793_v4 }
  0x16   : > { %v566_v26 = vadd.f32 %v1812_v13, %v550_v18  ;;  %v567_v27 = vadd.f32 %v1812_v13, %v551_v19  ;;  %v564_v28 = vadd.f32 %v1812_v13, %v548_v20  ;;  %v565_v29 = vadd.f32 %v1812_v13, %v549_v21 }
  0x17   : > { %v568_v30 = vadd.f32 %v1812_v13, %v552_v22  ;;  %v569_v31 = vadd.f32 %v1812_v13, %v553_v23  ;;  %v476_v32 = vadd.f32 %v1812_v13, %v453_v24  ;;  %v477_v33 = vadd.f32 %v1812_v13, %v454_v25 }
  0x18   : > { %v582_v35 = vmax.f32 %v566_v26, 0.0  ;;  %v583_v36 = vmax.f32 %v567_v27, 0.0  ;;  %v580_v37 = vmax.f32 %v564_v28, 0.0  ;;  %v581_v38 = vmax.f32 %v565_v29, 0.0 }
  0x19   : > { %v584_v40 = vmax.f32 %v568_v30, 0.0  ;;  %v585_v41 = vmax.f32 %v569_v31, 0.0  ;;  %v492_v42 = vmax.f32 %v476_v32, 0.0  ;;  %v493_v43 = vmax.f32 %v477_v33, 0.0 }
  0x1a   : > { %v1832_v44 = vpack.c.bf16 %v583_v36, %v582_v35  ;;  %v1834_v45 = vpack.c.bf16 %v581_v38, %v580_v37  ;;  %v1538_v46 = vunpack.c.l.bf16 %v1596_v34  ;;  %v1539_v47 = vunpack.c.h.bf16 %v1596_v34  ;;  %v1605_v35 = vld [vmem:[%s1798_s11 + $0x18] sm:$0xff]  }
  0x1b   : > { %v1836_v48 = vpack.c.bf16 %v493_v43, %v492_v42  ;;  %v1542_v49 = vunpack.c.l.bf16 %v1597_v39  ;;  %v1543_v50 = vunpack.c.h.bf16 %v1597_v39  ;;  %v1843_v52 = vpack.c.bf16 %v585_v41, %v584_v40 }
  0x1c   : > { %805 = vrot.lane.b32.xlu1 %v1832_v44, %s1712_s27  ;;  %803 = vrot.lane.b32.xlu0 %v1834_v45, %s1712_s27  ;;  %v455_v53 = vmul.f32 %v1538_v46, %v1793_v4  ;;  %v456_v54 = vmul.f32 %v1539_v47, %v1793_v4  ;;  %v819_v55 = vrot.slane %v1832_v44, 4  ;;  %v1546_v62 = vunpack.c.l.bf16 %v1598_v51 }
  0x1d   : > { %v704_v56 = vshrl.u32 %v1836_v48, 16  ;;  %v707_v57 = vshll.u32 %v1836_v48, 16  ;;  %v457_v58 = vmul.f32 %v1542_v49, %v1793_v4  ;;  %v458_v61 = vmul.f32 %v1543_v50, %v1793_v4 }
  0x1e   : > { %v478_v59 = vadd.f32 %v1812_v13, %v455_v53  ;;  %v479_v60 = vadd.f32 %v1812_v13, %v456_v54  ;;  %v1547_v6 = vunpack.c.h.bf16 %v1598_v51  ;;  %v459_v10 = vmul.f32 %v1546_v62, %v1793_v4 }
  0x1f   : > { %v706_v63 = vrot.slane %v704_v56, 3  ;;  %v709_v0 = vrot.slane %v707_v57, 4  ;;  %v480_v5 = vadd.f32 %v1812_v13, %v457_v58  ;;  %v481_v9 = vadd.f32 %v1812_v13, %v458_v61  ;;  %v1608_v58 = vld [vmem:[%s1798_s11 + $0x30] sm:$0xff]  }
  0x20   : > { %807 = vrot.lane.b32.xlu1 %v1843_v52, %s1712_s27  ;;  %873 = vrot.lane.b32.xlu0 %v1836_v48, %s1714_s17  ;;  %v494_v7 = vmax.f32 %v478_v59, 0.0  ;;  %v495_v8 = vmax.f32 %v479_v60, 0.0  ;;  %v460_v14 = vmul.f32 %v1547_v6, %v1793_v4  ;;  %v482_v18 = vadd.f32 %v1812_v13, %v459_v10 }
  0x21   : > { %v710_v11 = vor.u32 %v709_v0, %v706_v63  ;;  %v496_v12 = vmax.f32 %v480_v5, 0.0  ;;  %v497_v17 = vmax.f32 %v481_v9, 0.0  ;;  %v818_v19 = vrot.slane %v1834_v45, 4  ;;  %v1599_v0 = vld [vmem:[%s1803_s14 + $0x20] sm:$0xff]  }
  0x22   : > { %v1862_v15 = vpack.c.bf16 %v495_v8, %v494_v7  ;;  %v483_v20 = vadd.f32 %v1812_v13, %v460_v14  ;;  %v498_v24 = vmax.f32 %v482_v18, 0.0  ;;  %v820_v32 = vrot.slane %v1843_v52, 4 }
  0x23   : > { %v1878_v21 = vpack.c.bf16 %v497_v17, %v496_v12  ;;  %v775_v25 = vsel %vm1866_vm2, 0, %v710_v11  ;;  %v1578_v42 = vunpack.c.l.bf16 %v1605_v35  ;;  %v629_v46 = vshrl.u32 %v1834_v45, 16 }
  0x24   : > { %875 = vrot.lane.b32.xlu1 %v1862_v15, %s1714_s17  ;;  %829 = vrot.lane.b32.xlu0 %v819_v55, %s1713_s28  ;;  %v712_v22 = vshrl.u32 %v1862_v15, 16  ;;  %v715_v23 = vshll.u32 %v1862_v15, 16  ;;  %v499_v26 = vmax.f32 %v483_v20, 0.0  ;;  %v632_v47 = vshll.u32 %v1834_v45, 16 }
  0x25   : > { %v720_v27 = vshrl.u32 %v1878_v21, 16  ;;  %v723_v28 = vshll.u32 %v1878_v21, 16  ;;  %v1579_v49 = vunpack.c.h.bf16 %v1605_v35  ;;  %v645_v53 = vshrl.u32 %v1843_v52, 16 }
  0x26   : > { %v714_v29 = vrot.slane %v712_v22, 3  ;;  %v717_v30 = vrot.slane %v715_v23, 4  ;;  %v1886_v31 = vpack.c.bf16 %v499_v26, %v498_v24  ;;  %v554_v54 = vmul.f32 %v1578_v42, %v1793_v4 }
  0x27   : > { %v722_v33 = vrot.slane %v720_v27, 3  ;;  %v725_v34 = vrot.slane %v723_v28, 4  ;;  %v648_v56 = vshll.u32 %v1843_v52, 16  ;;  %v555_v57 = vmul.f32 %v1579_v49, %v1793_v4 }
  0x28   : > { %827 = vrot.lane.b32.xlu1 %v818_v19, %s1713_s28  ;;  %849 = vrot.lane.b32.xlu0 %v775_v25, %s1715_s18  ;;  %v718_v36 = vor.u32 %v717_v30, %v714_v29  ;;  %v728_v37 = vshrl.u32 %v1886_v31, 16  ;;  %v731_v38 = vshll.u32 %v1886_v31, 16  ;;  %v570_v59 = vadd.f32 %v1812_v13, %v554_v54  ;;  %v1601_v30 = vld [vmem:[%s1803_s14 + $0x30] sm:$0xff]  }
  0x29   : > { %v726_v39 = vor.u32 %v725_v34, %v722_v33  ;;  %v889_v60 = vrot.slane %v1836_v48, 4  ;;  %v631_v61 = vrot.slane %v629_v46, 3  ;;  %v634_v62 = vrot.slane %v632_v47, 4 }
  0x2a   : > { %v730_v40 = vrot.slane %v728_v37, 3  ;;  %v733_v41 = vrot.slane %v731_v38, 4  ;;  %v776_v50 = vsel %vm1866_vm2, 0, %v718_v36  ;;  %v571_v63 = vadd.f32 %v1812_v13, %v555_v57  ;;  %v1600_v36 = vld [vmem:[%s1803_s14 + $0x28] sm:$0xff]  }
  0x2b   : > { %v777_v43 = vsel %vm1866_vm2, 0, %v726_v39  ;;  %v647_v6 = vrot.slane %v645_v53, 3  ;;  %v586_v7 = vmax.f32 %v570_v59, 0.0  ;;  %v1590_v8 = vunpack.c.l.bf16 %v1608_v58 }
  0x2c   : > { %831 = vrot.lane.b32.xlu1 %v820_v32, %s1713_s28  ;;  %853 = vrot.lane.b32.xlu0 %v777_v43, %s1715_s18  ;;  %v734_v51 = vor.u32 %v733_v41, %v730_v40  ;;  %v650_v9 = vrot.slane %v648_v56, 4  ;;  %v637_v10 = vshrl.u32 %v1832_v44, 16  ;;  %v640_v11 = vshll.u32 %v1832_v44, 16 }
  0x2d   : > { %v587_v48 = vmax.f32 %v571_v63, 0.0  ;;  %v1591_v12 = vunpack.c.h.bf16 %v1608_v58  ;;  %v560_v14 = vmul.f32 %v1590_v8, %v1793_v4  ;;  %v1550_v17 = vunpack.c.l.bf16 %v1599_v0 }
  0x2e   : > { %v778_v5 = vsel %vm1866_vm2, 0, %v734_v51  ;;  %v891_v18 = vrot.slane %v1878_v21, 4  ;;  %v635_v20 = vor.u32 %v634_v62, %v631_v61  ;;  %v1551_v25 = vunpack.c.h.bf16 %v1599_v0  ;;  %v1682_v61 = vld [vmem:[%s2286_s5] sm:$0xff]  }
  0x2f   : > { %v1925_v22 = vpack.c.bf16 %v587_v48, %v586_v7  ;;  %v561_v23 = vmul.f32 %v1591_v12, %v1793_v4  ;;  %v576_v24 = vadd.f32 %v1812_v13, %v560_v14  ;;  %v461_v26 = vmul.f32 %v1550_v17, %v1793_v4  ;;  %1619 = vmatprep.subr.bf16.mxu0 %v1682_v61 }
  0x30   : > { %851 = vrot.lane.b32.xlu1 %v776_v50, %s1715_s18  ;;  %877 = vrot.lane.b32.xlu0 %v1878_v21, %s1714_s17  ;;  %v651_v27 = vor.u32 %v650_v9, %v647_v6  ;;  %v639_v28 = vrot.slane %v637_v10, 3  ;;  %v642_v29 = vrot.slane %v640_v11, 4  ;;  %v890_v21 = vrot.slane %v1862_v15, 4 }
  0x31   : > { %v577_v33 = vadd.f32 %v1812_v13, %v561_v23  ;;  %v592_v34 = vmax.f32 %v576_v24, 0.0  ;;  %v462_v35 = vmul.f32 %v1551_v25, %v1793_v4  ;;  %v1940_v37 = vsel %vm1866_vm2, 0, %v635_v20  ;;  %1637 = vmatprep.subr.bf16.mxu1 %v1682_v61  ;;  %1620 = vmatpush3.bf16.msra.mxu0 %v1682_v61  ;;  %v1606_v24 = vld [vmem:[%s1798_s11 + $0x20] sm:$0xff]  }
  0x32   : > { %v892_v38 = vrot.slane %v1886_v31, 4  ;;  %v653_v39 = vshrl.u32 %v1925_v22, 16  ;;  %v656_v15 = vshll.u32 %v1925_v22, 16  ;;  %v484_v41 = vadd.f32 %v1812_v13, %v461_v26  ;;  %1642 = vmatpush3.bf16.msra.mxu1 %v1682_v61  ;;  %v1607_v26 = vld [vmem:[%s1798_s11 + $0x28] sm:$0xff]   ;;  %v1686_v61 = vld [vmem:[%s2286_s5 + $0x20] ss:$0 sps:$4 sm:$0xff]  }
  0x33   : > { %v593_v40 = vmax.f32 %v577_v33, 0.0  ;;  %v485_v42 = vadd.f32 %v1812_v13, %v462_v35  ;;  %v1558_v43 = vunpack.c.l.bf16 %v1601_v30  ;;  %v1950_v46 = vsel %vm1866_vm2, 0, %v651_v27 }
  0x34   : > { %855 = vrot.lane.b32.xlu1 %v778_v5, %s1715_s18  ;;  %897 = vrot.lane.b32.xlu0 %v889_v60, %s1716_s19  ;;  %v643_v47 = vor.u32 %v642_v29, %v639_v28  ;;  %v1559_v49 = vunpack.c.h.bf16 %v1601_v30  ;;  %v1554_v50 = vunpack.c.l.bf16 %v1600_v36  ;;  %v500_v53 = vmax.f32 %v484_v41, 0.0 }
  0x35   : > { %v1953_v51 = vpack.c.bf16 %v593_v40, %v592_v34  ;;  %v501_v54 = vmax.f32 %v485_v42, 0.0  ;;  %v465_v56 = vmul.f32 %v1558_v43, %v1793_v4  ;;  %v655_v57 = vrot.slane %v653_v39, 3  ;;  %v1609_v43 = vld [vmem:[%s1798_s11 + $0x38] sm:$0xff]   ;;  %s1719_s11 = smov 64  }
  0x36   : > { %v466_v58 = vmul.f32 %v1559_v49, %v1793_v4  ;;  %v1555_v59 = vunpack.c.h.bf16 %v1600_v36  ;;  %v463_v60 = vmul.f32 %v1554_v50, %v1793_v4  ;;  %v658_v62 = vrot.slane %v656_v15, 4  ;;  %v1684_v36 = vld [vmem:[%s2286_s5 + $0x10] sm:$0xff]  }
  0x37   : > { %v1964_v63 = vpack.c.bf16 %v501_v54, %v500_v53  ;;  %v488_v0 = vadd.f32 %v1812_v13, %v465_v56  ;;  %v1981_v20 = vsel %vm1866_vm2, 0, %v643_v47  ;;  %v1583_v33 = vunpack.c.h.bf16 %v1606_v24  ;;  %v1685_v47 = vld [vmem:[%s2286_s5 + $0x18] sm:$0xff]  }
  0x38   : > { %879 = vrot.lane.b32.xlu1 %v1886_v31, %s1714_s17  ;;  %901 = vrot.lane.b32.xlu0 %v891_v18, %s1716_s19  ;;  %v1602_v31 = vld [vmem:[%s1803_s14 + $0x38] sm:$0xff]   ;;  %v489_v6 = vadd.f32 %v1812_v13, %v466_v58  ;;  %v464_v7 = vmul.f32 %v1555_v59, %v1793_v4  ;;  %v486_v8 = vadd.f32 %v1812_v13, %v463_v60  ;;  %v1683_v18 = vld [vmem:[%s2286_s5 + $0x8] sm:$0xff]   ;;  %v1586_v39 = vunpack.c.l.bf16 %v1607_v26 }
  0x39   : > { %v1562_v5 = vunpack.c.l.bf16 %v1602_v31  ;;  %v1563_v9 = vunpack.c.h.bf16 %v1602_v31  ;;  %v504_v10 = vmax.f32 %v488_v0, 0.0  ;;  %v659_v23 = vor.u32 %v658_v62, %v655_v57  ;;  %1621 = vmatprep.subr.bf16.mxu0 %v1683_v18  ;;  %1638 = vmatprep.subr.bf16.mxu1 %v1683_v18 }
  0x3a   : > { %v505_v48 = vmax.f32 %v489_v6, 0.0  ;;  %v487_v12 = vadd.f32 %v1812_v13, %v464_v7  ;;  %v502_v14 = vmax.f32 %v486_v8, 0.0  ;;  %1622 = vmatpush3.bf16.msra.mxu0 %v1683_v18  ;;  %1643 = vmatpush3.bf16.msra.mxu1 %v1683_v18  ;;  %v1587_v15 = vunpack.c.h.bf16 %v1607_v26 }
  0x3b   : > { %v467_v11 = vmul.f32 %v1562_v5, %v1793_v4  ;;  %v468_v17 = vmul.f32 %v1563_v9, %v1793_v4  ;;  %1623 = vmatprep.subr.bf16.mxu0 %v1684_v36  ;;  %1639 = vmatprep.subr.bf16.mxu1 %v1684_v36  ;;  %v557_v42 = vmul.f32 %v1583_v33, %v1793_v4  ;;  %v1594_v31 = vunpack.c.l.bf16 %v1609_v43 }
  0x3c   : > { %899 = vrot.lane.b32.xlu1 %v890_v21, %s1716_s19  ;;  %921 = vrot.lane.b32.xlu0 %v1940_v37, %s1717_s22  ;;  %v1986_v27 = vpack.c.bf16 %v505_v48, %v504_v10  ;;  %v503_v28 = vmax.f32 %v487_v12, 0.0  ;;  %v1582_v21 = vunpack.c.l.bf16 %v1606_v24  ;;  %v558_v49 = vmul.f32 %v1586_v39, %v1793_v4 }
  0x3d   : > { %v490_v25 = vadd.f32 %v1812_v13, %v467_v11  ;;  %v491_v29 = vadd.f32 %v1812_v13, %v468_v17  ;;  %v559_v50 = vmul.f32 %v1587_v15, %v1793_v4  ;;  %v573_v54 = vadd.f32 %v1812_v13, %v557_v42 }
  0x3e   : > { %v1991_v34 = vpack.c.bf16 %v503_v28, %v502_v14  ;;  %1624 = vmatpush3.bf16.msra.mxu0 %v1684_v36  ;;  %1644 = vmatpush3.bf16.msra.mxu1 %v1684_v36  ;;  %v556_v41 = vmul.f32 %v1582_v21, %v1793_v4  ;;  %v1595_v56 = vunpack.c.h.bf16 %v1609_v43  ;;  %v574_v57 = vadd.f32 %v1812_v13, %v558_v49 }
  0x3f   : > { %v506_v30 = vmax.f32 %v490_v25, 0.0  ;;  %v507_v35 = vmax.f32 %v491_v29, 0.0  ;;  %1625 = vmatprep.subr.bf16.mxu0 %v1685_v47  ;;  %1640 = vmatprep.subr.bf16.mxu1 %v1685_v47  ;;  %v575_v58 = vadd.f32 %v1812_v13, %v559_v50  ;;  %v562_v59 = vmul.f32 %v1594_v31, %v1793_v4 }
  0x40   : > { %903 = vrot.lane.b32.xlu1 %v892_v38, %s1716_s19  ;;  %925 = vrot.lane.b32.xlu0 %v1950_v46, %s1717_s22  ;;  %v2000_v38 = vsel %vm1866_vm2, 0, %v659_v23  ;;  %v572_v53 = vadd.f32 %v1812_v13, %v556_v41  ;;  %v563_v60 = vmul.f32 %v1595_v56, %v1793_v4  ;;  %v590_v5 = vmax.f32 %v574_v57, 0.0 }
  0x41   : > { %v2002_v40 = vpack.c.bf16 %v507_v35, %v506_v30  ;;  %v578_v62 = vadd.f32 %v1812_v13, %v562_v59  ;;  %v591_v6 = vmax.f32 %v575_v58, 0.0  ;;  %v1186_v8 = vsel %vm1184_vm3, %v1686_v61, 0 }
  0x42   : > { %1626 = vmatpush3.bf16.msra.mxu0 %v1685_v47  ;;  %1645 = vmatpush3.bf16.msra.mxu1 %v1685_v47  ;;  %v588_v0 = vmax.f32 %v572_v53, 0.0  ;;  %v736_v11 = vshrl.u32 %v1964_v63, 16  ;;  %v739_v48 = vshll.u32 %v1964_v63, 16  ;;  %v752_v14 = vshrl.u32 %v1986_v27, 16 }
  0x43   : > { %v594_v7 = vmax.f32 %v578_v62, 0.0  ;;  %1647 = vmatprep.subr.msk.bf16.mxu0 %vm1184_vm3, %v1686_v61  ;;  %1648 = vmatprep.subr.msk.bf16.mxu1 %vm1184_vm3, %v1686_v61  ;;  %v2046_v10 = vpack.c.bf16 %v591_v6, %v590_v5  ;;  %v744_v17 = vshrl.u32 %v1991_v34, 16  ;;  %v747_v18 = vshll.u32 %v1991_v34, 16 }
  0x44   : > { %923 = vrot.lane.b32.xlu1 %v1981_v20, %s1717_s22  ;;  %938 = vrot.lane.b32.xlu0 %v1834_v45, %s1718_s9  ;;  %v589_v45 = vmax.f32 %v573_v54, 0.0  ;;  %v741_v12 = vrot.slane %v739_v48, 4  ;;  %v754_v23 = vrot.slane %v752_v14, 3  ;;  %v760_v29 = vshrl.u32 %v2002_v40, 16 }
  0x45   : > { %v746_v26 = vrot.slane %v744_v17, 3  ;;  %v749_v28 = vrot.slane %v747_v18, 4  ;;  %v763_v30 = vshll.u32 %v2002_v40, 16  ;;  %v824_v35 = vrot.slane %v1953_v51, 4 }
  0x46   : > { %1628 = vmatpush3.bf16.msra.mxu0 %v1186_v8  ;;  %1646 = vmatpush3.bf16.msra.mxu1 %v1186_v8  ;;  %v2039_v9 = vpack.c.bf16 %v589_v45, %v588_v0  ;;  %v762_v39 = vrot.slane %v760_v29, 3  ;;  %v893_v31 = vrot.slane %v1964_v63, 4  ;;  %v677_v56 = vshrl.u32 %v1953_v51, 16 }
  0x47   : > { %v750_v36 = vor.u32 %v749_v28, %v746_v26  ;;  %v765_v15 = vrot.slane %v763_v30, 4  ;;  %v680_v57 = vshll.u32 %v1953_v51, 16  ;;  %v895_v58 = vrot.slane %v1986_v27, 4 }
  0x48   : > { %927 = vrot.lane.b32.xlu1 %v2000_v38, %s1717_s22  ;;  %942 = vrot.lane.b32.xlu0 %v1843_v52, %s1718_s9  ;;  %v755_v52 = vshll.u32 %v1986_v27, 16  ;;  %v822_v25 = vrot.slane %v2039_v9, 4  ;;  %v661_v49 = vshrl.u32 %v2039_v9, 16  ;;  %v664_v50 = vshll.u32 %v2039_v9, 16 }
  0x49   : > { %v780_v42 = vsel %vm1866_vm2, 0, %v750_v36  ;;  %v766_v43 = vor.u32 %v765_v15, %v762_v39  ;;  %v669_v59 = vshrl.u32 %v2046_v10, 16  ;;  %v679_v62 = vrot.slane %v677_v56, 3 }
  0x4a   : > { %v757_v24 = vrot.slane %v755_v52, 4  ;;  %v663_v53 = vrot.slane %v661_v49, 3  ;;  %v666_v54 = vrot.slane %v664_v50, 4  ;;  %v894_v0 = vrot.slane %v1991_v34, 4 }
  0x4b   : > { %v782_v47 = vsel %vm1866_vm2, 0, %v766_v43  ;;  %v671_v45 = vrot.slane %v669_v59, 3 }
  0x4c   : > { %940 = vrot.lane.b32.xlu1 %v1832_v44, %s1718_s9  ;;  %955 = vrot.lane.b32.xlu0 %v818_v19, %s1719_s11  ;;  %v579_v19 = vadd.f32 %v1812_v13, %v563_v60  ;;  %v821_v44 = vrot.slane %v1925_v22, 4  ;;  %v758_v33 = vor.u32 %v757_v24, %v754_v23  ;;  %v672_v60 = vshll.u32 %v2046_v10, 16 }
  0x4d   : > { %v667_v61 = vor.u32 %v666_v54, %v663_v53 }
  0x4e   : > { %v595_v4 = vmax.f32 %v579_v19, 0.0  ;;  %v781_v41 = vsel %vm1866_vm2, 0, %v758_v33  ;;  %v674_v19 = vrot.slane %v672_v60, 4 }
  0x4f   : > { %v2110_v6 = vsel %vm1866_vm2, 0, %v667_v61 }
  0x50   : > { %944 = vrot.lane.b32.xlu1 %v1925_v22, %s1718_s9  ;;  %809 = vrot.lane.b32.xlu0 %v1925_v22, %s1712_s27  ;;  %v2041_v13 = vpack.c.bf16 %v595_v4, %v594_v7  ;;  %v896_v4 = vrot.slane %v2002_v40, 4 }
  0x52   : > { %v784_v5 = vshrl.u32 %v2041_v13, 16 }
  0x54   : > { %957 = vrot.lane.b32.xlu1 %v819_v55, %s1719_s11  ;;  %959 = vrot.lane.b32.xlu0 %v820_v32, %s1719_s11  ;;  %v738_v55 = vrot.slane %v736_v11, 3  ;;  %v823_v32 = vrot.slane %v2046_v10, 4  ;;  %v786_v8 = vrot.slane %v784_v5, 3 }
  0x56   : > { %v742_v22 = vor.u32 %v741_v12, %v738_v55 }
  0x58   : > { %811 = vrot.lane.b32.xlu1 %v2039_v9, %s1712_s27  ;;  %813 = vrot.lane.b32.xlu0 %v2046_v10, %s1712_s27  ;;  %v779_v21 = vsel %vm1866_vm2, 0, %v742_v22 }
  0x5c   : > { %961 = vrot.lane.b32.xlu1 %v821_v44, %s1719_s11  ;;  %833 = vrot.lane.b32.xlu0 %v821_v44, %s1713_s28 }
  0x60   : > { %815 = vrot.lane.b32.xlu1 %v1953_v51, %s1712_s27  ;;  %837 = vrot.lane.b32.xlu0 %v823_v32, %s1713_s28  ;;  %s1531_s27 = sshll.u32 %s2296_s24, 5 }
  0x61   : > { %s2233_s16 = scalar_lea.vmem %s2287_s6, %s1531_s27 }
  0x64   : > { %835 = vrot.lane.b32.xlu1 %v822_v25, %s1713_s28  ;;  %857 = vrot.lane.b32.xlu0 %v779_v21, %s1715_s18 }
  0x68   : > { %839 = vrot.lane.b32.xlu1 %v824_v35, %s1713_s28  ;;  %861 = vrot.lane.b32.xlu0 %v781_v41, %s1715_s18 }
  0x6c   : > { %859 = vrot.lane.b32.xlu1 %v780_v42, %s1715_s18  ;;  %881 = vrot.lane.b32.xlu0 %v1964_v63, %s1714_s17  ;;  %v682_v63 = vrot.slane %v680_v57, 4  ;;  %v695_v42 = vsel %vm1866_vm2, 0, %v627_v3 }
  0x6e   : > { %v683_v7 = vor.u32 %v682_v63, %v679_v62 }
  0x70   : > { %863 = vrot.lane.b32.xlu1 %v782_v47, %s1715_s18  ;;  %885 = vrot.lane.b32.xlu0 %v1986_v27, %s1714_s17  ;;  %v787_v27 = vshll.u32 %v2041_v13, 16  ;;  %v2118_v48 = vsel %vm1866_vm2, 0, %v683_v7 }
  0x72   : > { %v789_v11 = vrot.slane %v787_v27, 4 }
  0x74   : > { %883 = vrot.lane.b32.xlu1 %v1991_v34, %s1714_s17  ;;  %905 = vrot.lane.b32.xlu0 %v893_v31, %s1716_s19  ;;  %v675_v34 = vor.u32 %v674_v19, %v671_v45 }
  0x76   : > { %v2125_v44 = vsel %vm1866_vm2, 0, %v675_v34 }
  0x78   : > { %887 = vrot.lane.b32.xlu1 %v2002_v40, %s1714_s17  ;;  %909 = vrot.lane.b32.xlu0 %v895_v58, %s1716_s19  ;;  %v790_v40 = vor.u32 %v789_v11, %v786_v8  ;;  %s1510_s17 = sshll.u32 %s2296_s24, 1 }
  0x79   : > { %v802_v55 = vpop.permute.xlu0 %801  ;;  %s412_s20 = scalar_lea.vmem %s2288_s7, %s1510_s17 }
  0x7a   : > { %v792_v12 = vsel %vm1866_vm2, 0, %v790_v40  ;;  %v974_v49 = vsel %vm971_vm4, %v695_v42, %v802_v55 }
  0x7c   : > { %907 = vrot.lane.b32.xlu1 %v894_v0, %s1716_s19  ;;  %929 = vrot.lane.b32.xlu0 %v2110_v6, %s1717_s22 }
  0x7d   : > { %v826_v14 = vpop.permute.xlu0 %825 }
  0x7e   : > { %v998_v53 = vsel %vm996_vm5, %v974_v49, %v826_v14 }
  0x80   : > { %911 = vrot.lane.b32.xlu1 %v896_v4, %s1716_s19  ;;  %933 = vrot.lane.b32.xlu0 %v2118_v48, %s1717_s22 }
  0x84   : > { %931 = vrot.lane.b32.xlu1 %v2125_v44, %s1717_s22  ;;  %946 = vrot.lane.b32.xlu0 %v2039_v9, %s1718_s9 }
  0x88   : > { %935 = vrot.lane.b32.xlu1 %v792_v12, %s1717_s22  ;;  %950 = vrot.lane.b32.xlu0 %v1953_v51, %s1718_s9  ;;  %v954_v51 = vrot.slane %v2041_v13, 4 }
  0x8c   : > { %948 = vrot.lane.b32.xlu1 %v2046_v10, %s1718_s9  ;;  %963 = vrot.lane.b32.xlu0 %v822_v25, %s1719_s11 }
  0x8e   : > { %v806_v52 = vpop.permute.xlu1 %805  ;;  %v804_v17 = vpop.permute.xlu0 %803 }
  0x8f   : > { %v977_v50 = vsel %vm971_vm4, %v1940_v37, %v804_v17  ;;  %v980_v27 = vsel %vm971_vm4, %v1981_v20, %v806_v52 }
  0x90   : > { %952 = vrot.lane.b32.xlu1 %v2041_v13, %s1718_s9  ;;  %967 = vrot.lane.b32.xlu0 %v824_v35, %s1719_s11 }
  0x92   : > { %v808_v18 = vpop.permute.xlu1 %807  ;;  %v874_v22 = vpop.permute.xlu0 %873 }
  0x93   : > { %v983_v7 = vsel %vm971_vm4, %v1950_v46, %v808_v18 }
  0x94   : > { %965 = vrot.lane.b32.xlu1 %v823_v32, %s1719_s11 }
  0x96   : > { %v876_v23 = vpop.permute.xlu1 %875  ;;  %v830_v24 = vpop.permute.xlu0 %829 }
  0x97   : > { %v1002_v34 = vsel %vm996_vm5, %v980_v27, %v830_v24 }
  0x98   : > { %969 = vrot.lane.b32.xlu1 %v954_v51, %s1719_s11 }
  0x9a   : > { %v828_v9 = vpop.permute.xlu1 %827  ;;  %v850_v25 = vpop.permute.xlu0 %849 }
  0x9b   : > { %v1000_v54 = vsel %vm996_vm5, %v977_v50, %v828_v9  ;;  %v1015_v1 = vsel %vm1013_vm6, %v998_v53, %v850_v25 }
  0x9c   : > { %v1032_v16 = vsel %vm1030_vm7, %v1015_v1, %v874_v22 }
  0x9e   : > { %v832_v26 = vpop.permute.xlu1 %831  ;;  %v854_v28 = vpop.permute.xlu0 %853 }
  0x9f   : > { %v1004_v8 = vsel %vm996_vm5, %v983_v7, %v832_v26  ;;  %v1019_v11 = vsel %vm1013_vm6, %v1002_v34, %v854_v28 }
  0xa2   : > { %v852_v29 = vpop.permute.xlu1 %851  ;;  %v878_v30 = vpop.permute.xlu0 %877 }
  0xa3   : > { %v1017_v2 = vsel %vm1013_vm6, %v1000_v54, %v852_v29  ;;  %v1036_v12 = vsel %vm1030_vm7, %v1019_v11, %v878_v30 }
  0xa4   : > { %v1034_v57 = vsel %vm1030_vm7, %v1017_v2, %v876_v23 }
  0xa6   : > { %v856_v21 = vpop.permute.xlu1 %855  ;;  %v898_v33 = vpop.permute.xlu0 %897 }
  0xa7   : > { %v1049_v58 = vsel %vm1047_vm8, %v1032_v16, %v898_v33  ;;  %v1021_v40 = vsel %vm1013_vm6, %v1004_v8, %v856_v21 }
  0xaa   : > { %v880_v35 = vpop.permute.xlu1 %879  ;;  %v902_v36 = vpop.permute.xlu0 %901 }
  0xab   : > { %v1038_v14 = vsel %vm1030_vm7, %v1021_v40, %v880_v35  ;;  %v1053_v52 = vsel %vm1047_vm8, %v1036_v12, %v902_v36 }
  0xae   : > { %v900_v39 = vpop.permute.xlu1 %899  ;;  %v922_v15 = vpop.permute.xlu0 %921 }
  0xaf   : > { %v1051_v59 = vsel %vm1047_vm8, %v1034_v57, %v900_v39  ;;  %v1066_v60 = vsel %vm1064_vm9, %v1049_v58, %v922_v15 }
  0xb2   : > { %v904_v10 = vpop.permute.xlu1 %903  ;;  %v926_v32 = vpop.permute.xlu0 %925 }
  0xb3   : > { %v1055_v46 = vsel %vm1047_vm8, %v1038_v14, %v904_v10  ;;  %v1070_v17 = vsel %vm1064_vm9, %v1053_v52, %v926_v32 }
  0xb6   : > { %v924_v41 = vpop.permute.xlu1 %923  ;;  %v939_v13 = vpop.permute.xlu0 %938 }
  0xb7   : > { %v1068_v61 = vsel %vm1064_vm9, %v1051_v59, %v924_v41  ;;  %v1083_v62 = vsel %vm1081_vm10, %v1066_v60, %v939_v13 }
  0xba   : > { %v928_v43 = vpop.permute.xlu1 %927  ;;  %v943_v47 = vpop.permute.xlu0 %942 }
  0xbb   : > { %v1072_v18 = vsel %vm1064_vm9, %v1055_v46, %v928_v43  ;;  %v1087_v22 = vsel %vm1081_vm10, %v1070_v17, %v943_v47 }
  0xbe   : > { %v941_v31 = vpop.permute.xlu1 %940  ;;  %v956_v56 = vpop.permute.xlu0 %955 }
  0xbf   : > { %v1085_v63 = vsel %vm1081_vm10, %v1068_v61, %v941_v31  ;;  %v1100_v45 = vsel %vm1098_vm11, %v1083_v62, %v956_v56 }
  0xc2   : > { %v945_v3 = vpop.permute.xlu1 %944  ;;  %v810_v37 = vpop.permute.xlu0 %809 }
  0xc3   : > { %v1089_v51 = vsel %vm1081_vm10, %v1072_v18, %v945_v3  ;;  %v986_v2 = vsel %vm971_vm4, %v2000_v38, %v810_v37 }
  0xc6   : > { %v958_v0 = vpop.permute.xlu1 %957  ;;  %v960_v5 = vpop.permute.xlu0 %959 }
  0xc7   : > { %v1102_v19 = vsel %vm1098_vm11, %v1085_v63, %v958_v0  ;;  %v1104_v24 = vsel %vm1098_vm11, %v1087_v22, %v960_v5 }
  0xc8   : > { %v1513_v4 = vcombine.low %v1100_v45, %v1102_v19 }
  0xca   : > { %v812_v55 = vpop.permute.xlu1 %811  ;;  %1629 = vmatprep.mubr.msk.bf16.mxu0 %vm1171_vm12, %v1513_v4  ;;  %v814_v20 = vpop.permute.xlu0 %813 }
  0xcb   : > { %v989_v3 = vsel %vm971_vm4, %v2110_v6, %v812_v55  ;;  %v992_v58 = vsel %vm971_vm4, %v2125_v44, %v814_v20 }
  0xce   : > { %v962_v23 = vpop.permute.xlu1 %961  ;;  %v834_v25 = vpop.permute.xlu0 %833 }
  0xcf   : > { %v1106_v9 = vsel %vm1098_vm11, %v1089_v51, %v962_v23  ;;  %v1006_v16 = vsel %vm996_vm5, %v986_v2, %v834_v25 }
  0xd0   : > { %v1514_v26 = vcombine.low %v1104_v24, %v1106_v9 }
  0xd2   : > { %v816_v28 = vpop.permute.xlu1 %815  ;;  %1630 = vmatmul.mubr.msk.bf16.vlgmr.msra.gmra.mrb[0].mxu0 %vm1171_vm12, %v1514_v26  ;;  %v838_v29 = vpop.permute.xlu0 %837 }
  0xd3   : > { %v995_v6 = vsel %vm971_vm4, %v2118_v48, %v816_v28  ;;  %v1010_v45 = vsel %vm996_vm5, %v992_v58, %v838_v29 }
  0xd6   : > { %v836_v30 = vpop.permute.xlu1 %835  ;;  %v858_v21 = vpop.permute.xlu0 %857 }
  0xd7   : > { %v1008_v57 = vsel %vm996_vm5, %v989_v3, %v836_v30  ;;  %v1023_v59 = vsel %vm1013_vm6, %v1006_v16, %v858_v21 }
  0xda   : > { %v840_v33 = vpop.permute.xlu1 %839  ;;  %v862_v35 = vpop.permute.xlu0 %861 }
  0xdb   : > { %v1012_v44 = vsel %vm996_vm5, %v995_v6, %v840_v33  ;;  %v1027_v27 = vsel %vm1013_vm6, %v1010_v45, %v862_v35 }
  0xde   : > { %v860_v36 = vpop.permute.xlu1 %859  ;;  %v882_v39 = vpop.permute.xlu0 %881 }
  0xdf   : > { %v1025_v60 = vsel %vm1013_vm6, %v1008_v57, %v860_v36  ;;  %v1040_v63 = vsel %vm1030_vm7, %v1023_v59, %v882_v39 }
  0xe2   : > { %v864_v15 = vpop.permute.xlu1 %863  ;;  %v886_v10 = vpop.permute.xlu0 %885 }
  0xe3   : > { %v1029_v7 = vsel %vm1013_vm6, %v1012_v44, %v864_v15  ;;  %v1044_v8 = vsel %vm1030_vm7, %v1027_v27, %v886_v10 }
  0xe6   : > { %v884_v32 = vpop.permute.xlu1 %883  ;;  %v906_v41 = vpop.permute.xlu0 %905 }
  0xe7   : > { %v1042_v38 = vsel %vm1030_vm7, %v1025_v60, %v884_v32  ;;  %v1057_v37 = vsel %vm1047_vm8, %v1040_v63, %v906_v41 }
  0xea   : > { %v888_v13 = vpop.permute.xlu1 %887  ;;  %v910_v42 = vpop.permute.xlu0 %909 }
  0xeb   : > { %v1046_v11 = vsel %vm1030_vm7, %v1029_v7, %v888_v13  ;;  %v1061_v12 = vsel %vm1047_vm8, %v1044_v8, %v910_v42 }
  0xee   : > { %v908_v43 = vpop.permute.xlu1 %907  ;;  %v930_v47 = vpop.permute.xlu0 %929 }
  0xef   : > { %v1059_v0 = vsel %vm1047_vm8, %v1042_v38, %v908_v43  ;;  %v1074_v19 = vsel %vm1064_vm9, %v1057_v37, %v930_v47 }
  0xf2   : > { %v912_v49 = vpop.permute.xlu1 %911  ;;  %v934_v50 = vpop.permute.xlu0 %933 }
  0xf3   : > { %v1063_v14 = vsel %vm1047_vm8, %v1046_v11, %v912_v49  ;;  %v1078_v46 = vsel %vm1064_vm9, %v1061_v12, %v934_v50 }
  0xf6   : > { %v932_v31 = vpop.permute.xlu1 %931  ;;  %v947_v53 = vpop.permute.xlu0 %946 }
  0xf7   : > { %v1076_v5 = vsel %vm1064_vm9, %v1059_v0, %v932_v31  ;;  %v1091_v4 = vsel %vm1081_vm10, %v1074_v19, %v947_v53 }
  0xfa   : > { %v936_v54 = vpop.permute.xlu1 %935  ;;  %v951_v56 = vpop.permute.xlu0 %950 }
  0xfb   : > { %v1080_v17 = vsel %vm1064_vm9, %v1063_v14, %v936_v54  ;;  %v1095_v18 = vsel %vm1081_vm10, %v1078_v46, %v951_v56 }
  0xfe   : > { %v949_v1 = vpop.permute.xlu1 %948  ;;  %v964_v61 = vpop.permute.xlu0 %963 }
  0xff   : > { %v1093_v48 = vsel %vm1081_vm10, %v1076_v5, %v949_v1  ;;  %v1108_v40 = vsel %vm1098_vm11, %v1091_v4, %v964_v61 }
 0x102   : > { %v953_v62 = vpop.permute.xlu1 %952  ;;  %v968_v20 = vpop.permute.xlu0 %967 }
 0x103   : > { %v1097_v22 = vsel %vm1081_vm10, %v1080_v17, %v953_v62  ;;  %v1112_v23 = vsel %vm1098_vm11, %v1095_v18, %v968_v20 }
 0x106   : > { %v966_v34 = vpop.permute.xlu1 %965 }
 0x107   : > { %v1110_v55 = vsel %vm1098_vm11, %v1093_v48, %v966_v34 }
 0x108   : > { %v1515_v52 = vcombine.low %v1108_v40, %v1110_v55 }
 0x10a   : > { %v970_v51 = vpop.permute.xlu1 %969  ;;  %1633 = vmatprep.mubr.msk.bf16.mxu1 %vm1171_vm12, %v1515_v52 }
 0x10b   : > { %v1114_v24 = vsel %vm1098_vm11, %v1097_v22, %v970_v51 }
 0x10c   : > { %v1516_v9 = vcombine.low %v1112_v23, %v1114_v24 }
 0x10e   : > { %1634 = vmatmul.mubr.msk.bf16.vlgmr.msra.gmra.mrb[0].mxu1 %vm1171_vm12, %v1516_v9 }
 0x1a5   : > { %v1631_v25 = vpop.f32.mrb[0].mxu0 }
 0x1a6   : > { %v1255_v26 = vpack.c.bf16 %v1631_v25, %v1631_v25  ;;  %v1222_v28 = vpop.f32.mrb[1].mxu0  ;;  %v1293_v33 = vmul.f32 %v1631_v25, %v1631_v25  ;;  %v1273_v13 = vsel %vm971_vm4, %v1631_v25, 0.0 }
 0x1a7   : > { %v1253_v29 = vpack.c.bf16 %v1222_v28, %v1222_v28  ;;  %v1291_v30 = vmul.f32 %v1222_v28, %v1222_v28  ;;  %v1632_v21 = vpop.f32.mrb[2].mxu0  ;;  %v1270_v39 = vsel %vm971_vm4, %v1222_v28, 0.0 }
 0x1a8   : > { %1264 = vst.msk [vmem:[%s2233_s16 + $0x8] sm:$0xf] %vm1261_vm13, %v1255_v26  ;;  %v1256_v35 = vpack.c.bf16 %v1632_v21, %v1632_v21  ;;  %v1225_v36 = vpop.f32.mrb[3].mxu0  ;;  %v1294_v43 = vmul.f32 %v1632_v21, %v1632_v21  ;;  %v1302_v31 = vsel %vm971_vm4, %v1293_v33, 0.0  ;;  %v1275_v53 = vsel %vm971_vm4, %v1632_v21, 0.0 }
 0x1a9   : > { %1262 = vst.msk [vmem:[%s2233_s16] sm:$0xf] %vm1261_vm13, %v1253_v29  ;;  %v1254_v15 = vpack.c.bf16 %v1225_v36, %v1225_v36  ;;  %v1271_v10 = vsel %vm971_vm4, %v1225_v36, 0.0  ;;  %v1292_v32 = vmul.f32 %v1225_v36, %v1225_v36  ;;  %v1299_v42 = vsel %vm971_vm4, %v1291_v30, 0.0 }
 0x1aa   : > { %1265 = vst.msk [vmem:[%s2233_s16 + $0xc] sm:$0xf] %vm1261_vm13, %v1256_v35  ;;  %v1272_v41 = vadd.f32 %v1271_v10, %v1270_v39  ;;  %v1304_v1 = vsel %vm971_vm4, %v1294_v43, 0.0 }
 0x1ab   : > { %1263 = vst.msk [vmem:[%s2233_s16 + $0x4] sm:$0xf] %vm1261_vm13, %v1254_v15  ;;  %v1300_v47 = vsel %vm971_vm4, %v1292_v32, 0.0 }
 0x1ac   : > { %v1274_v49 = vadd.f32 %v1273_v13, %v1272_v41  ;;  %v1301_v50 = vadd.f32 %v1300_v47, %v1299_v42 }
 0x1ae   : > { %v1303_v54 = vadd.f32 %v1302_v31, %v1301_v50  ;;  %v1276_v56 = vadd.f32 %v1275_v53, %v1274_v49 }
 0x1b0   : > { %v1305_v2 = vadd.f32 %v1304_v1, %v1303_v54 }
 0x1e1   : > { %v1635_v3 = vpop.f32.mrb[0].mxu1 }
 0x1e2   : > { %v1259_v16 = vpack.c.bf16 %v1635_v3, %v1635_v3  ;;  %v1238_v57 = vpop.f32.mrb[1].mxu1  ;;  %v1297_v45 = vmul.f32 %v1635_v3, %v1635_v3  ;;  %v1281_v27 = vsel %vm971_vm4, %v1635_v3, 0.0 }
 0x1e3   : > { %v1257_v58 = vpack.c.bf16 %v1238_v57, %v1238_v57  ;;  %v1277_v59 = vsel %vm971_vm4, %v1238_v57, 0.0  ;;  %v1295_v60 = vmul.f32 %v1238_v57, %v1238_v57  ;;  %v1636_v61 = vpop.f32.mrb[2].mxu1 }
 0x1e4   : > { %1268 = vst.msk [vmem:[%s2233_s16 + $0x18] sm:$0xf] %vm1261_vm13, %v1259_v16  ;;  %v1278_v62 = vadd.f32 %v1277_v59, %v1276_v56  ;;  %v1260_v63 = vpack.c.bf16 %v1636_v61, %v1636_v61  ;;  %v1241_v38 = vpop.f32.mrb[3].mxu1  ;;  %v1298_v7 = vmul.f32 %v1636_v61, %v1636_v61  ;;  %v1283_v34 = vsel %vm971_vm4, %v1636_v61, 0.0 }
 0x1e5   : > { %1266 = vst.msk [vmem:[%s2233_s16 + $0x10] sm:$0xf] %vm1261_vm13, %v1257_v58  ;;  %v1306_v6 = vsel %vm971_vm4, %v1295_v60, 0.0  ;;  %v1258_v37 = vpack.c.bf16 %v1241_v38, %v1241_v38  ;;  %v1279_v0 = vsel %vm971_vm4, %v1241_v38, 0.0  ;;  %v1296_v5 = vmul.f32 %v1241_v38, %v1241_v38 }
 0x1e6   : > { %v1307_v44 = vadd.f32 %v1306_v6, %v1305_v2  ;;  %1269 = vst.msk [vmem:[%s2233_s16 + $0x1c] sm:$0xf] %vm1261_vm13, %v1260_v63  ;;  %v1280_v19 = vadd.f32 %v1279_v0, %v1278_v62  ;;  %v1310_v11 = vsel %vm971_vm4, %v1297_v45, 0.0  ;;  %v1312_v12 = vsel %vm971_vm4, %v1298_v7, 0.0 }
 0x1e7   : > { %1267 = vst.msk [vmem:[%s2233_s16 + $0x14] sm:$0xf] %vm1261_vm13, %v1258_v37  ;;  %v1308_v48 = vsel %vm971_vm4, %v1296_v5, 0.0 }
 0x1e8   : > { %v1282_v4 = vadd.f32 %v1281_v27, %v1280_v19  ;;  %v1309_v8 = vadd.f32 %v1308_v48, %v1307_v44 }
 0x1ea   : > { %v1284_v40 = vadd.f32 %v1283_v34, %v1282_v4  ;;  %v1311_v55 = vadd.f32 %v1310_v11, %v1309_v8 }
 0x1ec   : > { %v1285_v14 = vrot.slane %v1284_v40, 4  ;;  %v1313_v20 = vadd.f32 %v1312_v12, %v1311_v55 }
 0x1ee   : > { %v1286_v52 = vadd.f32 %v1285_v14, %v1284_v40  ;;  %v1314_v46 = vrot.slane %v1313_v20, 4 }
 0x1f0   : > { %v1287_v17 = vrot.slane %v1286_v52, 2  ;;  %v1315_v18 = vadd.f32 %v1314_v46, %v1313_v20 }
 0x1f2   : > { %v1288_v22 = vadd.f32 %v1287_v17, %v1286_v52  ;;  %v1316_v51 = vrot.slane %v1315_v18, 2 }
 0x1f4   : > { %v1289_v23 = vrot.slane %v1288_v22, 1  ;;  %v1317_v24 = vadd.f32 %v1316_v51, %v1315_v18 }
 0x1f6   : > { %v1318_v9 = vrot.slane %v1317_v24, 1  ;;  %v1290_v25 = vadd.f32 %v1289_v23, %v1288_v22 }
 0x1f8   : > { %v1319_v26 = vadd.f32 %v1318_v9, %v1317_v24 }
 0x1fa   : > { %v1321_v28 = vsel %vm692_vm0, %v1290_v25, %v1319_v26 }
 0x1fb   : > { %1323 = vst.msk [vmem:[%s412_s20] sm:$0x3] %vm1322_vm14, %v1321_v28 }
 0x1fc PF: > { %s18_s2 = sadd.s32 1, %s1709_s2   ;;  %s2291_s24 = smov %s1705_s25 }
 0x1fd   : > { %p15_p5 = scmp.ge.s32.totalorder %s18_s2, 4   ;;  %s2292_s25 = smov %s2294_s26 }
 0x1ff   :  { %17 = sbr.rel (!%p15_p5) target bundleno = 2 (0x2), region = 92 }

// kernel: double_conv_forward.3
= control target key start
LH: loop header
LB: loop body
LE: loop exit
PB: predicated region body
PF: predicated region fallthrough
CT: control target
= control target key end

     0   :  { %s3917_s24 = smov 0   ;;  %s3919_s25 = smov 0   ;;  %s5862_s0 = inlined_call_operand.vmem [shape: bf16[2,9,9,4], index: 0, kind: input, shape index: {}]   ;;  %s5863_s1 = inlined_call_operand.vmem [shape: bf16[2,9,9,4], index: 1, kind: input, shape index: {}]   ;;  %s5864_s2 = inlined_call_operand.vmem [shape: bf16[2,9,9,4], index: 2, kind: input, shape index: {}]   ;;  %s5865_s3 = inlined_call_operand.vmem [shape: bf16[2,9,9,4], index: 3, kind: input, shape index: {}]   ;;  %s5866_s4 = inlined_call_operand.vmem [shape: bf16[36,8], index: 4, kind: input, shape index: {}]   ;;  %s5867_s5 = inlined_call_operand.vmem [shape: bf16[2,8,16,8], index: 5, kind: output, shape index: {0}]   ;;  %s5868_s6 = inlined_call_operand.vmem [shape: bf16[2,8,16,8], index: 6, kind: output, shape index: {1}]   ;;  %s5869_s7 = inlined_call_operand.vmem [shape: f32[2,1,2,8], index: 7, kind: output, shape index: {2}]  }
   0x1   :  { %s3921_s26 = smov 0  }
   0x2 LB: > { %s30_s27 = sadd.s32 1, %s3863_s25  ;;  %p3311_p0 = scmp.ge.s32.totalorder %s3867_s26, 1  ;;  %s3867_s26 = sphi %s3921_s26, %s18_s26   ;;  %s3863_s25 = sphi %s3919_s25, %s6134_s25   ;;  %s3859_s24 = sphi %s3917_s24, %s6133_s24  }
   0x3   : > { %p32_p1 = scmp.ge.s32.totalorder %s30_s27, 2  ;;  %p290_p2 = scmp.lt.s32.totalorder %s3867_s26, 3 }
   0x5   : > { %s6136_s27 = smov (%p32_p1, %s30_s27), 0  ;;  %p291_p3 = pnand %p3311_p0, %p290_p2 }
   0x7   : > { %294 = sbr.rel (%p291_p3) target bundleno = 888 (0x378), region = 40 }
   0xe   : > { %p359_p4 = scmp.lt.s32.totalorder %s3859_s24, 1  ;;  %s3869_s12 = smov 4   ;;  %vm2563_vm0 = vcmask 1041408   ;;  %vm1001_vm1 = vcmask 31744   ;;  %vm1026_vm2 = vcmask 64512   ;;  %vm1043_vm3 = vcmask 97280  }
   0xf   : > { %s3870_s13 = smov 8   ;;  %s3871_s17 = smov 12   ;;  %vm1060_vm4 = vcmask 130048   ;;  %vm1077_vm5 = vcmask 162816   ;;  %vm1094_vm6 = vcmask 195584   ;;  %vm1111_vm7 = vcmask 228352  }
  0x10   : > { %s6138_s24 = smov (!%p359_p4, %s3859_s24), 1  ;;  %s3872_s21 = smov 16   ;;  %vm1128_vm8 = vcmask 261120   ;;  %vm1689_vm9 = vcmask 1043456   ;;  %vm2530_vm10 = vcmask 293888   ;;  %vm2792_vm11 = vcmask 60416  }
  0x11   : > { %s3938_s28 = smul.u32 72, %s6138_s24  ;;  %s3873_s22 = smov 20   ;;  %vm3059_vm12 = vcmask 1040384   ;;  %vm3061_vm13 = vcmask 58368  }
  0x12   : > { %s3874_s23 = smov 24   ;;  %s3876_s29 = smov 32  }
  0x13   : > { %s3944_s8 = scalar_lea.vmem %s5863_s1, %s3938_s28  ;;  %s3966_s11 = scalar_lea.vmem %s5862_s0, %s3938_s28 }
  0x14   : > { %v3947_v0 = vld [vmem:[%s3944_s8 + $0x10] sm:$0xf]  ;;  %v3950_v1 = vld [vmem:[%s3944_s8] sm:$0xf]  ;;  %v3957_v4 = vld [vmem:[%s3944_s8 + $0x18] sm:$0xf]  ;;  %s4040_s16 = scalar_lea.vmem %s5864_s2, %s3938_s28  ;;  %s4084_s20 = scalar_lea.vmem %s5865_s3, %s3938_s28 }
  0x15   : > { %v3347_v2 = vcombine.low %v3947_v0, %v3947_v0  ;;  %v3345_v3 = vcombine.low %v3950_v1, %v3950_v1  ;;  %v3960_v5 = vld [vmem:[%s3944_s8 + $0x8] sm:$0xf]  ;;  %v3348_v6 = vcombine.low %v3957_v4, %v3957_v4  ;;  %v3978_v9 = vld [vmem:[%s3944_s8 + $0x20] sm:$0xf]  ;;  %v3981_v10 = vld [vmem:[%s3944_s8 + $0x38] sm:$0xf] }
  0x16   : > { %v3346_v7 = vcombine.low %v3960_v5, %v3960_v5  ;;  %v3975_v8 = vld [vmem:[%s3944_s8 + $0x28] sm:$0xf]  ;;  %5945 = vst [vmem:[#allocation2_spill] sm:$0xff] %v3981_v10  ;;  %v432_v12 = vld [vmem:[%s3966_s11 + $0xc] sm:$0x1]  ;;  %v3349_v20 = vcombine.low %v3978_v9, %v3978_v9  ;;  %v3352_v29 = vcombine.low %v3981_v10, %v3981_v10  ;;  %s3875_s28 = smov 28  }
  0x17   : > { %525 = vrot.lane.b32.xlu1 %v3347_v2, %s3869_s12  ;;  %521 = vrot.lane.b32.xlu0 %v3345_v3, %s3869_s12  ;;  %v414_v11 = vld [vmem:[%s3966_s11 + $0x8] sm:$0xf]  ;;  %v413_v13 = vld [vmem:[%s3966_s11] sm:$0xf]  ;;  %v3350_v14 = vcombine.low %v3975_v8, %v3975_v8 }
  0x18   : > { %v3989_v15 = vld [vmem:[%s3944_s8 + $0x30] sm:$0xf]  ;;  %v3354_v16 = vcombine.low %v414_v11, %v432_v12  ;;  %v431_v17 = vld [vmem:[%s3966_s11 + $0x4] sm:$0x1]  ;;  %v416_v18 = vld [vmem:[%s3966_s11 + $0x18] sm:$0xf] }
  0x19   : > { %5946 = vst [vmem:[#allocation3_spill] sm:$0xff] %v3989_v15  ;;  %v434_v19 = vld [vmem:[%s3966_s11 + $0x1c] sm:$0x1]  ;;  %v3353_v21 = vcombine.low %v413_v13, %v431_v17  ;;  %v415_v23 = vld [vmem:[%s3966_s11 + $0x10] sm:$0xf]  ;;  %v3351_v38 = vcombine.low %v3989_v15, %v3989_v15 }
  0x1a   : > { %v3356_v22 = vcombine.low %v416_v18, %v434_v19  ;;  %v433_v24 = vld [vmem:[%s3966_s11 + $0x14] sm:$0x1]  ;;  %v587_v25 = vshll.u32 %v3354_v16, 16  ;;  %v418_v27 = vld [vmem:[%s3966_s11 + $0x28] sm:$0xf]  ;;  %v585_v30 = vshrl.u32 %v3354_v16, 16 }
  0x1b   : > { %527 = vrot.lane.b32.xlu1 %v3348_v6, %s3869_s12  ;;  %523 = vrot.lane.b32.xlu0 %v3346_v7, %s3869_s12  ;;  %v3355_v26 = vcombine.low %v415_v23, %v433_v24  ;;  %v436_v28 = vld [vmem:[%s3966_s11 + $0x2c] sm:$0x1]  ;;  %v580_v31 = vshll.u32 %v3353_v21, 16  ;;  %v417_v32 = vld [vmem:[%s3966_s11 + $0x20] sm:$0xf]  ;;  %v578_v39 = vshrl.u32 %v3353_v21, 16 }
  0x1c   : > { %v589_v33 = vrot.slane %v587_v25, 1  ;;  %v601_v34 = vshll.u32 %v3356_v22, 16  ;;  %v3358_v36 = vcombine.low %v418_v27, %v436_v28  ;;  %v435_v37 = vld [vmem:[%s3966_s11 + $0x24] sm:$0x1]  ;;  %v420_v42 = vld [vmem:[%s3966_s11 + $0x38] sm:$0xf] }
  0x1d   : > { %v594_v35 = vshll.u32 %v3355_v26, 16  ;;  %v582_v40 = vrot.slane %v580_v31, 1  ;;  %v3357_v41 = vcombine.low %v417_v32, %v435_v37  ;;  %v438_v43 = vld [vmem:[%s3966_s11 + $0x3c] sm:$0x1]  ;;  %v419_v44 = vld [vmem:[%s3966_s11 + $0x30] sm:$0xf] }
  0x1e   : > { %v599_v45 = vshrl.u32 %v3356_v22, 16  ;;  %v592_v46 = vshrl.u32 %v3355_v26, 16  ;;  %v437_v47 = vld [vmem:[%s3966_s11 + $0x34] sm:$0x1]  ;;  %v4014_v48 = vor.u32 %v589_v33, %v585_v30  ;;  %v603_v49 = vrot.slane %v601_v34, 1 }
  0x1f   : > { %531 = vrot.lane.b32.xlu1 %v3350_v14, %s3869_s12  ;;  %529 = vrot.lane.b32.xlu0 %v3349_v20, %s3869_s12  ;;  %v596_v50 = vrot.slane %v594_v35, 1  ;;  %v615_v51 = vshll.u32 %v3358_v36, 16  ;;  %v4018_v52 = vor.u32 %v582_v40, %v578_v39  ;;  %v608_v53 = vshll.u32 %v3357_v41, 16  ;;  %v442_v16 = vld [vmem:[%s4040_s16 + $0x8] sm:$0xf] }
  0x20   : > { %v3360_v54 = vcombine.low %v420_v42, %v438_v43  ;;  %v3359_v55 = vcombine.low %v419_v44, %v437_v47  ;;  %v4020_v56 = vor.u32 %v603_v49, %v599_v45  ;;  %v613_v57 = vshrl.u32 %v3358_v36, 16  ;;  %v441_v17 = vld [vmem:[%s4040_s16] sm:$0xf]  ;;  %v4057_v20 = vld [vmem:[%s4040_s16 + $0x18] sm:$0xf] }
  0x21   : > { %v617_v58 = vrot.slane %v615_v51, 1  ;;  %v606_v59 = vshrl.u32 %v3357_v41, 16  ;;  %v4026_v60 = vor.u32 %v596_v50, %v592_v46  ;;  %v610_v61 = vrot.slane %v608_v53, 1  ;;  %v4060_v21 = vld [vmem:[%s4040_s16 + $0x10] sm:$0xf] }
  0x22   : > { %v629_v62 = vshll.u32 %v3360_v54, 16  ;;  %v622_v63 = vshll.u32 %v3359_v55, 16  ;;  %v627_v3 = vshrl.u32 %v3360_v54, 16  ;;  %v620_v11 = vshrl.u32 %v3359_v55, 16  ;;  %v4069_v24 = vld [vmem:[%s4040_s16 + $0x28] sm:$0xf] }
  0x23   : > { %535 = vrot.lane.b32.xlu1 %v3352_v29, %s3869_s12  ;;  %533 = vrot.lane.b32.xlu0 %v3351_v38, %s3869_s12  ;;  %v4028_v2 = vor.u32 %v617_v58, %v613_v57  ;;  %v4034_v6 = vor.u32 %v610_v61, %v606_v59  ;;  %v3362_v18 = vcombine.low %v442_v16, %v442_v16  ;;  %v4072_v25 = vld [vmem:[%s4040_s16 + $0x20] sm:$0xf]  ;;  %v4087_v28 = vld [vmem:[%s4040_s16 + $0x38] sm:$0xf] }
  0x24   : > { %v631_v7 = vrot.slane %v629_v62, 1  ;;  %v624_v12 = vrot.slane %v622_v63, 1  ;;  %v3361_v19 = vcombine.low %v441_v17, %v441_v17  ;;  %v3364_v22 = vcombine.low %v4057_v20, %v4057_v20  ;;  %v4090_v29 = vld [vmem:[%s4040_s16 + $0x30] sm:$0xf]  ;;  %v3412_v30 = vld [vmem:[%s3944_s8 + $0x24] sm:$0x1] }
  0x25   : > { %v3363_v23 = vcombine.low %v4060_v21, %v4060_v21  ;;  %v3366_v26 = vcombine.low %v4069_v24, %v4069_v24  ;;  %v3365_v27 = vcombine.low %v4072_v25, %v4072_v25  ;;  %v3411_v31 = vld [vmem:[%s3944_s8 + $0x1c] sm:$0x1]  ;;  %v4095_v32 = vld [vmem:[%s4084_s20 + $0x8] sm:$0xf]  ;;  %v4098_v33 = vld [vmem:[%s3944_s8 + $0x20] sm:$0xf]  ;;  %v3368_v36 = vcombine.low %v4087_v28, %v4087_v28 }
  0x26   : > { %v4046_v13 = vor.u32 %v631_v7, %v627_v3  ;;  %v4048_v14 = vor.u32 %v624_v12, %v620_v11  ;;  %v4101_v34 = vld [vmem:[%s3944_s8 + $0x18] sm:$0xf]  ;;  %v3414_v35 = vld [vmem:[%s3944_s8 + $0x34] sm:$0x1]  ;;  %v3367_v37 = vcombine.low %v4090_v29, %v4090_v29  ;;  %v3413_v38 = vld [vmem:[%s3944_s8 + $0x2c] sm:$0x1]  ;;  %v4116_v41 = vcombine.low %v4098_v33, %v3412_v30 }
  0x27   : > { %635 = vrot.lane.b32.xlu1 %v4014_v48, %s3870_s13  ;;  %633 = vrot.lane.b32.xlu0 %v4018_v52, %s3870_s13  ;;  %v3416_v39 = vld [vmem:[%s3944_s8 + $0x44] sm:$0x1]  ;;  %v4113_v40 = vld [vmem:[%s4084_s20] sm:$0xf]  ;;  %v4119_v42 = vcombine.low %v4101_v34, %v3411_v31  ;;  %v4148_v54 = vcombine.low %v4095_v32, %v4095_v32 }
  0x28   : > { %v4122_v43 = vld [vmem:[%s3944_s8 + $0x30] sm:$0xf]  ;;  %v3415_v44 = vld [vmem:[%s3944_s8 + $0x3c] sm:$0x1]  ;;  %v4129_v46 = vld [vmem:[%s3944_s8 + $0x28] sm:$0xf]  ;;  %v4152_v55 = vcombine.low %v4113_v40, %v4113_v40 }
  0x29   : > { %v4126_v45 = vcombine.low %v4122_v43, %v3414_v35  ;;  %v4132_v47 = vld [vmem:[%s3944_s8 + $0x40] sm:$0xf]  ;;  %v4135_v49 = vcombine.low %v4129_v46, %v3413_v38  ;;  %v4141_v51 = vld [vmem:[%s3944_s8 + $0x38] sm:$0xf]  ;;  %v460_v53 = vld [vmem:[%s4040_s16 + $0xc] sm:$0x1] }
  0x2a   : > { %v4138_v50 = vcombine.low %v4132_v47, %v3416_v39  ;;  %v4155_v57 = vcombine.low %v4141_v51, %v3415_v44  ;;  %v459_v58 = vld [vmem:[%s4040_s16 + $0x4] sm:$0x1]  ;;  %v4159_v59 = vld [vmem:[%s4084_s20 + $0x18] sm:$0xf]  ;;  %v4162_v61 = vld [vmem:[%s4084_s20 + $0x10] sm:$0xf]  ;;  %v3378_v62 = vcombine.low %v442_v16, %v460_v53 }
  0x2b   : > { %639 = vrot.lane.b32.xlu1 %v4020_v56, %s3870_s13  ;;  %637 = vrot.lane.b32.xlu0 %v4026_v60, %s3870_s13  ;;  %5947 = vst [vmem:[#allocation4_spill] sm:$0xff] %v4126_v45  ;;  %5948 = vst [vmem:[#allocation5_spill] sm:$0xff] %v4135_v49  ;;  %v3377_v63 = vcombine.low %v441_v17, %v459_v58  ;;  %v462_v3 = vld [vmem:[%s4040_s16 + $0x1c] sm:$0x1]  ;;  %v461_v7 = vld [vmem:[%s4040_s16 + $0x14] sm:$0x1]  ;;  %v4172_v11 = vcombine.low %v4159_v59, %v4159_v59 }
  0x2c   : > { %5949 = vst [vmem:[#allocation6_spill] sm:$0xff] %v4138_v50  ;;  %5950 = vst [vmem:[#allocation7_spill] sm:$0xff] %v4155_v57  ;;  %v4176_v12 = vcombine.low %v4162_v61, %v4162_v61  ;;  %v4179_v16 = vld [vmem:[%s4084_s20 + $0x28] sm:$0xf]  ;;  %v4182_v17 = vld [vmem:[%s4084_s20 + $0x20] sm:$0xf] }
  0x2d   : > { %5951 = vst [vmem:[#allocation8_spill] sm:$0xff] %v4172_v11  ;;  %5953 = vst [vmem:[#allocation10_spill] sm:$0xff] %v4182_v17  ;;  %v4191_v30 = vld [vmem:[%s4084_s20 + $0x38] sm:$0xf]  ;;  %v763_v31 = vshll.u32 %v3378_v62, 16  ;;  %v761_v58 = vshrl.u32 %v3378_v62, 16 }
  0x2e   : > { %5952 = vst [vmem:[#allocation9_spill] sm:$0xff] %v4176_v12  ;;  %5954 = vst [vmem:[#allocation11_spill] sm:$0xff] %v4191_v30  ;;  %v4194_v35 = vld [vmem:[%s3944_s8 + $0x10] sm:$0xf]  ;;  %v4212_v38 = vld [vmem:[%s3944_s8 + $0x8] sm:$0xf]  ;;  %v4226_v50 = vcombine.low %v4191_v30, %v4191_v30 }
  0x2f   : > { %643 = vrot.lane.b32.xlu1 %v4028_v2, %s3870_s13  ;;  %641 = vrot.lane.b32.xlu0 %v4034_v6, %s3870_s13  ;;  %v465_v57 = vld [vmem:[%s4040_s16 + $0x34] sm:$0x1] }
  0x30   : > { %5958 = vst [vmem:[#allocation15_spill] sm:$0xff] %v4226_v50 }
  0x33   : > { %647 = vrot.lane.b32.xlu1 %v4046_v13, %s3870_s13  ;;  %645 = vrot.lane.b32.xlu0 %v4048_v14, %s3870_s13 }
  0x37   : > { %675 = vrot.lane.b32.xlu1 %v3362_v18, %s3871_s17  ;;  %673 = vrot.lane.b32.xlu0 %v3361_v19, %s3871_s17  ;;  %v3410_v18 = vld [vmem:[%s3944_s8 + $0x14] sm:$0x1]  ;;  %v464_v19 = vld [vmem:[%s4040_s16 + $0x2c] sm:$0x1] }
  0x38   : > { %v4215_v39 = vcombine.low %v4194_v35, %v3410_v18  ;;  %v3382_v53 = vcombine.low %v4069_v24, %v464_v19  ;;  %v765_v18 = vrot.slane %v763_v31, 1  ;;  %v754_v24 = vshrl.u32 %v3377_v63, 16 }
  0x3a   : > { %v4238_v30 = vor.u32 %v765_v18, %v761_v58  ;;  %v791_v49 = vshll.u32 %v3382_v53, 16 }
  0x3b   : > { %679 = vrot.lane.b32.xlu1 %v3364_v22, %s3871_s17  ;;  %677 = vrot.lane.b32.xlu0 %v3363_v23, %s3871_s17  ;;  %v463_v22 = vld [vmem:[%s4040_s16 + $0x24] sm:$0x1]  ;;  %v3409_v23 = vld [vmem:[%s3944_s8 + $0xc] sm:$0x1] }
  0x3c   : > { %v4218_v44 = vcombine.low %v4212_v38, %v3409_v23  ;;  %v3383_v23 = vcombine.low %v4090_v29, %v465_v57 }
  0x3e   : > { %v798_v58 = vshll.u32 %v3383_v23, 16 }
  0x3f   : > { %683 = vrot.lane.b32.xlu1 %v3366_v26, %s3871_s17  ;;  %681 = vrot.lane.b32.xlu0 %v3365_v27, %s3871_s17  ;;  %v3380_v26 = vcombine.low %v4057_v20, %v462_v3  ;;  %v3379_v27 = vcombine.low %v4060_v21, %v461_v7  ;;  %v4206_v20 = vcombine.low %v4182_v17, %v4182_v17  ;;  %v4209_v21 = vld [vmem:[%s4084_s20 + $0x30] sm:$0xf]  ;;  %v466_v7 = vld [vmem:[%s4040_s16 + $0x3c] sm:$0x1] }
  0x40   : > { %5957 = vst [vmem:[#allocation14_spill] sm:$0xff] %v4209_v21  ;;  %v3381_v3 = vcombine.low %v4072_v25, %v463_v22  ;;  %v4230_v15 = vcombine.low %v4209_v21, %v4209_v21  ;;  %v3384_v22 = vcombine.low %v4087_v28, %v466_v7  ;;  %v793_v28 = vrot.slane %v791_v49, 1 }
  0x41   : > { %5956 = vst [vmem:[#allocation13_spill] sm:$0xff] %v4206_v20  ;;  %v777_v25 = vshll.u32 %v3380_v26, 16  ;;  %v770_v19 = vshll.u32 %v3379_v27, 16  ;;  %v775_v10 = vshrl.u32 %v3380_v26, 16  ;;  %v768_v21 = vshrl.u32 %v3379_v27, 16 }
  0x42   : > { %5959 = vst [vmem:[#allocation16_spill] sm:$0xff] %v4230_v15  ;;  %v784_v45 = vshll.u32 %v3381_v3, 16  ;;  %v782_v7 = vshrl.u32 %v3381_v3, 16  ;;  %v805_v29 = vshll.u32 %v3384_v22, 16  ;;  %v803_v18 = vshrl.u32 %v3384_v22, 16 }
  0x43   : > { %687 = vrot.lane.b32.xlu1 %v3368_v36, %s3871_s17  ;;  %685 = vrot.lane.b32.xlu0 %v3367_v37, %s3871_s17  ;;  %v4202_v36 = vcombine.low %v4179_v16, %v4179_v16  ;;  %v756_v37 = vshll.u32 %v3377_v63, 16  ;;  %v779_v63 = vrot.slane %v777_v25, 1  ;;  %v3321_v25 = vld [vmem:[%s3966_s11 + $0x8] sm:$0xf]  ;;  %v3324_v22 = vld [vmem:[%s3966_s11 + $0x20] sm:$0xf] }
  0x44   : > { %v786_v27 = vrot.slane %v784_v45, 1  ;;  %v807_v3 = vrot.slane %v805_v29, 1 }
  0x45   : > { %5955 = vst [vmem:[#allocation12_spill] sm:$0xff] %v4202_v36  ;;  %v758_v62 = vrot.slane %v756_v37, 1  ;;  %v772_v37 = vrot.slane %v770_v19, 1  ;;  %v4250_v57 = vor.u32 %v779_v63, %v775_v10  ;;  %v4278_v19 = vcombine.low %v3321_v25, %v3321_v25 }
  0x46   : > { %v4260_v10 = vor.u32 %v786_v27, %v782_v7  ;;  %v4266_v45 = vor.u32 %v807_v3, %v803_v18  ;;  %v4286_v63 = vcombine.low %v3324_v22, %v3324_v22  ;;  %v3325_v7 = vld [vmem:[%s3966_s11 + $0x28] sm:$0xf]  ;;  %v3327_v18 = vld [vmem:[%s3966_s11 + $0x38] sm:$0xf] }
  0x47   : > { %715 = vrot.lane.b32.xlu1 %v4148_v54, %s3872_s21  ;;  %713 = vrot.lane.b32.xlu0 %v4152_v55, %s3872_s21  ;;  %v4244_v31 = vor.u32 %v758_v62, %v754_v24  ;;  %5960 = vst [vmem:[#allocation17_spill] sm:$0xff] %v4250_v57  ;;  %v4252_v26 = vor.u32 %v772_v37, %v768_v21  ;;  %v800_v21 = vrot.slane %v798_v58, 1  ;;  %v3322_v62 = vld [vmem:[%s3966_s11 + $0x10] sm:$0xf]  ;;  %5967 = vst [vmem:[#allocation24_spill] sm:$0xff] %v4278_v19 }
  0x48   : > { %5963 = vst [vmem:[#allocation20_spill] sm:$0xff] %v4260_v10  ;;  %5964 = vst [vmem:[#allocation21_spill] sm:$0xff] %v4266_v45  ;;  %v4298_v27 = vcombine.low %v3325_v7, %v3325_v7  ;;  %v3328_v58 = vld [vmem:[%s3966_s11 + $0x40] sm:$0xf]  ;;  %v4308_v3 = vcombine.low %v3327_v18, %v3327_v18 }
  0x49   : > { %5961 = vst [vmem:[#allocation18_spill] sm:$0xff] %v4252_v26  ;;  %5968 = vst [vmem:[#allocation25_spill] sm:$0xff] %v4286_v63 }
  0x4a   : > { %5971 = vst [vmem:[#allocation28_spill] sm:$0xff] %v4298_v27  ;;  %5973 = vst [vmem:[#allocation30_spill] sm:$0xff] %v4308_v3 }
  0x4b   : > { %719 = vrot.lane.b32.xlu1 %v4172_v11, %s3872_s21  ;;  %717 = vrot.lane.b32.xlu0 %v4176_v12, %s3872_s21 }
  0x4f   : > { %723 = vrot.lane.b32.xlu1 %v4202_v36, %s3872_s21  ;;  %721 = vrot.lane.b32.xlu0 %v4206_v20, %s3872_s21  ;;  %v789_v20 = vshrl.u32 %v3382_v53, 16  ;;  %v796_v53 = vshrl.u32 %v3383_v23, 16  ;;  %v3323_v23 = vld [vmem:[%s3966_s11 + $0x18] sm:$0xf] }
  0x50   : > { %v4288_v37 = vcombine.low %v3323_v23, %v3323_v23 }
  0x51   : > { %v4258_v49 = vor.u32 %v793_v28, %v789_v20  ;;  %v4268_v24 = vor.u32 %v800_v21, %v796_v53  ;;  %v4276_v20 = vcombine.low %v3322_v62, %v3322_v62  ;;  %v3326_v28 = vld [vmem:[%s3966_s11 + $0x30] sm:$0xf]  ;;  %v4306_v53 = vcombine.low %v3328_v58, %v3328_v58  ;;  %v3338_v21 = vld [vmem:[%s3966_s11 + $0x14] sm:$0x1] }
  0x52   : > { %5969 = vst [vmem:[#allocation26_spill] sm:$0xff] %v4288_v37  ;;  %v4296_v29 = vcombine.low %v3326_v28, %v3326_v28 }
  0x53   : > { %727 = vrot.lane.b32.xlu1 %v4226_v50, %s3872_s21  ;;  %725 = vrot.lane.b32.xlu0 %v4230_v15, %s3872_s21  ;;  %5962 = vst [vmem:[#allocation19_spill] sm:$0xff] %v4258_v49  ;;  %5965 = vst [vmem:[#allocation22_spill] sm:$0xff] %v4268_v24 }
  0x54   : > { %5966 = vst [vmem:[#allocation23_spill] sm:$0xff] %v4276_v20  ;;  %5970 = vst [vmem:[#allocation27_spill] sm:$0xff] %v4296_v29 }
  0x55   : > { %5972 = vst [vmem:[#allocation29_spill] sm:$0xff] %v4306_v53 }
  0x57   : > { %811 = vrot.lane.b32.xlu1 %v4238_v30, %s3873_s22  ;;  %809 = vrot.lane.b32.xlu0 %v4244_v31, %s3873_s22 }
  0x5b   : > { %815 = vrot.lane.b32.xlu1 %v4250_v57, %s3873_s22  ;;  %813 = vrot.lane.b32.xlu0 %v4252_v26, %s3873_s22 }
  0x5f   : > { %819 = vrot.lane.b32.xlu1 %v4258_v49, %s3873_s22  ;;  %817 = vrot.lane.b32.xlu0 %v4260_v10, %s3873_s22  ;;  %v3344_v49 = vld [vmem:[%s3966_s11 + $0x44] sm:$0x1] }
  0x63   : > { %823 = vrot.lane.b32.xlu1 %v4266_v45, %s3873_s22  ;;  %821 = vrot.lane.b32.xlu0 %v4268_v24, %s3873_s22  ;;  %v3341_v24 = vld [vmem:[%s3966_s11 + $0x2c] sm:$0x1] }
  0x64   : > { %v3405_v15 = vcombine.low %v3325_v7, %v3341_v24 }
  0x67   : > { %851 = vrot.lane.b32.xlu1 %v4276_v20, %s3874_s23  ;;  %849 = vrot.lane.b32.xlu0 %v4278_v19, %s3874_s23  ;;  %v3340_v20 = vld [vmem:[%s3966_s11 + $0x24] sm:$0x1] }
  0x6b   : > { %855 = vrot.lane.b32.xlu1 %v4286_v63, %s3874_s23  ;;  %853 = vrot.lane.b32.xlu0 %v4288_v37, %s3874_s23  ;;  %v4317_v63 = vcombine.low %v4194_v35, %v4194_v35  ;;  %v3402_v37 = vcombine.low %v3322_v62, %v3338_v21  ;;  %v4331_v35 = vcombine.low %v4098_v33, %v4098_v33 }
  0x6c   : > { %v4346_v33 = vcombine.low %v4122_v43, %v4122_v43  ;;  %v4359_v43 = vcombine.low %v4132_v47, %v4132_v47 }
  0x6d   : > { %5974 = vst [vmem:[#allocation31_spill] sm:$0xff] %v4331_v35  ;;  %v939_v62 = vshll.u32 %v3402_v37, 16 }
  0x6e   : > { %5976 = vst [vmem:[#allocation33_spill] sm:$0xff] %v4346_v33  ;;  %5978 = vst [vmem:[#allocation35_spill] sm:$0xff] %v4359_v43 }
  0x6f   : > { %859 = vrot.lane.b32.xlu1 %v4296_v29, %s3874_s23  ;;  %857 = vrot.lane.b32.xlu0 %v4298_v27, %s3874_s23  ;;  %v4321_v29 = vcombine.low %v4212_v38, %v4212_v38  ;;  %v3337_v27 = vld [vmem:[%s3966_s11 + $0xc] sm:$0x1]  ;;  %v4335_v38 = vcombine.low %v4101_v34, %v4101_v34  ;;  %v4350_v34 = vcombine.low %v4129_v46, %v4129_v46 }
  0x70   : > { %v3401_v19 = vcombine.low %v3321_v25, %v3337_v27  ;;  %v3342_v27 = vld [vmem:[%s3966_s11 + $0x34] sm:$0x1]  ;;  %v4363_v46 = vcombine.low %v4141_v51, %v4141_v51 }
  0x71   : > { %5975 = vst [vmem:[#allocation32_spill] sm:$0xff] %v4335_v38  ;;  %5977 = vst [vmem:[#allocation34_spill] sm:$0xff] %v4350_v34  ;;  %v3406_v45 = vcombine.low %v3326_v28, %v3342_v27 }
  0x72   : > { %v932_v21 = vshll.u32 %v3401_v19, 16  ;;  %5979 = vst [vmem:[#allocation36_spill] sm:$0xff] %v4363_v46 }
  0x73   : > { %863 = vrot.lane.b32.xlu1 %v4306_v53, %s3874_s23  ;;  %861 = vrot.lane.b32.xlu0 %v4308_v3, %s3874_s23  ;;  %v3339_v53 = vld [vmem:[%s3966_s11 + $0x1c] sm:$0x1]  ;;  %v3404_v3 = vcombine.low %v3324_v22, %v3340_v20  ;;  %v937_v20 = vshrl.u32 %v3402_v37, 16  ;;  %v967_v7 = vshll.u32 %v3406_v45, 16  ;;  %v965_v51 = vshrl.u32 %v3406_v45, 16 }
  0x74   : > { %v3403_v25 = vcombine.low %v3323_v23, %v3339_v53  ;;  %v941_v23 = vrot.slane %v939_v62, 1  ;;  %v930_v53 = vshrl.u32 %v3401_v19, 16  ;;  %v934_v50 = vrot.slane %v932_v21, 1  ;;  %v3343_v19 = vld [vmem:[%s3966_s11 + $0x3c] sm:$0x1] }
  0x75   : > { %v953_v22 = vshll.u32 %v3404_v3, 16  ;;  %v951_v37 = vshrl.u32 %v3404_v3, 16  ;;  %v960_v62 = vshll.u32 %v3405_v15, 16  ;;  %v3408_v21 = vcombine.low %v3328_v58, %v3344_v49 }
  0x76   : > { %v946_v10 = vshll.u32 %v3403_v25, 16  ;;  %v944_v28 = vshrl.u32 %v3403_v25, 16  ;;  %v4370_v47 = vor.u32 %v941_v23, %v937_v20  ;;  %v969_v36 = vrot.slane %v967_v7, 1  ;;  %v1146_v7 = vld [vmem:[%s3944_s8 + $0xc] sm:$0x1] }
  0x77   : > { %891 = vrot.lane.b32.xlu1 %v4317_v63, %s3875_s28  ;;  %889 = vrot.lane.b32.xlu0 %v4321_v29, %s3875_s28  ;;  %v955_v24 = vrot.slane %v953_v22, 1  ;;  %v958_v3 = vshrl.u32 %v3405_v15, 16  ;;  %v962_v22 = vrot.slane %v960_v62, 1  ;;  %v981_v25 = vshll.u32 %v3408_v21, 16 }
  0x78   : > { %v948_v27 = vrot.slane %v946_v10, 1  ;;  %v979_v45 = vshrl.u32 %v3408_v21, 16  ;;  %v4390_v23 = vor.u32 %v969_v36, %v965_v51 }
  0x79   : > { %v4378_v49 = vor.u32 %v955_v24, %v951_v37 }
  0x7a   : > { %v4380_v10 = vor.u32 %v948_v27, %v944_v28  ;;  %5982 = vst [vmem:[#allocation39_spill] sm:$0xff] %v4390_v23  ;;  %v1145_v28 = vld [vmem:[%s3944_s8 + $0x4] sm:$0x1]  ;;  %v1147_v27 = vld [vmem:[%s3944_s8 + $0x14] sm:$0x1] }
  0x7b   : > { %895 = vrot.lane.b32.xlu1 %v4331_v35, %s3875_s28  ;;  %893 = vrot.lane.b32.xlu0 %v4335_v38, %s3875_s28  ;;  %5980 = vst [vmem:[#allocation37_spill] sm:$0xff] %v4378_v49  ;;  %v3417_v51 = vcombine.low %v3950_v1, %v1145_v28 }
  0x7c   : > { %5981 = vst [vmem:[#allocation38_spill] sm:$0xff] %v4380_v10 }
  0x7f   : > { %899 = vrot.lane.b32.xlu1 %v4346_v33, %s3875_s28  ;;  %897 = vrot.lane.b32.xlu0 %v4350_v34, %s3875_s28  ;;  %v3407_v33 = vcombine.low %v3327_v18, %v3343_v19  ;;  %v4372_v34 = vor.u32 %v934_v50, %v930_v53  ;;  %v983_v18 = vrot.slane %v981_v25, 1  ;;  %v4392_v53 = vor.u32 %v962_v22, %v958_v3  ;;  %v1148_v22 = vld [vmem:[%s3944_s8 + $0x1c] sm:$0x1] }
  0x80   : > { %v3418_v3 = vcombine.low %v3960_v5, %v1146_v7 }
  0x81   : > { %v974_v17 = vshll.u32 %v3407_v33, 16  ;;  %v972_v15 = vshrl.u32 %v3407_v33, 16  ;;  %5983 = vst [vmem:[#allocation40_spill] sm:$0xff] %v4392_v53 }
  0x82   : > { %v1219_v1 = vshll.u32 %v3418_v3, 16 }
  0x83   : > { %903 = vrot.lane.b32.xlu1 %v4359_v43, %s3875_s28  ;;  %901 = vrot.lane.b32.xlu0 %v4363_v46, %s3875_s28  ;;  %v976_v20 = vrot.slane %v974_v17, 1  ;;  %v4402_v17 = vor.u32 %v983_v18, %v979_v45  ;;  %v3420_v18 = vcombine.low %v3957_v4, %v1148_v22 }
  0x85   : > { %5984 = vst [vmem:[#allocation41_spill] sm:$0xff] %v4402_v17  ;;  %v4404_v33 = vor.u32 %v976_v20, %v972_v15  ;;  %v3419_v15 = vcombine.low %v3947_v0, %v1147_v27  ;;  %v1210_v20 = vshrl.u32 %v3417_v51, 16  ;;  %v1217_v0 = vshrl.u32 %v3418_v3, 16  ;;  %v1154_v3 = vld [vmem:[%s4084_s20 + $0xc] sm:$0x1] }
  0x86   : > { %v1233_v7 = vshll.u32 %v3420_v18, 16  ;;  %v1231_v22 = vshrl.u32 %v3420_v18, 16 }
  0x87   : > { %987 = vrot.lane.b32.xlu1 %v4370_v47, %s3876_s29  ;;  %985 = vrot.lane.b32.xlu0 %v4372_v34, %s3876_s29  ;;  %5985 = vst [vmem:[#allocation42_spill] sm:$0xff] %v4404_v33  ;;  %v1226_v28 = vshll.u32 %v3419_v15, 16 }
  0x89   : > { %v4382_v58 = vpop.permute.xlu1 %525  ;;  %v4384_v50 = vpop.permute.xlu0 %521 }
  0x8b   : > { %991 = vrot.lane.b32.xlu1 %v4378_v49, %s3876_s29  ;;  %989 = vrot.lane.b32.xlu0 %v4380_v10, %s3876_s29 }
  0x8d   : > { %v4394_v19 = vpop.permute.xlu1 %527  ;;  %v4396_v37 = vpop.permute.xlu0 %523 }
  0x8f   : > { %995 = vrot.lane.b32.xlu1 %v4390_v23, %s3876_s29  ;;  %993 = vrot.lane.b32.xlu0 %v4392_v53, %s3876_s29 }
  0x91   : > { %v4406_v36 = vpop.permute.xlu1 %531  ;;  %v4408_v24 = vpop.permute.xlu0 %529 }
  0x92   : > { %5986 = vst [vmem:[#allocation43_spill] sm:$0xff] %v4406_v36  ;;  %5987 = vst [vmem:[#allocation44_spill] sm:$0xff] %v4408_v24  ;;  %v1480_v36 = vshrl.u32 %v4119_v42, 16 }
  0x93   : > { %999 = vrot.lane.b32.xlu1 %v4402_v17, %s3876_s29  ;;  %997 = vrot.lane.b32.xlu0 %v4404_v33, %s3876_s29 }
  0x95   : > { %v4416_v62 = vpop.permute.xlu1 %535  ;;  %v4418_v21 = vpop.permute.xlu0 %533 }
  0x96   : > { %5988 = vst [vmem:[#allocation45_spill] sm:$0xff] %v4416_v62  ;;  %5989 = vst [vmem:[#allocation46_spill] sm:$0xff] %v4418_v21  ;;  %v1224_v21 = vshrl.u32 %v3419_v15, 16  ;;  %v1228_v62 = vrot.slane %v1226_v28, 1 }
  0x97   : > { %1171 = vrot.lane.b32.xlu1 %v4014_v48, %s3869_s12  ;;  %1169 = vrot.lane.b32.xlu0 %v4018_v52, %s3869_s12  ;;  %v1212_v48 = vshll.u32 %v3417_v51, 16 }
  0x98   : > { %v1229_v15 = vor.u32 %v1228_v62, %v1224_v21  ;;  %v3778_v62 = vld [vmem:[%s5866_s4] sm:$0xff]  }
  0x99   : > { %v4428_v25 = vpop.permute.xlu1 %635  ;;  %v4430_v45 = vpop.permute.xlu0 %633  ;;  %3611 = vmatprep.subr.bf16.mxu0 %v3778_v62  ;;  %3649 = vmatprep.subr.bf16.mxu1 %v3778_v62 }
  0x9a   : > { %3612 = vmatpush3.bf16.msra.mxu0 %v3778_v62  ;;  %3652 = vmatpush3.bf16.msra.mxu1 %v3778_v62 }
  0x9b   : > { %1175 = vrot.lane.b32.xlu1 %v4020_v56, %s3869_s12  ;;  %1173 = vrot.lane.b32.xlu0 %v4026_v60, %s3869_s12  ;;  %v1221_v56 = vrot.slane %v1219_v1, 1  ;;  %v1214_v60 = vrot.slane %v1212_v48, 1  ;;  %v1153_v1 = vld [vmem:[%s4084_s20 + $0x4] sm:$0x1] }
  0x9d   : > { %v4438_v52 = vpop.permute.xlu1 %639  ;;  %v4440_v5 = vpop.permute.xlu0 %637  ;;  %v1215_v51 = vor.u32 %v1214_v60, %v1210_v20 }
  0x9f   : > { %1179 = vrot.lane.b32.xlu1 %v4028_v2, %s3869_s12  ;;  %1177 = vrot.lane.b32.xlu0 %v4034_v6, %s3869_s12  ;;  %v1222_v2 = vor.u32 %v1221_v56, %v1217_v0  ;;  %v1235_v6 = vrot.slane %v1233_v7, 1 }
  0xa1   : > { %v4446_v27 = vpop.permute.xlu1 %643  ;;  %v4448_v4 = vpop.permute.xlu0 %641 }
  0xa2   : > { %5990 = vst [vmem:[#allocation47_spill] sm:$0xff] %v4446_v27  ;;  %5991 = vst [vmem:[#allocation48_spill] sm:$0xff] %v4448_v4  ;;  %v3426_v4 = vcombine.low %v4095_v32, %v1154_v3 }
  0xa3   : > { %1183 = vrot.lane.b32.xlu1 %v4046_v13, %s3869_s12  ;;  %1181 = vrot.lane.b32.xlu0 %v4048_v14, %s3869_s12  ;;  %v1236_v13 = vor.u32 %v1235_v6, %v1231_v22  ;;  %v3425_v14 = vcombine.low %v4113_v40, %v1153_v1 }
  0xa4   : > { %v1347_v28 = vshll.u32 %v3426_v4, 16  ;;  %v1345_v40 = vshrl.u32 %v3426_v4, 16 }
  0xa5   : > { %v4456_v48 = vpop.permute.xlu1 %647  ;;  %v4458_v24 = vpop.permute.xlu0 %645  ;;  %v1340_v0 = vshll.u32 %v3425_v14, 16  ;;  %v1338_v60 = vshrl.u32 %v3425_v14, 16  ;;  %v1468_v14 = vshll.u32 %v4218_v44, 16 }
  0xa6   : > { %5992 = vst [vmem:[#allocation49_spill] sm:$0xff] %v4456_v48  ;;  %5993 = vst [vmem:[#allocation50_spill] sm:$0xff] %v4458_v24  ;;  %v1349_v21 = vrot.slane %v1347_v28, 1 }
  0xa7   : > { %1267 = vrot.lane.b32.xlu1 %v1222_v2, %s3870_s13  ;;  %1265 = vrot.lane.b32.xlu0 %v1215_v51, %s3870_s13  ;;  %v1342_v7 = vrot.slane %v1340_v0, 1  ;;  %v3779_v51 = vld [vmem:[%s5866_s4 + $0x8] sm:$0xff]  }
  0xa8   : > { %v4492_v4 = vor.u32 %v1349_v21, %v1345_v40  ;;  %3613 = vmatprep.subr.bf16.mxu0 %v3779_v51  ;;  %3650 = vmatprep.subr.bf16.mxu1 %v3779_v51  ;;  %v1473_v40 = vshrl.u32 %v4215_v39, 16 }
  0xa9   : > { %v4464_v18 = vpop.permute.xlu1 %675  ;;  %v4466_v20 = vpop.permute.xlu0 %673  ;;  %v4494_v6 = vor.u32 %v1342_v7, %v1338_v60  ;;  %3614 = vmatpush3.bf16.msra.mxu0 %v3779_v51  ;;  %3653 = vmatpush3.bf16.msra.mxu1 %v3779_v51  ;;  %v1466_v60 = vshrl.u32 %v4218_v44, 16  ;;  %v1470_v7 = vrot.slane %v1468_v14, 1  ;;  %v1156_v51 = vld [vmem:[%s4084_s20 + $0x1c] sm:$0x1] }
  0xab   : > { %1271 = vrot.lane.b32.xlu1 %v1236_v13, %s3870_s13  ;;  %1269 = vrot.lane.b32.xlu0 %v1229_v15, %s3870_s13  ;;  %v3780_v13 = vld [vmem:[%s5866_s4 + $0x10] ss:$0 sps:$4 sm:$0x33]   ;;  %v1475_v15 = vshll.u32 %v4215_v39, 16  ;;  %v4532_v39 = vor.u32 %v1470_v7, %v1466_v60 }
  0xac   : > { %v2565_v28 = vsel %vm2563_vm0, %v3780_v13, 0  ;;  %3655 = vmatprep.subr.msk.bf16.mxu0 %vm2563_vm0, %v3780_v13  ;;  %3656 = vmatprep.subr.msk.bf16.mxu1 %vm2563_vm0, %v3780_v13  ;;  %v1155_v13 = vld [vmem:[%s4084_s20 + $0x14] sm:$0x1] }
  0xad   : > { %v4470_v56 = vpop.permute.xlu1 %679  ;;  %v4472_v32 = vpop.permute.xlu0 %677  ;;  %3616 = vmatpush3.bf16.msra.mxu0 %v2565_v28  ;;  %3654 = vmatpush3.bf16.msra.mxu1 %v2565_v28  ;;  %v1477_v21 = vrot.slane %v1475_v15, 1  ;;  %v3428_v28 = vcombine.low %v4159_v59, %v1156_v51  ;;  %v3427_v44 = vcombine.low %v4162_v61, %v1155_v13 }
  0xaf   : > { %1283 = vrot.lane.b32.xlu1 %v4148_v54, %s3871_s17  ;;  %1281 = vrot.lane.b32.xlu0 %v4152_v55, %s3871_s17  ;;  %v4530_v24 = vor.u32 %v1477_v21, %v1473_v40  ;;  %v1361_v59 = vshll.u32 %v3428_v28, 16  ;;  %v1354_v51 = vshll.u32 %v3427_v44, 16  ;;  %v1359_v61 = vshrl.u32 %v3428_v28, 16 }
  0xb0   : > { %v1352_v7 = vshrl.u32 %v3427_v44, 16 }
  0xb1   : > { %v4481_v22 = vpop.permute.xlu1 %683  ;;  %v4483_v2 = vpop.permute.xlu0 %681  ;;  %v1363_v60 = vrot.slane %v1361_v59, 1  ;;  %v1356_v13 = vrot.slane %v1354_v51, 1  ;;  %v1489_v59 = vshll.u32 %v4116_v41, 16  ;;  %v1482_v51 = vshll.u32 %v4119_v42, 16 }
  0xb2   : > { %5994 = vst [vmem:[#allocation51_spill] sm:$0xff] %v4481_v22  ;;  %5995 = vst [vmem:[#allocation52_spill] sm:$0xff] %v4483_v2  ;;  %v1149_v2 = vld [vmem:[%s3944_s8 + $0x24] sm:$0x1] }
  0xb3   : > { %1299 = vrot.lane.b32.xlu1 %v4238_v30, %s3872_s21  ;;  %1297 = vrot.lane.b32.xlu0 %v4244_v31, %s3872_s21  ;;  %v3421_v27 = vcombine.low %v3978_v9, %v1149_v2 }
  0xb5   : > { %v4496_v3 = vpop.permute.xlu1 %687  ;;  %v4498_v1 = vpop.permute.xlu0 %685  ;;  %v1240_v9 = vshll.u32 %v3421_v27, 16 }
  0xb6   : > { %5996 = vst [vmem:[#allocation53_spill] sm:$0xff] %v4496_v3  ;;  %5997 = vst [vmem:[#allocation54_spill] sm:$0xff] %v4498_v1 }
  0xb7   : > { %1395 = vrot.lane.b32.xlu1 %v4492_v4, %s3873_s22  ;;  %1393 = vrot.lane.b32.xlu0 %v4494_v6, %s3873_s22 }
  0xb9   : > { %v4509_v0 = vpop.permute.xlu1 %715  ;;  %v4511_v62 = vpop.permute.xlu0 %713 }
  0xbb   : > { %1411 = vrot.lane.b32.xlu1 %v4317_v63, %s3874_s23  ;;  %1409 = vrot.lane.b32.xlu0 %v4321_v29, %s3874_s23 }
  0xbd   : > { %v4521_v1 = vpop.permute.xlu1 %719  ;;  %v4523_v3 = vpop.permute.xlu0 %717 }
  0xbf   : > { %1427 = vrot.lane.b32.xlu1 %v4370_v47, %s3875_s28  ;;  %1425 = vrot.lane.b32.xlu0 %v4372_v34, %s3875_s28 }
  0xc1   : > { %v4535_v15 = vpop.permute.xlu1 %723  ;;  %v4537_v14 = vpop.permute.xlu0 %721 }
  0xc2   : > { %5998 = vst [vmem:[#allocation55_spill] sm:$0xff] %v4535_v15  ;;  %5999 = vst [vmem:[#allocation56_spill] sm:$0xff] %v4537_v14  ;;  %v1150_v15 = vld [vmem:[%s3944_s8 + $0x2c] sm:$0x1] }
  0xc3   : > { %1523 = vrot.lane.b32.xlu1 %v4530_v24, %s3876_s29  ;;  %1521 = vrot.lane.b32.xlu0 %v4532_v39, %s3876_s29  ;;  %v3422_v22 = vcombine.low %v3975_v8, %v1150_v15 }
  0xc5   : > { %v4543_v40 = vpop.permute.xlu1 %727  ;;  %v4545_v21 = vpop.permute.xlu0 %725  ;;  %v1247_v8 = vshll.u32 %v3422_v22, 16  ;;  %v1245_v42 = vshrl.u32 %v3422_v22, 16 }
  0xc6   : > { %6000 = vst [vmem:[#allocation57_spill] sm:$0xff] %v4543_v40  ;;  %6001 = vst [vmem:[#allocation58_spill] sm:$0xff] %v4545_v21  ;;  %v4559_v21 = vor.u32 %v1363_v60, %v1359_v61  ;;  %v4561_v40 = vor.u32 %v1356_v13, %v1352_v7  ;;  %v1487_v7 = vshrl.u32 %v4116_v41, 16  ;;  %v1491_v13 = vrot.slane %v1489_v59, 1  ;;  %v1158_v59 = vld [vmem:[%s4084_s20 + $0x2c] sm:$0x1] }
  0xc7   : > { %1287 = vrot.lane.b32.xlu1 %v4172_v11, %s3871_s17  ;;  %1285 = vrot.lane.b32.xlu0 %v4176_v12, %s3871_s17  ;;  %v1484_v11 = vrot.slane %v1482_v51, 1  ;;  %v1249_v51 = vrot.slane %v1247_v8, 1 }
  0xc8   : > { %6002 = vst [vmem:[#allocation59_spill] sm:$0xff] %v4559_v21  ;;  %6003 = vst [vmem:[#allocation60_spill] sm:$0xff] %v4561_v40 }
  0xc9   : > { %v4551_v48 = vpop.permute.xlu1 %811  ;;  %v4553_v14 = vpop.permute.xlu0 %809  ;;  %v4593_v41 = vor.u32 %v1484_v11, %v1480_v36  ;;  %v6010_v11 = vld [vmem:[#allocation10_spill] sm:$0xff] }
  0xcb   : > { %1303 = vrot.lane.b32.xlu1 %v4250_v57, %s3872_s21  ;;  %1301 = vrot.lane.b32.xlu0 %v4252_v26, %s3872_s21  ;;  %6009 = vst [vmem:[#allocation66_spill] sm:$0xff] %v4593_v41  ;;  %v1159_v26 = vld [vmem:[%s4084_s20 + $0x34] sm:$0x1] }
  0xcd   : > { %v4565_v28 = vpop.permute.xlu1 %815  ;;  %v4567_v44 = vpop.permute.xlu0 %813 }
  0xcf   : > { %1399 = vrot.lane.b32.xlu1 %v4559_v21, %s3873_s22  ;;  %1397 = vrot.lane.b32.xlu0 %v4561_v40, %s3873_s22  ;;  %v1157_v21 = vld [vmem:[%s4084_s20 + $0x24] sm:$0x1] }
  0xd0   : > { %v3429_v36 = vcombine.low %v6010_v11, %v1157_v21  ;;  %v6013_v11 = vld [vmem:[#allocation12_spill] sm:$0xff] }
  0xd1   : > { %v4577_v61 = vpop.permute.xlu1 %819  ;;  %v4579_v60 = vpop.permute.xlu0 %817 }
  0xd2   : > { %6004 = vst [vmem:[#allocation61_spill] sm:$0xff] %v4577_v61  ;;  %6005 = vst [vmem:[#allocation62_spill] sm:$0xff] %v4579_v60  ;;  %v4591_v60 = vor.u32 %v1491_v13, %v1487_v7  ;;  %v1238_v61 = vshrl.u32 %v3421_v27, 16  ;;  %v3430_v7 = vcombine.low %v4179_v16, %v1158_v59  ;;  %v1250_v13 = vor.u32 %v1249_v51, %v1245_v42 }
  0xd3   : > { %1415 = vrot.lane.b32.xlu1 %v4331_v35, %s3874_s23  ;;  %1413 = vrot.lane.b32.xlu0 %v4335_v38, %s3874_s23  ;;  %v1242_v35 = vrot.slane %v1240_v9, 1  ;;  %v1368_v16 = vshll.u32 %v3429_v36, 16  ;;  %v1366_v51 = vshrl.u32 %v3429_v36, 16 }
  0xd4   : > { %6008 = vst [vmem:[#allocation65_spill] sm:$0xff] %v4591_v60  ;;  %v1375_v9 = vshll.u32 %v3430_v7, 16 }
  0xd5   : > { %v4587_v2 = vpop.permute.xlu1 %823  ;;  %v4589_v15 = vpop.permute.xlu0 %821  ;;  %v1243_v22 = vor.u32 %v1242_v35, %v1238_v61  ;;  %v6014_v35 = vld [vmem:[#allocation13_spill] sm:$0xff]  ;;  %v1373_v61 = vshrl.u32 %v3430_v7, 16 }
  0xd6   : > { %6006 = vst [vmem:[#allocation63_spill] sm:$0xff] %v4587_v2  ;;  %6007 = vst [vmem:[#allocation64_spill] sm:$0xff] %v4589_v15  ;;  %v1377_v42 = vrot.slane %v1375_v9, 1  ;;  %v6021_v9 = vld [vmem:[#allocation4_spill] sm:$0xff] }
  0xd7   : > { %1431 = vrot.lane.b32.xlu1 %v4378_v49, %s3875_s28  ;;  %1429 = vrot.lane.b32.xlu0 %v4380_v10, %s3875_s28  ;;  %v6018_v49 = vld [vmem:[#allocation20_spill] sm:$0xff] }
  0xd9   : > { %v4601_v38 = vpop.permute.xlu1 %851  ;;  %v4603_v2 = vpop.permute.xlu0 %849 }
  0xdb   : > { %1527 = vrot.lane.b32.xlu1 %v4591_v60, %s3876_s29  ;;  %1525 = vrot.lane.b32.xlu0 %v4593_v41, %s3876_s29  ;;  %v6017_v60 = vld [vmem:[#allocation19_spill] sm:$0xff]  ;;  %v4633_v41 = vor.u32 %v1377_v42, %v1373_v61 }
  0xdd   : > { %v4611_v8 = vpop.permute.xlu1 %855  ;;  %v4613_v27 = vpop.permute.xlu0 %853  ;;  %6019 = vst [vmem:[#allocation70_spill] sm:$0xff] %v4633_v41 }
  0xdf   : > { %1275 = vrot.lane.b32.xlu1 %v1250_v13, %s3870_s13  ;;  %1273 = vrot.lane.b32.xlu0 %v1243_v22, %s3870_s13  ;;  %v1370_v13 = vrot.slane %v1368_v16, 1  ;;  %v1503_v16 = vshll.u32 %v6021_v9, 16 }
  0xe1   : > { %v4617_v21 = vpop.permute.xlu1 %859  ;;  %v4619_v59 = vpop.permute.xlu0 %857 }
  0xe2   : > { %6011 = vst [vmem:[#allocation10_spill] sm:$0xff] %v4617_v21  ;;  %6012 = vst [vmem:[#allocation67_spill] sm:$0xff] %v4619_v59  ;;  %v1152_v59 = vld [vmem:[%s3944_s8 + $0x3c] sm:$0x1]  ;;  %v6023_v21 = vld [vmem:[#allocation2_spill] sm:$0xff] }
  0xe3   : > { %1291 = vrot.lane.b32.xlu1 %v6013_v11, %s3871_s17  ;;  %1289 = vrot.lane.b32.xlu0 %v6014_v35, %s3871_s17  ;;  %v4635_v11 = vor.u32 %v1370_v13, %v1366_v51  ;;  %v1151_v35 = vld [vmem:[%s3944_s8 + $0x34] sm:$0x1]  ;;  %v3424_v10 = vcombine.low %v6023_v21, %v1152_v59  ;;  %v1501_v51 = vshrl.u32 %v6021_v9, 16  ;;  %v1505_v13 = vrot.slane %v1503_v16, 1  ;;  %v6026_v21 = vld [vmem:[#allocation33_spill] sm:$0xff] }
  0xe4   : > { %v1160_v16 = vld [vmem:[%s4084_s20 + $0x3c] sm:$0x1] }
  0xe5   : > { %v4625_v15 = vpop.permute.xlu1 %863  ;;  %v4627_v22 = vpop.permute.xlu0 %861  ;;  %6020 = vst [vmem:[#allocation71_spill] sm:$0xff] %v4635_v11  ;;  %v1261_v59 = vshll.u32 %v3424_v10, 16  ;;  %v4665_v40 = vor.u32 %v1505_v13, %v1501_v51  ;;  %v6034_v51 = vld [vmem:[#allocation11_spill] sm:$0xff] }
  0xe6   : > { %6015 = vst [vmem:[#allocation68_spill] sm:$0xff] %v4625_v15  ;;  %6016 = vst [vmem:[#allocation69_spill] sm:$0xff] %v4627_v22  ;;  %v6022_v15 = vld [vmem:[#allocation5_spill] sm:$0xff]  ;;  %v3432_v13 = vcombine.low %v6034_v51, %v1160_v16 }
  0xe7   : > { %1307 = vrot.lane.b32.xlu1 %v6017_v60, %s3872_s21  ;;  %1305 = vrot.lane.b32.xlu0 %v6018_v49, %s3872_s21  ;;  %v1496_v22 = vshll.u32 %v6022_v15, 16  ;;  %v6024_v60 = vld [vmem:[#allocation3_spill] sm:$0xff]  ;;  %v1494_v49 = vshrl.u32 %v6022_v15, 16  ;;  %v1259_v15 = vshrl.u32 %v3424_v10, 16 }
  0xe8   : > { %v3423_v12 = vcombine.low %v6024_v60, %v1151_v35  ;;  %v6027_v60 = vld [vmem:[#allocation34_spill] sm:$0xff]  ;;  %6030 = vst [vmem:[#allocation3_spill] sm:$0xff] %v4665_v40 }
  0xe9   : > { %v4639_v7 = vpop.permute.xlu1 %891  ;;  %v4641_v36 = vpop.permute.xlu0 %889  ;;  %v1498_v57 = vrot.slane %v1496_v22, 1  ;;  %v1263_v22 = vrot.slane %v1261_v59, 1 }
  0xea   : > { %v1254_v35 = vshll.u32 %v3423_v12, 16 }
  0xeb   : > { %1403 = vrot.lane.b32.xlu1 %v4633_v41, %s3873_s22  ;;  %1401 = vrot.lane.b32.xlu0 %v4635_v11, %s3873_s22  ;;  %v4667_v9 = vor.u32 %v1498_v57, %v1494_v49  ;;  %v6035_v57 = vld [vmem:[#allocation14_spill] sm:$0xff] }
  0xec   : > { %v3431_v49 = vcombine.low %v6035_v57, %v1159_v26  ;;  %v6036_v57 = vld [vmem:[#allocation15_spill] sm:$0xff] }
  0xed   : > { %v4651_v61 = vpop.permute.xlu1 %895  ;;  %v4653_v42 = vpop.permute.xlu0 %893  ;;  %6031 = vst [vmem:[#allocation72_spill] sm:$0xff] %v4667_v9 }
  0xee   : > { %6025 = vst [vmem:[#allocation4_spill] sm:$0xff] %v4653_v42  ;;  %v1382_v16 = vshll.u32 %v3431_v49, 16 }
  0xef   : > { %1419 = vrot.lane.b32.xlu1 %v6026_v21, %s3874_s23  ;;  %1417 = vrot.lane.b32.xlu0 %v6027_v60, %s3874_s23  ;;  %v1252_v21 = vshrl.u32 %v3423_v12, 16  ;;  %v1256_v60 = vrot.slane %v1254_v35, 1  ;;  %v1389_v35 = vshll.u32 %v3432_v13, 16 }
  0xf1   : > { %v4661_v41 = vpop.permute.xlu1 %899  ;;  %v4663_v11 = vpop.permute.xlu0 %897  ;;  %v1257_v10 = vor.u32 %v1256_v60, %v1252_v21  ;;  %v1387_v21 = vshrl.u32 %v3432_v13, 16  ;;  %v1391_v60 = vrot.slane %v1389_v35, 1 }
  0xf2   : > { %6028 = vst [vmem:[#allocation5_spill] sm:$0xff] %v4661_v41  ;;  %6029 = vst [vmem:[#allocation2_spill] sm:$0xff] %v4663_v11  ;;  %v3449_v11 = vld [vmem:[%s4084_s20 + $0x8] sm:$0xf] }
  0xf3   : > { %1435 = vrot.lane.b32.xlu1 %v4390_v23, %s3875_s28  ;;  %1433 = vrot.lane.b32.xlu0 %v4392_v53, %s3875_s28  ;;  %v1264_v23 = vor.u32 %v1263_v22, %v1259_v15  ;;  %v6037_v15 = vld [vmem:[#allocation16_spill] sm:$0xff]  ;;  %v1380_v22 = vshrl.u32 %v3431_v49, 16  ;;  %v6041_v53 = vld [vmem:[#allocation22_spill] sm:$0xff] }
  0xf4   : > { %v6046_v49 = vld [vmem:[#allocation6_spill] sm:$0xff] }
  0xf5   : > { %v4675_v42 = vpop.permute.xlu1 %903  ;;  %v4677_v41 = vpop.permute.xlu0 %901  ;;  %v1517_v35 = vshll.u32 %v6046_v49, 16 }
  0xf6   : > { %6032 = vst [vmem:[#allocation73_spill] sm:$0xff] %v4675_v42  ;;  %6033 = vst [vmem:[#allocation74_spill] sm:$0xff] %v4677_v41  ;;  %v4707_v41 = vor.u32 %v1391_v60, %v1387_v21 }
  0xf7   : > { %1531 = vrot.lane.b32.xlu1 %v4665_v40, %s3876_s29  ;;  %1529 = vrot.lane.b32.xlu0 %v4667_v9, %s3876_s29  ;;  %v1384_v40 = vrot.slane %v1382_v16, 1  ;;  %v6047_v16 = vld [vmem:[#allocation7_spill] sm:$0xff]  ;;  %v1519_v60 = vrot.slane %v1517_v35, 1 }
  0xf8   : > { %6042 = vst [vmem:[#allocation75_spill] sm:$0xff] %v4707_v41 }
  0xf9   : > { %v4685_v59 = vpop.permute.xlu1 %987  ;;  %v4687_v12 = vpop.permute.xlu0 %985 }
  0xfb   : > { %1279 = vrot.lane.b32.xlu1 %v1264_v23, %s3870_s13  ;;  %1277 = vrot.lane.b32.xlu0 %v1257_v10, %s3870_s13  ;;  %v6040_v10 = vld [vmem:[#allocation21_spill] sm:$0xff] }
  0xfd   : > { %v4691_v51 = vpop.permute.xlu1 %991  ;;  %v4693_v26 = vpop.permute.xlu0 %989 }
  0xff   : > { %1295 = vrot.lane.b32.xlu1 %v6036_v57, %s3871_s17  ;;  %1293 = vrot.lane.b32.xlu0 %v6037_v15, %s3871_s17  ;;  %v4709_v57 = vor.u32 %v1384_v40, %v1380_v22  ;;  %v1510_v15 = vshll.u32 %v6047_v16, 16  ;;  %v1515_v40 = vshrl.u32 %v6046_v49, 16  ;;  %v1508_v22 = vshrl.u32 %v6047_v16, 16 }
 0x101   : > { %v4699_v9 = vpop.permute.xlu1 %995  ;;  %v4701_v23 = vpop.permute.xlu0 %993  ;;  %6043 = vst [vmem:[#allocation76_spill] sm:$0xff] %v4709_v57 }
 0x102   : > { %6038 = vst [vmem:[#allocation11_spill] sm:$0xff] %v4699_v9  ;;  %6039 = vst [vmem:[#allocation14_spill] sm:$0xff] %v4701_v23 }
 0x103   : > { %1311 = vrot.lane.b32.xlu1 %v6040_v10, %s3872_s21  ;;  %1309 = vrot.lane.b32.xlu0 %v6041_v53, %s3872_s21 }
 0x105   : > { %v4711_v42 = vpop.permute.xlu1 %999  ;;  %v4713_v13 = vpop.permute.xlu0 %997 }
 0x106   : > { %6044 = vst [vmem:[#allocation77_spill] sm:$0xff] %v4711_v42  ;;  %6045 = vst [vmem:[#allocation78_spill] sm:$0xff] %v4713_v13 }
 0x107   : > { %1407 = vrot.lane.b32.xlu1 %v4707_v41, %s3873_s22  ;;  %1405 = vrot.lane.b32.xlu0 %v4709_v57, %s3873_s22  ;;  %v1512_v41 = vrot.slane %v1510_v15, 1 }
 0x109   : > { %v4721_v10 = vpop.permute.xlu1 %1171  ;;  %v4723_v21 = vpop.permute.xlu0 %1169  ;;  %v4741_v13 = vor.u32 %v1512_v41, %v1508_v22 }
 0x10b   : > { %1423 = vrot.lane.b32.xlu1 %v4359_v43, %s3874_s23  ;;  %1421 = vrot.lane.b32.xlu0 %v4363_v46, %s3874_s23  ;;  %v4739_v43 = vor.u32 %v1519_v60, %v1515_v40  ;;  %6049 = vst [vmem:[#allocation7_spill] sm:$0xff] %v4741_v13 }
 0x10d   : > { %v4731_v57 = vpop.permute.xlu1 %1175  ;;  %v4733_v53 = vpop.permute.xlu0 %1173  ;;  %6048 = vst [vmem:[#allocation6_spill] sm:$0xff] %v4739_v43 }
 0x10f   : > { %1439 = vrot.lane.b32.xlu1 %v4402_v17, %s3875_s28  ;;  %1437 = vrot.lane.b32.xlu0 %v4404_v33, %s3875_s28  ;;  %v3457_v33 = vld [vmem:[%s4040_s16 + $0xc] sm:$0x1] }
 0x111   : > { %v4743_v46 = vpop.permute.xlu1 %1179  ;;  %v4745_v49 = vpop.permute.xlu0 %1177 }
 0x112   : > { %6050 = vst [vmem:[#allocation79_spill] sm:$0xff] %v4745_v49  ;;  %v3458_v49 = vld [vmem:[%s4040_s16 + $0x14] sm:$0x1] }
 0x113   : > { %1535 = vrot.lane.b32.xlu1 %v4739_v43, %s3876_s29  ;;  %1533 = vrot.lane.b32.xlu0 %v4741_v13, %s3876_s29  ;;  %v4780_v13 = vld [vmem:[%s4040_s16 + $0x8] sm:$0xf] }
 0x115   : > { %v4751_v15 = vpop.permute.xlu1 %1183  ;;  %v4753_v35 = vpop.permute.xlu0 %1181 }
 0x116   : > { %6051 = vst [vmem:[#allocation80_spill] sm:$0xff] %v4751_v15  ;;  %6052 = vst [vmem:[#allocation81_spill] sm:$0xff] %v4753_v35  ;;  %v4791_v35 = vcombine.low %v4780_v13, %v3457_v33  ;;  %v3814_v15 = vld [vmem:[%s3966_s11] sm:$0xf] }
 0x117   : > { %2136 = vrot.lane.b32.xlu1 %v4238_v30, %s3869_s12  ;;  %2134 = vrot.lane.b32.xlu0 %v4244_v31, %s3869_s12  ;;  %v1004_v23 = vsel %vm1001_vm1, %v3814_v15, %v4384_v50  ;;  %v3815_v15 = vld [vmem:[%s3944_s8 + $0x8] sm:$0xf] }
 0x119   : > { %v1268_v41 = vpop.permute.xlu1 %1267  ;;  %v1266_v16 = vpop.permute.xlu0 %1265 }
 0x11b   : > { %1734 = vrot.lane.b32.xlu1 %v4152_v55, %s3869_s12  ;;  %2150 = vrot.lane.b32.xlu0 %v4494_v6, %s3870_s13 }
 0x11d   : > { %v4763_v40 = vpop.permute.xlu1 %1271  ;;  %v4765_v60 = vpop.permute.xlu0 %1269 }
 0x11f   : > { %2166 = vrot.lane.b32.xlu1 %v4321_v29, %s3871_s17  ;;  %2152 = vrot.lane.b32.xlu0 %v4492_v4, %s3870_s13 }
 0x121   : > { %v1284_v22 = vpop.permute.xlu1 %1283  ;;  %v1282_v43 = vpop.permute.xlu0 %1281 }
 0x123   : > { %1750 = vrot.lane.b32.xlu1 %v4244_v31, %s3870_s13  ;;  %1736 = vrot.lane.b32.xlu0 %v4148_v54, %s3869_s12  ;;  %v6053_v54 = vld [vmem:[#allocation24_spill] sm:$0xff]  ;;  %v3813_v31 = vld [vmem:[%s3966_s11 + $0x8] sm:$0xf] }
 0x124   : > { %v1007_v42 = vsel %vm1001_vm1, %v3813_v31, %v4396_v37  ;;  %v1028_v37 = vsel %vm1026_vm2, %v1004_v23, %v4430_v45  ;;  %v3489_v31 = vld [vmem:[%s4084_s20 + $0xc] sm:$0x1]  ;;  %v4818_v23 = vcombine.low %v3449_v11, %v3449_v11 }
 0x125   : > { %v1300_v55 = vpop.permute.xlu1 %1299  ;;  %v1298_v6 = vpop.permute.xlu0 %1297  ;;  %v1045_v50 = vsel %vm1043_vm3, %v1028_v37, %v4466_v20 }
 0x127   : > { %2182 = vrot.lane.b32.xlu1 %v4372_v34, %s3872_s21  ;;  %2168 = vrot.lane.b32.xlu0 %v4317_v63, %s3871_s17 }
 0x129   : > { %v1396_v17 = vpop.permute.xlu1 %1395  ;;  %v1394_v4 = vpop.permute.xlu0 %1393 }
 0x12b   : > { %1766 = vrot.lane.b32.xlu1 %v6053_v54, %s3871_s17  ;;  %1752 = vrot.lane.b32.xlu0 %v4238_v30, %s3870_s13  ;;  %v1030_v54 = vsel %vm1026_vm2, %v1007_v42, %v4428_v25  ;;  %v1542_v25 = vsel %vm1001_vm1, %v3815_v15, %v4721_v10  ;;  %v3816_v42 = vld [vmem:[%s3944_s8] sm:$0xf] }
 0x12c   : > { %v1047_v33 = vsel %vm1043_vm3, %v1030_v54, %v4464_v18  ;;  %v1539_v45 = vsel %vm1001_vm1, %v3816_v42, %v4723_v21  ;;  %v1564_v18 = vsel %vm1026_vm2, %v1542_v25, %v1268_v41  ;;  %v1921_v54 = vshll.u32 %v4791_v35, 16 }
 0x12d   : > { %v1412_v30 = vpop.permute.xlu1 %1411  ;;  %v1410_v9 = vpop.permute.xlu0 %1409  ;;  %v1562_v20 = vsel %vm1026_vm2, %v1539_v45, %v1266_v16  ;;  %v1580_v10 = vsel %vm1043_vm3, %v1564_v18, %v1284_v22  ;;  %v4823_v42 = vcombine.low %v3449_v11, %v3489_v31  ;;  %v1064_v41 = vsel %vm1060_vm4, %v1047_v33, %v4509_v0  ;;  %v6054_v31 = vld [vmem:[#allocation23_spill] sm:$0xff] }
 0x12e   : > { %v1578_v37 = vsel %vm1043_vm3, %v1562_v20, %v1282_v43  ;;  %v1596_v16 = vsel %vm1060_vm4, %v1580_v10, %v1300_v55  ;;  %v1062_v22 = vsel %vm1060_vm4, %v1045_v50, %v4511_v62  ;;  %v1919_v0 = vshrl.u32 %v4791_v35, 16  ;;  %v3450_v10 = vld [vmem:[%s4084_s20 + $0x10] sm:$0xf] }
 0x12f   : > { %2198 = vrot.lane.b32.xlu1 %v4532_v39, %s3873_s22  ;;  %2184 = vrot.lane.b32.xlu0 %v4370_v47, %s3872_s21  ;;  %v4826_v39 = vld [vmem:[%s4040_s16 + $0x10] sm:$0xf]  ;;  %v1594_v25 = vsel %vm1060_vm4, %v1578_v37, %v1298_v6  ;;  %v1612_v43 = vsel %vm1077_vm5, %v1596_v16, %v1396_v17  ;;  %v1923_v33 = vrot.slane %v1921_v54, 1  ;;  %v1081_v17 = vsel %vm1077_vm5, %v1064_v41, %v4551_v48 }
 0x130   : > { %v1610_v11 = vsel %vm1077_vm5, %v1594_v25, %v1394_v4  ;;  %v1628_v55 = vsel %vm1094_vm6, %v1612_v43, %v1412_v30  ;;  %v3482_v45 = vcombine.low %v4826_v39, %v3458_v49  ;;  %v1079_v62 = vsel %vm1077_vm5, %v1062_v22, %v4553_v14 }
 0x131   : > { %v1428_v15 = vpop.permute.xlu1 %1427  ;;  %v1426_v21 = vpop.permute.xlu0 %1425  ;;  %v1626_v6 = vsel %vm1094_vm6, %v1610_v11, %v1410_v9  ;;  %v1098_v30 = vsel %vm1094_vm6, %v1081_v17, %v4601_v38  ;;  %v1096_v9 = vsel %vm1094_vm6, %v1079_v62, %v4603_v2  ;;  %v3465_v43 = vcombine.low %v4780_v13, %v4780_v13 }
 0x132   : > { %v1642_v4 = vsel %vm1111_vm7, %v1626_v6, %v1426_v21  ;;  %v1115_v14 = vsel %vm1111_vm7, %v1098_v30, %v4639_v7  ;;  %v1113_v18 = vsel %vm1111_vm7, %v1096_v9, %v4641_v36  ;;  %v2273_v21 = vshll.u32 %v4823_v42, 16  ;;  %v3819_v30 = vld [vmem:[%s3966_s11 + $0x10] sm:$0xf] }
 0x133   : > { %1782 = vrot.lane.b32.xlu1 %v4321_v29, %s3872_s21  ;;  %1768 = vrot.lane.b32.xlu0 %v6054_v31, %s3871_s17  ;;  %v1644_v29 = vsel %vm1111_vm7, %v1628_v55, %v1428_v15  ;;  %v1132_v38 = vsel %vm1128_vm8, %v1115_v14, %v4685_v59  ;;  %v1130_v2 = vsel %vm1128_vm8, %v1113_v18, %v4687_v12  ;;  %v3490_v12 = vld [vmem:[%s4084_s20 + $0x14] sm:$0x1]  ;;  %v1928_v41 = vshll.u32 %v3482_v45, 16 }
 0x134   : > { %v4879_v59 = vcombine.low %v3450_v10, %v3450_v10  ;;  %v3498_v22 = vcombine.low %v3450_v10, %v3490_v12  ;;  %v1926_v11 = vshrl.u32 %v3482_v45, 16  ;;  %v3817_v45 = vld [vmem:[%s3944_s8 + $0x18] sm:$0xf]  ;;  %v1010_v9 = vsel %vm1001_vm1, %v3819_v30, %v4382_v58  ;;  %v6063_v30 = vld [vmem:[#allocation8_spill] sm:$0xff] }
 0x135   : > { %v1524_v50 = vpop.permute.xlu1 %1523  ;;  %v1522_v35 = vpop.permute.xlu0 %1521  ;;  %v1930_v31 = vrot.slane %v1928_v41, 1  ;;  %v1032_v14 = vsel %vm1026_vm2, %v1010_v9, %v4440_v5  ;;  %v3823_v9 = vld [vmem:[%s3966_s11 + $0x28] sm:$0xf] }
 0x136   : > { %v1660_v49 = vsel %vm1128_vm8, %v1644_v29, %v1524_v50  ;;  %v1658_v48 = vsel %vm1128_vm8, %v1642_v4, %v1522_v35  ;;  %v1548_v29 = vsel %vm1001_vm1, %v3817_v45, %v4731_v57  ;;  %v3818_v4 = vld [vmem:[%s3944_s8 + $0x10] sm:$0xf] }
 0x137   : > { %v1682_v20 = vrot.slane %v1660_v49, 4  ;;  %v1681_v54 = vrot.slane %v1658_v48, 4  ;;  %2214 = vrot.lane.b32.xlu1 %v4818_v23, %s3874_s23  ;;  %2200 = vrot.lane.b32.xlu0 %v4530_v24, %s3873_s22  ;;  %v4877_v24 = vor.u32 %v1923_v33, %v1919_v0  ;;  %v4894_v6 = vor.u32 %v1930_v31, %v1926_v11 }
 0x138   : > { %v2280_v33 = vshll.u32 %v3498_v22, 16  ;;  %v1545_v50 = vsel %vm1001_vm1, %v3818_v4, %v4733_v53  ;;  %v1568_v57 = vsel %vm1026_vm2, %v1548_v29, %v4763_v40  ;;  %v1049_v40 = vsel %vm1043_vm3, %v1032_v14, %v4472_v32  ;;  %v3821_v4 = vld [vmem:[%s3944_s8 + $0x28] sm:$0xf] }
 0x139   : > { %v1288_v7 = vpop.permute.xlu1 %1287  ;;  %v1286_v37 = vpop.permute.xlu0 %1285  ;;  %v1691_v36 = vsel %vm1689_vm9, %v1130_v2, %v1681_v54  ;;  %v1693_v15 = vsel %vm1689_vm9, %v1132_v38, %v1682_v20  ;;  %v1566_v53 = vsel %vm1026_vm2, %v1545_v50, %v4765_v60  ;;  %v1066_v32 = vsel %vm1060_vm4, %v1049_v40, %v4523_v3 }
 0x13a   : > { %3617 = vmatprep.mubr.msk.bf16.mxu0 %vm2530_vm10, %v1691_v36  ;;  %v2282_v35 = vrot.slane %v2280_v33, 1  ;;  %v1584_v18 = vsel %vm1043_vm3, %v1568_v57, %v1288_v7  ;;  %v1582_v58 = vsel %vm1043_vm3, %v1566_v53, %v1286_v37  ;;  %v1083_v36 = vsel %vm1077_vm5, %v1066_v32, %v4567_v44  ;;  %v6055_v44 = vld [vmem:[#allocation4_spill] sm:$0xff] }
 0x13b   : > { %1798 = vrot.lane.b32.xlu1 %v4372_v34, %s3873_s22  ;;  %1784 = vrot.lane.b32.xlu0 %v4317_v63, %s3872_s21  ;;  %v2271_v63 = vshrl.u32 %v4823_v42, 16  ;;  %v2275_v34 = vrot.slane %v2273_v21, 1  ;;  %v3466_v42 = vcombine.low %v4826_v39, %v4826_v39  ;;  %v3820_v39 = vld [vmem:[%s3966_s11 + $0x18] sm:$0xf]  ;;  %v1100_v3 = vsel %vm1094_vm6, %v1083_v36, %v4613_v27  ;;  %v6069_v32 = vld [vmem:[#allocation52_spill] sm:$0xff]  ;;  %v6070_v36 = vld [vmem:[#allocation38_spill] sm:$0xff] }
 0x13c   : > { %3618 = vmatmul.mubr.msk.bf16.vlgmr.msra.gmra.mrb[0].mxu0 %vm2530_vm10, %v1693_v15  ;;  %v1013_v49 = vsel %vm1001_vm1, %v3820_v39, %v4394_v19  ;;  %v1554_v50 = vsel %vm1001_vm1, %v3821_v4, %v4743_v46  ;;  %v6064_v39 = vld [vmem:[#allocation43_spill] sm:$0xff]  ;;  %v6065_v46 = vld [vmem:[#allocation44_spill] sm:$0xff] }
 0x13d   : > { %v1304_v16 = vpop.permute.xlu1 %1303  ;;  %v1302_v25 = vpop.permute.xlu0 %1301  ;;  %v2276_v13 = vor.u32 %v2275_v34, %v2271_v63  ;;  %v1034_v48 = vsel %vm1026_vm2, %v1013_v49, %v4438_v52  ;;  %v6056_v63 = vld [vmem:[#allocation18_spill] sm:$0xff]  ;;  %v1019_v49 = vsel %vm1001_vm1, %v3823_v9, %v6064_v39  ;;  %v6084_v39 = vld [vmem:[#allocation37_spill] sm:$0xff] }
 0x13e   : > { %v1051_v19 = vsel %vm1043_vm3, %v1034_v48, %v4470_v56  ;;  %v1600_v60 = vsel %vm1060_vm4, %v1584_v18, %v1304_v16  ;;  %v1598_v38 = vsel %vm1060_vm4, %v1582_v58, %v1302_v25  ;;  %v1117_v25 = vsel %vm1111_vm7, %v1100_v3, %v6055_v44  ;;  %v3824_v48 = vld [vmem:[%s3966_s11 + $0x20] sm:$0xf]  ;;  %v6066_v18 = vld [vmem:[#allocation47_spill] sm:$0xff] }
 0x13f   : > { %2230 = vrot.lane.b32.xlu1 %v4877_v24, %s3875_s28  ;;  %2216 = vrot.lane.b32.xlu0 %v4879_v59, %s3874_s23  ;;  %v1068_v56 = vsel %vm1060_vm4, %v1051_v19, %v4521_v1  ;;  %v1134_v27 = vsel %vm1128_vm8, %v1117_v25, %v4693_v26  ;;  %v1016_v14 = vsel %vm1001_vm1, %v3824_v48, %v6065_v46  ;;  %v6075_v44 = vld [vmem:[#allocation62_spill] sm:$0xff]  ;;  %v6085_v46 = vld [vmem:[#allocation25_spill] sm:$0xff] }
 0x140   : > { %v1085_v37 = vsel %vm1077_vm5, %v1068_v56, %v4565_v28  ;;  %v1038_v58 = vsel %vm1026_vm2, %v1019_v49, %v6066_v18  ;;  %v3491_v18 = vld [vmem:[%s4084_s20 + $0x1c] sm:$0x1] }
 0x141   : > { %v1400_v0 = vpop.permute.xlu1 %1399  ;;  %v1398_v55 = vpop.permute.xlu0 %1397  ;;  %v1102_v1 = vsel %vm1094_vm6, %v1085_v37, %v4611_v8 }
 0x142   : > { %v1616_v52 = vsel %vm1077_vm5, %v1600_v60, %v1400_v0  ;;  %v1614_v5 = vsel %vm1077_vm5, %v1598_v38, %v1398_v55  ;;  %v1119_v28 = vsel %vm1111_vm7, %v1102_v1, %v4651_v61  ;;  %v6057_v0 = vld [vmem:[#allocation60_spill] sm:$0xff]  ;;  %v6058_v55 = vld [vmem:[#allocation17_spill] sm:$0xff] }
 0x143   : > { %1838 = vrot.lane.b32.xlu1 %v3465_v43, %s3874_s23  ;;  %1800 = vrot.lane.b32.xlu0 %v4370_v47, %s3873_s22  ;;  %v2278_v47 = vshrl.u32 %v3498_v22, 16  ;;  %v1136_v8 = vsel %vm1128_vm8, %v1119_v28, %v4691_v51  ;;  %v6067_v60 = vld [vmem:[#allocation48_spill] sm:$0xff] }
 0x144   : > { %v1036_v38 = vsel %vm1026_vm2, %v1016_v14, %v6067_v60 }
 0x145   : > { %v1416_v17 = vpop.permute.xlu1 %1415  ;;  %v1414_v62 = vpop.permute.xlu0 %1413  ;;  %v2283_v2 = vor.u32 %v2282_v35, %v2278_v47  ;;  %v3822_v47 = vld [vmem:[%s3944_s8 + $0x20] sm:$0xf] }
 0x146   : > { %v1632_v10 = vsel %vm1094_vm6, %v1616_v52, %v1416_v17  ;;  %v1630_v7 = vsel %vm1094_vm6, %v1614_v5, %v1414_v62  ;;  %v6060_v62 = vld [vmem:[#allocation32_spill] sm:$0xff]  ;;  %v6068_v52 = vld [vmem:[#allocation51_spill] sm:$0xff] }
 0x147   : > { %2326 = vrot.lane.b32.xlu1 %v2276_v13, %s3876_s29  ;;  %2232 = vrot.lane.b32.xlu0 %v4894_v6, %s3875_s28  ;;  %v1055_v5 = vsel %vm1043_vm3, %v1038_v58, %v6068_v52 }
 0x149   : > { %v1432_v20 = vpop.permute.xlu1 %1431  ;;  %v1430_v54 = vpop.permute.xlu0 %1429 }
 0x14a   : > { %v1646_v15 = vsel %vm1111_vm7, %v1630_v7, %v1430_v54 }
 0x14b   : > { %1878 = vrot.lane.b32.xlu1 %v4818_v23, %s3875_s28  ;;  %1840 = vrot.lane.b32.xlu0 %v3466_v42, %s3874_s23  ;;  %v1648_v23 = vsel %vm1111_vm7, %v1632_v10, %v1432_v20  ;;  %v6061_v42 = vld [vmem:[#allocation59_spill] sm:$0xff]  ;;  %v1053_v10 = vsel %vm1043_vm3, %v1036_v38, %v6069_v32 }
 0x14d   : > { %v1528_v12 = vpop.permute.xlu1 %1527  ;;  %v1526_v21 = vpop.permute.xlu0 %1525 }
 0x14e   : > { %v1664_v41 = vsel %vm1128_vm8, %v1648_v23, %v1528_v12  ;;  %v1662_v16 = vsel %vm1128_vm8, %v1646_v15, %v1526_v21  ;;  %v6071_v23 = vld [vmem:[#allocation31_spill] sm:$0xff]  ;;  %v6073_v21 = vld [vmem:[#allocation56_spill] sm:$0xff] }
 0x14f   : > { %v1684_v22 = vrot.slane %v1664_v41, 4  ;;  %v1683_v43 = vrot.slane %v1662_v16, 4  ;;  %2328 = vrot.lane.b32.xlu1 %v2283_v2, %s3876_s29  ;;  %2138 = vrot.lane.b32.xlu0 %v6056_v63, %s3869_s12  ;;  %v6072_v15 = vld [vmem:[#allocation55_spill] sm:$0xff]  ;;  %v1070_v1 = vsel %vm1060_vm4, %v1053_v10, %v6073_v21  ;;  %v6074_v16 = vld [vmem:[#allocation61_spill] sm:$0xff] }
 0x150   : > { %v1072_v12 = vsel %vm1060_vm4, %v1055_v5, %v6072_v15  ;;  %v1087_v25 = vsel %vm1077_vm5, %v1070_v1, %v6075_v44  ;;  %v3492_v15 = vld [vmem:[%s4084_s20 + $0x24] sm:$0x1]  ;;  %v3825_v21 = vld [vmem:[%s3966_s11 + $0x38] sm:$0xf] }
 0x151   : > { %v1276_v34 = vpop.permute.xlu1 %1275  ;;  %v1274_v11 = vpop.permute.xlu0 %1273  ;;  %v1695_v61 = vsel %vm1689_vm9, %v1134_v27, %v1683_v43  ;;  %v1697_v31 = vsel %vm1689_vm9, %v1136_v8, %v1684_v22  ;;  %v1089_v28 = vsel %vm1077_vm5, %v1072_v12, %v6074_v16  ;;  %v6076_v27 = vld [vmem:[#allocation10_spill] sm:$0xff]  ;;  %v6087_v1 = vld [vmem:[#allocation45_spill] sm:$0xff] }
 0x152   : > { %3621 = vmatprep.mubr.msk.bf16.mxu0 %vm2530_vm10, %v1695_v61  ;;  %v1572_v57 = vsel %vm1026_vm2, %v1554_v50, %v1276_v34  ;;  %v1106_v34 = vsel %vm1094_vm6, %v1089_v28, %v6076_v27  ;;  %v5050_v50 = vld [vmem:[%s4040_s16 + $0x18] sm:$0xf]  ;;  %v6088_v16 = vld [vmem:[#allocation46_spill] sm:$0xff] }
 0x153   : > { %1974 = vrot.lane.b32.xlu1 %v4877_v24, %s3876_s29  ;;  %1880 = vrot.lane.b32.xlu0 %v4879_v59, %s3875_s28  ;;  %v6059_v24 = vld [vmem:[#allocation9_spill] sm:$0xff] }
 0x154   : > { %3622 = vmatmul.mubr.msk.bf16.gmra.mrb[4].mxu0 %vm2530_vm10, %v1697_v31 }
 0x155   : > { %v1292_v51 = vpop.permute.xlu1 %1291  ;;  %v1290_v26 = vpop.permute.xlu0 %1289 }
 0x156   : > { %v1588_v20 = vsel %vm1043_vm3, %v1572_v57, %v1292_v51  ;;  %v3451_v57 = vld [vmem:[%s4084_s20 + $0x18] sm:$0xf] }
 0x157   : > { %2154 = vrot.lane.b32.xlu1 %v6057_v0, %s3870_s13  ;;  %2140 = vrot.lane.b32.xlu0 %v6058_v55, %s3869_s12  ;;  %v5067_v14 = vcombine.low %v3451_v57, %v3451_v57  ;;  %v3499_v60 = vcombine.low %v3451_v57, %v3491_v18 }
 0x159   : > { %v1308_v13 = vpop.permute.xlu1 %1307  ;;  %v1306_v33 = vpop.permute.xlu0 %1305  ;;  %v2287_v10 = vshll.u32 %v3499_v60, 16  ;;  %v2285_v27 = vshrl.u32 %v3499_v60, 16 }
 0x15a   : > { %v1604_v2 = vsel %vm1060_vm4, %v1588_v20, %v1308_v13  ;;  %v6079_v13 = vld [vmem:[#allocation2_spill] sm:$0xff] }
 0x15b   : > { %1976 = vrot.lane.b32.xlu1 %v4894_v6, %s3876_s29  ;;  %1738 = vrot.lane.b32.xlu0 %v6059_v24, %s3869_s12  ;;  %v6062_v6 = vld [vmem:[#allocation79_spill] sm:$0xff]  ;;  %v5071_v20 = vld [vmem:[%s4040_s16 + $0x20] sm:$0xf] }
 0x15c   : > { %v1551_v35 = vsel %vm1001_vm1, %v3822_v47, %v6062_v6  ;;  %v3459_v47 = vld [vmem:[%s4040_s16 + $0x1c] sm:$0x1] }
 0x15d   : > { %v1404_v59 = vpop.permute.xlu1 %1403  ;;  %v1402_v17 = vpop.permute.xlu0 %1401  ;;  %v1570_v53 = vsel %vm1026_vm2, %v1551_v35, %v1274_v11  ;;  %v6077_v11 = vld [vmem:[#allocation67_spill] sm:$0xff]  ;;  %v3483_v49 = vcombine.low %v5050_v50, %v3459_v47  ;;  %v6096_v47 = vld [vmem:[#allocation58_spill] sm:$0xff] }
 0x15e   : > { %v1586_v54 = vsel %vm1043_vm3, %v1570_v53, %v1290_v26  ;;  %v1620_v7 = vsel %vm1077_vm5, %v1604_v2, %v1404_v59  ;;  %v1104_v61 = vsel %vm1094_vm6, %v1087_v25, %v6077_v11  ;;  %v6078_v26 = vld [vmem:[#allocation5_spill] sm:$0xff]  ;;  %v3452_v2 = vld [vmem:[%s4084_s20 + $0x20] sm:$0xf] }
 0x15f   : > { %2170 = vrot.lane.b32.xlu1 %v6060_v62, %s3871_s17  ;;  %2156 = vrot.lane.b32.xlu0 %v6061_v42, %s3870_s13  ;;  %v1602_v56 = vsel %vm1060_vm4, %v1586_v54, %v1306_v33  ;;  %v1123_v0 = vsel %vm1111_vm7, %v1106_v34, %v6078_v26  ;;  %v1121_v33 = vsel %vm1111_vm7, %v1104_v61, %v6079_v13  ;;  %v6081_v42 = vld [vmem:[#allocation11_spill] sm:$0xff]  ;;  %v1935_v58 = vshll.u32 %v3483_v49, 16  ;;  %v3460_v54 = vld [vmem:[%s4040_s16 + $0x24] sm:$0x1]  ;;  %v3827_v11 = vld [vmem:[%s3944_s8 + $0x38] sm:$0xf] }
 0x160   : > { %v1618_v37 = vsel %vm1077_vm5, %v1602_v56, %v1402_v17  ;;  %v6080_v17 = vld [vmem:[#allocation26_spill] sm:$0xff]  ;;  %v1933_v38 = vshrl.u32 %v3483_v49, 16  ;;  %v3484_v5 = vcombine.low %v5071_v20, %v3460_v54  ;;  %v2289_v34 = vrot.slane %v2287_v10, 1  ;;  %v6091_v61 = vld [vmem:[#allocation80_spill] sm:$0xff]  ;;  %v6092_v26 = vld [vmem:[#allocation81_spill] sm:$0xff] }
 0x161   : > { %v1420_v45 = vpop.permute.xlu1 %1419  ;;  %v1418_v29 = vpop.permute.xlu0 %1417  ;;  %v1937_v52 = vrot.slane %v1935_v58, 1 }
 0x162   : > { %v1636_v3 = vsel %vm1094_vm6, %v1620_v7, %v1420_v45  ;;  %v1634_v41 = vsel %vm1094_vm6, %v1618_v37, %v1418_v29  ;;  %v1140_v45 = vsel %vm1128_vm8, %v1123_v0, %v6081_v42  ;;  %v6082_v29 = vld [vmem:[#allocation14_spill] sm:$0xff]  ;;  %v5086_v37 = vcombine.low %v3452_v2, %v3452_v2 }
 0x163   : > { %1754 = vrot.lane.b32.xlu1 %v6056_v63, %s3870_s13  ;;  %1740 = vrot.lane.b32.xlu0 %v6063_v30, %s3869_s12  ;;  %v1138_v4 = vsel %vm1128_vm8, %v1121_v33, %v6082_v29  ;;  %v5084_v7 = vor.u32 %v1937_v52, %v1933_v38  ;;  %v1942_v12 = vshll.u32 %v3484_v5, 16  ;;  %v1940_v13 = vshrl.u32 %v3484_v5, 16  ;;  %v6099_v52 = vld [vmem:[#allocation68_spill] sm:$0xff] }
 0x165   : > { %v1436_v19 = vpop.permute.xlu1 %1435  ;;  %v1434_v40 = vpop.permute.xlu0 %1433  ;;  %v1944_v33 = vrot.slane %v1942_v12, 1 }
 0x166   : > { %v1652_v22 = vsel %vm1111_vm7, %v1636_v3, %v1436_v19  ;;  %v1650_v43 = vsel %vm1111_vm7, %v1634_v41, %v1434_v40  ;;  %v1025_v3 = vsel %vm1001_vm1, %v3825_v21, %v6087_v1  ;;  %v3826_v41 = vld [vmem:[%s3966_s11 + $0x30] sm:$0xf]  ;;  %v6102_v1 = vld [vmem:[#allocation74_spill] sm:$0xff] }
 0x167   : > { %2186 = vrot.lane.b32.xlu1 %v6070_v36, %s3872_s21  ;;  %2172 = vrot.lane.b32.xlu0 %v6071_v23, %s3871_s17  ;;  %v1022_v28 = vsel %vm1001_vm1, %v3826_v41, %v6088_v16 }
 0x169   : > { %v1532_v63 = vpop.permute.xlu1 %1531  ;;  %v1530_v8 = vpop.permute.xlu0 %1529 }
 0x16a   : > { %v1668_v31 = vsel %vm1128_vm8, %v1652_v22, %v1532_v63  ;;  %v1666_v51 = vsel %vm1128_vm8, %v1650_v43, %v1530_v8  ;;  %v3500_v63 = vcombine.low %v3452_v2, %v3492_v15  ;;  %v3467_v8 = vcombine.low %v5050_v50, %v5050_v50  ;;  %v6100_v2 = vld [vmem:[#allocation69_spill] sm:$0xff] }
 0x16b   : > { %v1686_v24 = vrot.slane %v1668_v31, 4  ;;  %v1685_v59 = vrot.slane %v1666_v51, 4  ;;  %1770 = vrot.lane.b32.xlu1 %v6080_v17, %s3871_s17  ;;  %1756 = vrot.lane.b32.xlu0 %v6058_v55, %s3870_s13  ;;  %v6083_v55 = vld [vmem:[#allocation66_spill] sm:$0xff]  ;;  %v1560_v31 = vsel %vm1001_vm1, %v3827_v11, %v6091_v61  ;;  %v3828_v51 = vld [vmem:[%s3944_s8 + $0x30] sm:$0xf]  ;;  %s3558_s8 = sshll.u32 %s6138_s24, 6 }
 0x16c   : > { %v1557_v0 = vsel %vm1001_vm1, %v3828_v51, %v6092_v26  ;;  %v6094_v17 = vld [vmem:[#allocation54_spill] sm:$0xff]  ;;  %v6105_v26 = vld [vmem:[#allocation20_spill] sm:$0xff]  ;;  %s5781_s19 = scalar_lea.vmem %s5868_s6, %s3558_s8 }
 0x16d   : > { %v1280_v6 = vpop.permute.xlu1 %1279  ;;  %v1278_v35 = vpop.permute.xlu0 %1277  ;;  %v1699_v30 = vsel %vm1689_vm9, %v1138_v4, %v1685_v59  ;;  %v1701_v9 = vsel %vm1689_vm9, %v1140_v45, %v1686_v24  ;;  %v6093_v24 = vld [vmem:[#allocation53_spill] sm:$0xff] }
 0x16e   : > { %3625 = vmatprep.mubr.msk.bf16.mxu0 %vm2530_vm10, %v1699_v30  ;;  %v1576_v45 = vsel %vm1026_vm2, %v1560_v31, %v1280_v6  ;;  %v1574_v29 = vsel %vm1026_vm2, %v1557_v0, %v1278_v35  ;;  %v6095_v4 = vld [vmem:[#allocation57_spill] sm:$0xff]  ;;  %v2290_v35 = vor.u32 %v2289_v34, %v2285_v27 }
 0x16f   : > { %2202 = vrot.lane.b32.xlu1 %v6083_v55, %s3873_s22  ;;  %2188 = vrot.lane.b32.xlu0 %v6084_v39, %s3872_s21 }
 0x170   : > { %3626 = vmatmul.mubr.msk.bf16.gmra.mrb[8].mxu0 %vm2530_vm10, %v1701_v9 }
 0x171   : > { %v1296_v53 = vpop.permute.xlu1 %1295  ;;  %v1294_v48 = vpop.permute.xlu0 %1293 }
 0x172   : > { %v1592_v9 = vsel %vm1043_vm3, %v1576_v45, %v1296_v53  ;;  %v1590_v55 = vsel %vm1043_vm3, %v1574_v29, %v1294_v48  ;;  %v1945_v53 = vor.u32 %v1944_v33, %v1940_v13  ;;  %v2294_v48 = vshll.u32 %v3500_v63, 16  ;;  %v6109_v29 = vld [vmem:[#allocation34_spill] sm:$0xff] }
 0x173   : > { %1786 = vrot.lane.b32.xlu1 %v6060_v62, %s3872_s21  ;;  %1772 = vrot.lane.b32.xlu0 %v6085_v46, %s3871_s17  ;;  %v6086_v62 = vld [vmem:[#allocation65_spill] sm:$0xff]  ;;  %v6097_v46 = vld [vmem:[#allocation63_spill] sm:$0xff] }
 0x175   : > { %v1312_v19 = vpop.permute.xlu1 %1311  ;;  %v1310_v40 = vpop.permute.xlu0 %1309 }
 0x176   : > { %v1608_v58 = vsel %vm1060_vm4, %v1592_v9, %v1312_v19  ;;  %v1606_v6 = vsel %vm1060_vm4, %v1590_v55, %v1310_v40 }
 0x177   : > { %2218 = vrot.lane.b32.xlu1 %v5067_v14, %s3874_s23  ;;  %2204 = vrot.lane.b32.xlu0 %v6086_v62, %s3873_s22  ;;  %v6098_v62 = vld [vmem:[#allocation64_spill] sm:$0xff] }
 0x179   : > { %v1408_v56 = vpop.permute.xlu1 %1407  ;;  %v1406_v32 = vpop.permute.xlu0 %1405 }
 0x17a   : > { %v1624_v54 = vsel %vm1077_vm5, %v1608_v58, %v1408_v56  ;;  %v1622_v60 = vsel %vm1077_vm5, %v1606_v6, %v1406_v32  ;;  %v6101_v32 = vld [vmem:[#allocation73_spill] sm:$0xff]  ;;  %v6114_v58 = vld [vmem:[#allocation28_spill] sm:$0xff]  ;;  %v5226_v6 = vld [vmem:[%s4040_s16 + $0x28] sm:$0xf] }
 0x17b   : > { %1802 = vrot.lane.b32.xlu1 %v6070_v36, %s3873_s22  ;;  %1788 = vrot.lane.b32.xlu0 %v6071_v23, %s3872_s21  ;;  %v6089_v36 = vld [vmem:[#allocation49_spill] sm:$0xff]  ;;  %v6090_v23 = vld [vmem:[#allocation50_spill] sm:$0xff] }
 0x17c   : > { %v1042_v44 = vsel %vm1026_vm2, %v1025_v3, %v6089_v36  ;;  %v1040_v25 = vsel %vm1026_vm2, %v1022_v28, %v6090_v23  ;;  %v3468_v28 = vcombine.low %v5071_v20, %v5071_v20  ;;  %v2292_v23 = vshrl.u32 %v3500_v63, 16 }
 0x17d   : > { %v1424_v22 = vpop.permute.xlu1 %1423  ;;  %v1422_v43 = vpop.permute.xlu0 %1421  ;;  %v1059_v59 = vsel %vm1043_vm3, %v1042_v44, %v6093_v24  ;;  %v1057_v42 = vsel %vm1043_vm3, %v1040_v25, %v6094_v17  ;;  %v2296_v25 = vrot.slane %v2294_v48, 1  ;;  %v6106_v24 = vld [vmem:[#allocation71_spill] sm:$0xff] }
 0x17e   : > { %v1076_v50 = vsel %vm1060_vm4, %v1059_v59, %v6095_v4  ;;  %v1074_v30 = vsel %vm1060_vm4, %v1057_v42, %v6096_v47  ;;  %v1640_v40 = vsel %vm1094_vm6, %v1624_v54, %v1424_v22  ;;  %v1638_v5 = vsel %vm1094_vm6, %v1622_v60, %v1422_v43  ;;  %v6103_v22 = vld [vmem:[#allocation77_spill] sm:$0xff]  ;;  %v6107_v59 = vld [vmem:[#allocation19_spill] sm:$0xff]  ;;  %v6110_v4 = vld [vmem:[#allocation70_spill] sm:$0xff] }
 0x17f   : > { %2234 = vrot.lane.b32.xlu1 %v5084_v7, %s3875_s28  ;;  %2220 = vrot.lane.b32.xlu0 %v5086_v37, %s3874_s23  ;;  %v1093_v18 = vsel %vm1077_vm5, %v1076_v50, %v6097_v46  ;;  %v1091_v38 = vsel %vm1077_vm5, %v1074_v30, %v6098_v62  ;;  %v2297_v63 = vor.u32 %v2296_v25, %v2292_v23  ;;  %v6111_v30 = vld [vmem:[#allocation12_spill] sm:$0xff]  ;;  %v6116_v48 = vld [vmem:[#allocation39_spill] sm:$0xff]  ;;  %v3829_v25 = vld [vmem:[%s4084_s20] sm:$0xf] }
 0x180   : > { %v1110_v19 = vsel %vm1094_vm6, %v1093_v18, %v6099_v52  ;;  %v1108_v56 = vsel %vm1094_vm6, %v1091_v38, %v6100_v2  ;;  %v3453_v38 = vld [vmem:[%s4084_s20 + $0x28] sm:$0xf]  ;;  %v3493_v2 = vld [vmem:[%s4084_s20 + $0x2c] sm:$0x1] }
 0x181   : > { %v1440_v49 = vpop.permute.xlu1 %1439  ;;  %v1438_v57 = vpop.permute.xlu0 %1437  ;;  %v1127_v10 = vsel %vm1111_vm7, %v1110_v19, %v6101_v32  ;;  %v1125_v3 = vsel %vm1111_vm7, %v1108_v56, %v6102_v1  ;;  %v5249_v32 = vld [vmem:[%s4040_s16 + $0x30] sm:$0xf] }
 0x182   : > { %v1654_v15 = vsel %vm1111_vm7, %v1638_v5, %v1438_v57  ;;  %v1144_v43 = vsel %vm1128_vm8, %v1127_v10, %v6103_v22  ;;  %v6113_v57 = vld [vmem:[#allocation33_spill] sm:$0xff]  ;;  %v5245_v5 = vcombine.low %v3453_v38, %v3453_v38  ;;  %v3462_v10 = vld [vmem:[%s4040_s16 + $0x34] sm:$0x1] }
 0x183   : > { %1842 = vrot.lane.b32.xlu1 %v3467_v8, %s3874_s23  ;;  %1804 = vrot.lane.b32.xlu0 %v6084_v39, %s3873_s22  ;;  %v1656_v39 = vsel %vm1111_vm7, %v1640_v40, %v1440_v49  ;;  %v6104_v8 = vld [vmem:[#allocation78_spill] sm:$0xff]  ;;  %v6112_v49 = vld [vmem:[#allocation40_spill] sm:$0xff]  ;;  %v6117_v40 = vld [vmem:[#allocation27_spill] sm:$0xff] }
 0x184   : > { %v1142_v27 = vsel %vm1128_vm8, %v1125_v3, %v6104_v8 }
 0x185   : > { %v1536_v12 = vpop.permute.xlu1 %1535  ;;  %v1534_v21 = vpop.permute.xlu0 %1533 }
 0x186   : > { %v1672_v41 = vsel %vm1128_vm8, %v1656_v39, %v1536_v12  ;;  %v1670_v16 = vsel %vm1128_vm8, %v1654_v15, %v1534_v21  ;;  %v3501_v12 = vcombine.low %v3453_v38, %v3493_v2  ;;  %v6118_v21 = vld [vmem:[#allocation3_spill] sm:$0xff] }
 0x187   : > { %v1688_v36 = vrot.slane %v1672_v41, 4  ;;  %v1687_v44 = vrot.slane %v1670_v16, 4  ;;  %2330 = vrot.lane.b32.xlu1 %v2290_v35, %s3876_s29  ;;  %2236 = vrot.lane.b32.xlu0 %v1945_v53, %s3875_s28  ;;  %v3461_v35 = vld [vmem:[%s4040_s16 + $0x2c] sm:$0x1]  ;;  %v3486_v41 = vcombine.low %v5249_v32, %v3462_v10  ;;  %v3454_v16 = vld [vmem:[%s4084_s20 + $0x30] sm:$0xf] }
 0x188   : > { %v3485_v62 = vcombine.low %v5226_v6, %v3461_v35  ;;  %v2301_v23 = vshll.u32 %v3501_v12, 16  ;;  %v5272_v8 = vcombine.low %v3454_v16, %v3454_v16  ;;  %v3831_v38 = vld [vmem:[%s4084_s20 + $0x8] sm:$0xf] }
 0x189   : > { %v5156_v34 = vpop.permute.xlu1 %2136  ;;  %v5158_v11 = vpop.permute.xlu0 %2134  ;;  %v1703_v20 = vsel %vm1689_vm9, %v1142_v27, %v1687_v44  ;;  %v1705_v61 = vsel %vm1689_vm9, %v1144_v43, %v1688_v36  ;;  %v3494_v44 = vld [vmem:[%s4084_s20 + $0x34] sm:$0x1]  ;;  %v1956_v27 = vshll.u32 %v3486_v41, 16 }
 0x18a   : > { %3629 = vmatprep.mubr.msk.bf16.mxu0 %vm2530_vm10, %v1703_v20  ;;  %v1949_v56 = vshll.u32 %v3485_v62, 16  ;;  %v1947_v1 = vshrl.u32 %v3485_v62, 16  ;;  %v2344_v22 = vsel %vm1001_vm1, %v3829_v25, %v5158_v11  ;;  %v3502_v11 = vcombine.low %v3454_v16, %v3494_v44 }
 0x18b   : > { %1882 = vrot.lane.b32.xlu1 %v5067_v14, %s3875_s28  ;;  %1844 = vrot.lane.b32.xlu0 %v3468_v28, %s3874_s23 }
 0x18c   : > { %3630 = vmatmul.mubr.msk.bf16.gmra.mrb[12].mxu0 %vm2530_vm10, %v1705_v61  ;;  %v1951_v3 = vrot.slane %v1949_v56, 1 }
 0x18d   : > { %v5167_v31 = vpop.permute.xlu1 %1734  ;;  %v5169_v51 = vpop.permute.xlu0 %2150 }
 0x18e   : > { %v5270_v43 = vor.u32 %v1951_v3, %v1947_v1  ;;  %v2367_v20 = vsel %vm1026_vm2, %v2344_v22, %v5169_v51  ;;  %v2306_v1 = vshrl.u32 %v3502_v11, 16 }
 0x18f   : > { %2332 = vrot.lane.b32.xlu1 %v2297_v63, %s3876_s29  ;;  %2142 = vrot.lane.b32.xlu0 %v6105_v26, %s3869_s12 }
 0x191   : > { %v5174_v0 = vpop.permute.xlu1 %2166  ;;  %v5176_v13 = vpop.permute.xlu0 %2152 }
 0x192   : > { %v2383_v61 = vsel %vm1043_vm3, %v2367_v20, %v5174_v0  ;;  %v1954_v0 = vshrl.u32 %v3486_v41, 16 }
 0x193   : > { %1978 = vrot.lane.b32.xlu1 %v5084_v7, %s3876_s29  ;;  %1884 = vrot.lane.b32.xlu0 %v5086_v37, %s3875_s28  ;;  %v6108_v7 = vld [vmem:[#allocation13_spill] sm:$0xff] }
 0x195   : > { %v5182_v14 = vpop.permute.xlu1 %1750  ;;  %v5184_v33 = vpop.permute.xlu0 %1736 }
 0x197   : > { %2158 = vrot.lane.b32.xlu1 %v6106_v24, %s3870_s13  ;;  %2144 = vrot.lane.b32.xlu0 %v6107_v59, %s3869_s12 }
 0x199   : > { %v5190_v17 = vpop.permute.xlu1 %2182  ;;  %v5192_v42 = vpop.permute.xlu0 %2168 }
 0x19a   : > { %v2399_v24 = vsel %vm1060_vm4, %v2383_v61, %v5190_v17  ;;  %v1958_v17 = vrot.slane %v1956_v27, 1 }
 0x19b   : > { %1980 = vrot.lane.b32.xlu1 %v1945_v53, %s3876_s29  ;;  %1742 = vrot.lane.b32.xlu0 %v6108_v7, %s3869_s12  ;;  %v6115_v53 = vld [vmem:[#allocation72_spill] sm:$0xff]  ;;  %v2299_v7 = vshrl.u32 %v3501_v12, 16 }
 0x19d   : > { %v5197_v37 = vpop.permute.xlu1 %1766  ;;  %v5199_v45 = vpop.permute.xlu0 %1752 }
 0x19f   : > { %2174 = vrot.lane.b32.xlu1 %v6109_v29, %s3871_s17  ;;  %2160 = vrot.lane.b32.xlu0 %v6110_v4, %s3870_s13  ;;  %v3830_v4 = vld [vmem:[%s4040_s16] sm:$0xf] }
 0x1a1   : > { %v2199_v50 = vpop.permute.xlu1 %2198  ;;  %v5205_v47 = vpop.permute.xlu0 %2184 }
 0x1a2   : > { %v2415_v51 = vsel %vm1077_vm5, %v2399_v24, %v2199_v50  ;;  %v6121_v24 = vld [vmem:[#allocation21_spill] sm:$0xff] }
 0x1a3   : > { %1758 = vrot.lane.b32.xlu1 %v6105_v26, %s3870_s13  ;;  %1744 = vrot.lane.b32.xlu0 %v6111_v30, %s3869_s12  ;;  %v1992_v30 = vsel %vm1001_vm1, %v3830_v4, %v5167_v31  ;;  %v6123_v4 = vld [vmem:[#allocation36_spill] sm:$0xff] }
 0x1a5   : > { %v5211_v9 = vpop.permute.xlu1 %1782  ;;  %v5213_v55 = vpop.permute.xlu0 %1768 }
 0x1a7   : > { %2190 = vrot.lane.b32.xlu1 %v6112_v49, %s3872_s21  ;;  %2176 = vrot.lane.b32.xlu0 %v6113_v57, %s3871_s17 }
 0x1a9   : > { %v2215_v46 = vpop.permute.xlu1 %2214  ;;  %v5219_v18 = vpop.permute.xlu0 %2200 }
 0x1ab   : > { %1774 = vrot.lane.b32.xlu1 %v6114_v58, %s3871_s17  ;;  %1760 = vrot.lane.b32.xlu0 %v6107_v59, %s3870_s13  ;;  %v3469_v59 = vcombine.low %v5226_v6, %v5226_v6 }
 0x1ad   : > { %v5229_v54 = vpop.permute.xlu1 %1798  ;;  %v5231_v60 = vpop.permute.xlu0 %1784 }
 0x1af   : > { %2206 = vrot.lane.b32.xlu1 %v6115_v53, %s3873_s22  ;;  %2192 = vrot.lane.b32.xlu0 %v6116_v48, %s3872_s21 }
 0x1b1   : > { %v2231_v52 = vpop.permute.xlu1 %2230  ;;  %v5239_v19 = vpop.permute.xlu0 %2216 }
 0x1b3   : > { %1790 = vrot.lane.b32.xlu1 %v6109_v29, %s3872_s21  ;;  %1776 = vrot.lane.b32.xlu0 %v6117_v40, %s3871_s17  ;;  %v2303_v29 = vrot.slane %v2301_v23, 1 }
 0x1b5   : > { %v1839_v39 = vpop.permute.xlu1 %1838  ;;  %v5252_v15 = vpop.permute.xlu0 %1800  ;;  %v2304_v62 = vor.u32 %v2303_v29, %v2299_v7 }
 0x1b7   : > { %2222 = vrot.lane.b32.xlu1 %v5245_v5, %s3874_s23  ;;  %2208 = vrot.lane.b32.xlu0 %v6118_v21, %s3873_s22  ;;  %v3470_v21 = vcombine.low %v5249_v32, %v5249_v32 }
 0x1b9   : > { %v2327_v28 = vpop.permute.xlu1 %2326  ;;  %v5260_v36 = vpop.permute.xlu0 %2232 }
 0x1bb   : > { %1806 = vrot.lane.b32.xlu1 %v6112_v49, %s3873_s22  ;;  %1792 = vrot.lane.b32.xlu0 %v6113_v57, %s3872_s21  ;;  %v2015_v49 = vsel %vm1026_vm2, %v1992_v30, %v5182_v14  ;;  %v2431_v57 = vsel %vm1094_vm6, %v2415_v51, %v2215_v46  ;;  %v2347_v14 = vsel %vm1001_vm1, %v3831_v38, %v5156_v34  ;;  %v6124_v30 = vld [vmem:[#allocation75_spill] sm:$0xff]  ;;  %v3463_v38 = vld [vmem:[%s4040_s16 + $0x3c] sm:$0x1] }
 0x1bc   : > { %v2031_v58 = vsel %vm1043_vm3, %v2015_v49, %v5197_v37  ;;  %v2447_v31 = vsel %vm1111_vm7, %v2431_v57, %v2231_v52  ;;  %v1959_v37 = vor.u32 %v1958_v17, %v1954_v0  ;;  %v2308_v52 = vshll.u32 %v3502_v11, 16  ;;  %v6120_v11 = vld [vmem:[#allocation76_spill] sm:$0xff]  ;;  %v6125_v17 = vld [vmem:[#allocation15_spill] sm:$0xff] }
 0x1bd   : > { %v1879_v63 = vpop.permute.xlu1 %1878  ;;  %v1841_v26 = vpop.permute.xlu0 %1840  ;;  %v2047_v35 = vsel %vm1060_vm4, %v2031_v58, %v5211_v9  ;;  %v2463_v53 = vsel %vm1128_vm8, %v2447_v31, %v2327_v28  ;;  %v2369_v9 = vsel %vm1026_vm2, %v2347_v14, %v5176_v13  ;;  %v3832_v13 = vld [vmem:[%s4040_s16 + $0x8] sm:$0xf]  ;;  %v6126_v58 = vld [vmem:[#allocation42_spill] sm:$0xff] }
 0x1be   : > { %v2063_v46 = vsel %vm1077_vm5, %v2047_v35, %v5229_v54  ;;  %v2385_v2 = vsel %vm1043_vm3, %v2369_v9, %v5192_v42  ;;  %v2486_v34 = vrot.slane %v2463_v53, 4  ;;  %v6127_v31 = vld [vmem:[#allocation35_spill] sm:$0xff]  ;;  %v6128_v53 = vld [vmem:[#allocation30_spill] sm:$0xff] }
 0x1bf   : > { %2238 = vrot.lane.b32.xlu1 %v5270_v43, %s3875_s28  ;;  %2224 = vrot.lane.b32.xlu0 %v5272_v8, %s3874_s23  ;;  %v2079_v40 = vsel %vm1094_vm6, %v2063_v46, %v1839_v39  ;;  %v2401_v12 = vsel %vm1060_vm4, %v2385_v2, %v5205_v47  ;;  %v1995_v39 = vsel %vm1001_vm1, %v3832_v13, %v5184_v33  ;;  %v2310_v47 = vrot.slane %v2308_v52, 1  ;;  %v6130_v52 = vld [vmem:[#allocation41_spill] sm:$0xff] }
 0x1c0   : > { %v2095_v56 = vsel %vm1111_vm7, %v2079_v40, %v1879_v63  ;;  %v2417_v42 = vsel %vm1077_vm5, %v2401_v12, %v5219_v18  ;;  %v2017_v41 = vsel %vm1026_vm2, %v1995_v39, %v5199_v45  ;;  %v3455_v40 = vld [vmem:[%s4084_s20 + $0x38] sm:$0xf] }
 0x1c1   : > { %v2329_v6 = vpop.permute.xlu1 %2328  ;;  %v5296_v50 = vpop.permute.xlu0 %2138  ;;  %v2433_v32 = vsel %vm1094_vm6, %v2417_v42, %v5239_v19  ;;  %v2033_v33 = vsel %vm1043_vm3, %v2017_v41, %v5213_v55  ;;  %v2311_v55 = vor.u32 %v2310_v47, %v2306_v1  ;;  %v6132_v42 = vld [vmem:[#allocation6_spill] sm:$0xff] }
 0x1c2   : > { %v2449_v18 = vsel %vm1111_vm7, %v2433_v32, %v5260_v36  ;;  %v2049_v44 = vsel %vm1060_vm4, %v2033_v33, %v5231_v60  ;;  %v3456_v32 = vld [vmem:[%s4084_s20 + $0x40] sm:$0xf] }
 0x1c3   : > { %1846 = vrot.lane.b32.xlu1 %v3469_v59, %s3874_s23  ;;  %1808 = vrot.lane.b32.xlu0 %v6116_v48, %s3873_s22  ;;  %v2465_v45 = vsel %vm1128_vm8, %v2449_v18, %v2329_v6  ;;  %v2065_v19 = vsel %vm1077_vm5, %v2049_v44, %v5252_v15  ;;  %v6119_v15 = vld [vmem:[#allocation22_spill] sm:$0xff] }
 0x1c4   : > { %v2081_v36 = vsel %vm1094_vm6, %v2065_v19, %v1841_v26  ;;  %v2487_v23 = vrot.slane %v2465_v45, 4  ;;  %v3496_v44 = vld [vmem:[%s4084_s20 + $0x44] sm:$0x1]  ;;  %v3833_v19 = vld [vmem:[%s4084_s20 + $0x10] sm:$0xf] }
 0x1c5   : > { %v1975_v54 = vpop.permute.xlu1 %1974  ;;  %v1881_v10 = vpop.permute.xlu0 %1880 }
 0x1c6   : > { %v2111_v48 = vsel %vm1128_vm8, %v2095_v56, %v1975_v54  ;;  %v2097_v25 = vsel %vm1111_vm7, %v2081_v36, %v1881_v10  ;;  %v6131_v56 = vld [vmem:[#allocation29_spill] sm:$0xff]  ;;  %v5430_v54 = vcombine.low %v3455_v40, %v3455_v40 }
 0x1c7   : > { %2334 = vrot.lane.b32.xlu1 %v2304_v62, %s3876_s29  ;;  %2240 = vrot.lane.b32.xlu0 %v1959_v37, %s3875_s28  ;;  %v2495_v3 = vsel %vm1689_vm9, %v2111_v48, %v2486_v34  ;;  %v5411_v62 = vld [vmem:[%s4040_s16 + $0x38] sm:$0xf]  ;;  %v3495_v10 = vld [vmem:[%s4084_s20 + $0x3c] sm:$0x1] }
 0x1c8   : > { %3633 = vmatprep.mubr.msk.bf16.mxu1 %vm2530_vm10, %v2495_v3  ;;  %v3487_v9 = vcombine.low %v5411_v62, %v3463_v38  ;;  %v5434_v48 = vld [vmem:[%s4040_s16 + $0x40] sm:$0xf]  ;;  %v3503_v39 = vcombine.low %v3455_v40, %v3495_v10  ;;  %v3835_v40 = vld [vmem:[%s4084_s20 + $0x18] sm:$0xf] }
 0x1c9   : > { %v5337_v16 = vpop.permute.xlu1 %2154  ;;  %v5339_v28 = vpop.permute.xlu0 %2140 }
 0x1ca   : > { %v1963_v12 = vshll.u32 %v3487_v9, 16  ;;  %v1961_v3 = vshrl.u32 %v3487_v9, 16  ;;  %v2315_v45 = vshll.u32 %v3503_v39, 16 }
 0x1cb   : > { %1886 = vrot.lane.b32.xlu1 %v5245_v5, %s3875_s28  ;;  %1848 = vrot.lane.b32.xlu0 %v3470_v21, %s3874_s23  ;;  %v3464_v21 = vld [vmem:[%s4040_s16 + $0x44] sm:$0x1] }
 0x1cc   : > { %v1965_v47 = vrot.slane %v1963_v12, 1  ;;  %v3488_v41 = vcombine.low %v5434_v48, %v3464_v21 }
 0x1cd   : > { %v1977_v22 = vpop.permute.xlu1 %1976  ;;  %v5351_v27 = vpop.permute.xlu0 %1738 }
 0x1ce   : > { %v2113_v60 = vsel %vm1128_vm8, %v2097_v25, %v1977_v22  ;;  %v5455_v36 = vor.u32 %v1965_v47, %v1961_v3  ;;  %v1970_v25 = vshll.u32 %v3488_v41, 16 }
 0x1cf   : > { %2336 = vrot.lane.b32.xlu1 %v2311_v55, %s3876_s29  ;;  %2146 = vrot.lane.b32.xlu0 %v6119_v15, %s3869_s12  ;;  %v2497_v5 = vsel %vm1689_vm9, %v2113_v60, %v2487_v23  ;;  %v2350_v55 = vsel %vm1001_vm1, %v3833_v19, %v5296_v50  ;;  %v5457_v23 = vcombine.low %v3456_v32, %v3456_v32 }
 0x1d0   : > { %3634 = vmatmul.mubr.msk.bf16.vlgmr.msra.gmra.mrb[0].mxu1 %vm2530_vm10, %v2497_v5  ;;  %v2371_v22 = vsel %vm1026_vm2, %v2350_v55, %v5337_v16  ;;  %v3504_v50 = vcombine.low %v3456_v32, %v3496_v44 }
 0x1d1   : > { %v5359_v20 = vpop.permute.xlu1 %2170  ;;  %v5361_v61 = vpop.permute.xlu0 %2156 }
 0x1d2   : > { %v2387_v60 = vsel %vm1043_vm3, %v2371_v22, %v5359_v20  ;;  %v1968_v20 = vshrl.u32 %v3488_v41, 16  ;;  %v2320_v3 = vshrl.u32 %v3504_v50, 16 }
 0x1d3   : > { %1982 = vrot.lane.b32.xlu1 %v5270_v43, %s3876_s29  ;;  %1888 = vrot.lane.b32.xlu0 %v5272_v8, %s3875_s28  ;;  %v6122_v43 = vld [vmem:[#allocation16_spill] sm:$0xff] }
 0x1d5   : > { %v5367_v63 = vpop.permute.xlu1 %1754  ;;  %v5369_v26 = vpop.permute.xlu0 %1740 }
 0x1d7   : > { %2162 = vrot.lane.b32.xlu1 %v6120_v11, %s3870_s13  ;;  %2148 = vrot.lane.b32.xlu0 %v6121_v24, %s3869_s12 }
 0x1d9   : > { %v5375_v59 = vpop.permute.xlu1 %2186  ;;  %v5377_v7 = vpop.permute.xlu0 %2172 }
 0x1da   : > { %v2403_v11 = vsel %vm1060_vm4, %v2387_v60, %v5375_v59  ;;  %v1972_v59 = vrot.slane %v1970_v25, 1 }
 0x1db   : > { %1984 = vrot.lane.b32.xlu1 %v1959_v37, %s3876_s29  ;;  %1746 = vrot.lane.b32.xlu0 %v6122_v43, %s3869_s12  ;;  %v6129_v37 = vld [vmem:[#allocation7_spill] sm:$0xff]  ;;  %v2313_v43 = vshrl.u32 %v3503_v39, 16 }
 0x1dd   : > { %v5382_v8 = vpop.permute.xlu1 %1770  ;;  %v5384_v29 = vpop.permute.xlu0 %1756 }
 0x1df   : > { %2178 = vrot.lane.b32.xlu1 %v6123_v4, %s3871_s17  ;;  %2164 = vrot.lane.b32.xlu0 %v6124_v30, %s3870_s13  ;;  %v3834_v30 = vld [vmem:[%s4040_s16 + $0x10] sm:$0xf] }
 0x1e1   : > { %v2203_v51 = vpop.permute.xlu1 %2202  ;;  %v5390_v0 = vpop.permute.xlu0 %2188 }
 0x1e2   : > { %v2419_v16 = vsel %vm1077_vm5, %v2403_v11, %v2203_v51 }
 0x1e3   : > { %1762 = vrot.lane.b32.xlu1 %v6119_v15, %s3870_s13  ;;  %1748 = vrot.lane.b32.xlu0 %v6125_v17, %s3869_s12  ;;  %v1998_v17 = vsel %vm1001_vm1, %v3834_v30, %v5351_v27 }
 0x1e5   : > { %v5396_v49 = vpop.permute.xlu1 %1786  ;;  %v5398_v57 = vpop.permute.xlu0 %1772 }
 0x1e7   : > { %2194 = vrot.lane.b32.xlu1 %v6126_v58, %s3872_s21  ;;  %2180 = vrot.lane.b32.xlu0 %v6127_v31, %s3871_s17 }
 0x1e9   : > { %v2219_v6 = vpop.permute.xlu1 %2218  ;;  %v5404_v35 = vpop.permute.xlu0 %2204 }
 0x1eb   : > { %1778 = vrot.lane.b32.xlu1 %v6128_v53, %s3871_s17  ;;  %1764 = vrot.lane.b32.xlu0 %v6121_v24, %s3870_s13  ;;  %v3471_v24 = vcombine.low %v5411_v62, %v5411_v62  ;;  %s5545_s13 = scalar_lea.vmem %s5867_s5, %s3558_s8 }
 0x1ed   : > { %v5414_v14 = vpop.permute.xlu1 %1802  ;;  %v5416_v46 = vpop.permute.xlu0 %1788 }
 0x1ef   : > { %2210 = vrot.lane.b32.xlu1 %v6129_v37, %s3873_s22  ;;  %2196 = vrot.lane.b32.xlu0 %v6130_v52, %s3872_s21 }
 0x1f1   : > { %v2235_v2 = vpop.permute.xlu1 %2234  ;;  %v5424_v34 = vpop.permute.xlu0 %2220 }
 0x1f3   : > { %1794 = vrot.lane.b32.xlu1 %v6123_v4, %s3872_s21  ;;  %1780 = vrot.lane.b32.xlu0 %v6131_v56, %s3871_s17  ;;  %v2317_v4 = vrot.slane %v2315_v45, 1 }
 0x1f5   : > { %v1843_v1 = vpop.permute.xlu1 %1842  ;;  %v5437_v13 = vpop.permute.xlu0 %1804  ;;  %v2318_v9 = vor.u32 %v2317_v4, %v2313_v43 }
 0x1f7   : > { %2226 = vrot.lane.b32.xlu1 %v5430_v54, %s3874_s23  ;;  %2212 = vrot.lane.b32.xlu0 %v6132_v42, %s3873_s22  ;;  %v3472_v42 = vcombine.low %v5434_v48, %v5434_v48 }
 0x1f9   : > { %v2331_v33 = vpop.permute.xlu1 %2330  ;;  %v5445_v18 = vpop.permute.xlu0 %2236 }
 0x1fb   : > { %1810 = vrot.lane.b32.xlu1 %v6126_v58, %s3873_s22  ;;  %1796 = vrot.lane.b32.xlu0 %v6127_v31, %s3872_s21  ;;  %v2019_v58 = vsel %vm1026_vm2, %v1998_v17, %v5367_v63  ;;  %v2435_v31 = vsel %vm1094_vm6, %v2419_v16, %v2219_v6  ;;  %v2353_v63 = vsel %vm1001_vm1, %v3835_v40, %v5339_v28 }
 0x1fc   : > { %v2035_v53 = vsel %vm1043_vm3, %v2019_v58, %v5382_v8  ;;  %v2451_v27 = vsel %vm1111_vm7, %v2435_v31, %v2235_v2  ;;  %v1973_v8 = vor.u32 %v1972_v59, %v1968_v20  ;;  %v2322_v2 = vshll.u32 %v3504_v50, 16 }
 0x1fd   : > { %v1883_v15 = vpop.permute.xlu1 %1882  ;;  %v1845_v5 = vpop.permute.xlu0 %1844  ;;  %v2051_v38 = vsel %vm1060_vm4, %v2035_v53, %v5396_v49  ;;  %v2467_v37 = vsel %vm1128_vm8, %v2451_v27, %v2331_v33  ;;  %v2373_v49 = vsel %vm1026_vm2, %v2353_v63, %v5361_v61  ;;  %v3836_v61 = vld [vmem:[%s4040_s16 + $0x18] sm:$0xf] }
 0x1fe   : > { %v2067_v6 = vsel %vm1077_vm5, %v2051_v38, %v5414_v14  ;;  %v2389_v10 = vsel %vm1043_vm3, %v2373_v49, %v5377_v7  ;;  %v2488_v28 = vrot.slane %v2467_v37, 4 }
 0x1ff   : > { %2242 = vrot.lane.b32.xlu1 %v5455_v36, %s3875_s28  ;;  %2228 = vrot.lane.b32.xlu0 %v5457_v23, %s3874_s23  ;;  %v2083_v56 = vsel %vm1094_vm6, %v2067_v6, %v1843_v1  ;;  %v2405_v39 = vsel %vm1060_vm4, %v2389_v10, %v5390_v0  ;;  %v2001_v1 = vsel %vm1001_vm1, %v3836_v61, %v5369_v26  ;;  %v2324_v0 = vrot.slane %v2322_v2, 1 }
 0x200   : > { %v2099_v12 = vsel %vm1111_vm7, %v2083_v56, %v1883_v15  ;;  %v2421_v7 = vsel %vm1077_vm5, %v2405_v39, %v5404_v35  ;;  %v2021_v41 = vsel %vm1026_vm2, %v2001_v1, %v5384_v29 }
 0x201   : > { %v2333_v62 = vpop.permute.xlu1 %2332  ;;  %v5481_v51 = vpop.permute.xlu0 %2142  ;;  %v2437_v48 = vsel %vm1094_vm6, %v2421_v7, %v5424_v34  ;;  %v2037_v26 = vsel %vm1043_vm3, %v2021_v41, %v5398_v57  ;;  %v2325_v57 = vor.u32 %v2324_v0, %v2320_v3 }
 0x202   : > { %v2453_v35 = vsel %vm1111_vm7, %v2437_v48, %v5445_v18  ;;  %v2053_v44 = vsel %vm1060_vm4, %v2037_v26, %v5416_v46 }
 0x203   : > { %1850 = vrot.lane.b32.xlu1 %v3471_v24, %s3874_s23  ;;  %1812 = vrot.lane.b32.xlu0 %v6130_v52, %s3873_s22  ;;  %v2469_v29 = vsel %vm1128_vm8, %v2453_v35, %v2333_v62  ;;  %v2069_v34 = vsel %vm1077_vm5, %v2053_v44, %v5437_v13 }
 0x204   : > { %v2085_v18 = vsel %vm1094_vm6, %v2069_v34, %v1845_v5  ;;  %v2489_v45 = vrot.slane %v2469_v29, 4 }
 0x205   : > { %v1979_v14 = vpop.permute.xlu1 %1978  ;;  %v1885_v21 = vpop.permute.xlu0 %1884 }
 0x206   : > { %v2115_v52 = vsel %vm1128_vm8, %v2099_v12, %v1979_v14  ;;  %v2101_v19 = vsel %vm1111_vm7, %v2085_v18, %v1885_v21 }
 0x207   : > { %2338 = vrot.lane.b32.xlu1 %v2318_v9, %s3876_s29  ;;  %2244 = vrot.lane.b32.xlu0 %v1973_v8, %s3875_s28  ;;  %v2499_v47 = vsel %vm1689_vm9, %v2115_v52, %v2488_v28 }
 0x208   : > { %3637 = vmatprep.mubr.msk.bf16.mxu1 %vm2530_vm10, %v2499_v47 }
 0x209   : > { %v5522_v32 = vpop.permute.xlu1 %2158  ;;  %v5524_v33 = vpop.permute.xlu0 %2144 }
 0x20b   : > { %1890 = vrot.lane.b32.xlu1 %v5430_v54, %s3875_s28  ;;  %1852 = vrot.lane.b32.xlu0 %v3472_v42, %s3874_s23 }
 0x20d   : > { %v1981_v55 = vpop.permute.xlu1 %1980  ;;  %v5537_v25 = vpop.permute.xlu0 %1742 }
 0x20e   : > { %v2117_v46 = vsel %vm1128_vm8, %v2101_v19, %v1981_v55 }
 0x20f   : > { %v3619_v54 = vpop.f32.mrb[0].mxu0  ;;  %1892 = vrot.lane.b32.xlu1 %v5457_v23, %s3875_s28  ;;  %2340 = vrot.lane.b32.xlu0 %v2325_v57, %s3876_s29  ;;  %v2501_v13 = vsel %vm1689_vm9, %v2117_v46, %v2489_v45 }
 0x210   : > { %v3562_v22 = vpack.c.bf16 %v3619_v54, %v3619_v54  ;;  %v2601_v60 = vpop.f32.mrb[1].mxu0  ;;  %3638 = vmatmul.mubr.msk.bf16.gmra.mrb[4].mxu1 %vm2530_vm10, %v2501_v13  ;;  %v2960_v16 = vmul.f32 %v3619_v54, %v3619_v54  ;;  %v2892_v58 = vsel %vm1026_vm2, %v3619_v54, 0.0 }
 0x211   : > { %v3560_v15 = vpack.c.bf16 %v2601_v60, %v2601_v60  ;;  %v3620_v5 = vpop.f32.mrb[2].mxu0  ;;  %v5552_v50 = vpop.permute.xlu1 %2174  ;;  %v2958_v11 = vmul.f32 %v2601_v60, %v2601_v60  ;;  %v2889_v4 = vsel %vm1026_vm2, %v2601_v60, 0.0 }
 0x212   : > { %2795 = vst.msk [vmem:[%s5545_s13 + $0x8] sm:$0xf] %vm2792_vm11, %v3562_v22  ;;  %v3563_v24 = vpack.c.bf16 %v3620_v5, %v3620_v5  ;;  %v2604_v43 = vpop.f32.mrb[3].mxu0  ;;  %v5556_v23 = vpop.permute.xlu0 %2160  ;;  %v2961_v27 = vmul.f32 %v3620_v5, %v3620_v5  ;;  %v2993_v40 = vsel %vm1026_vm2, %v2960_v16, 0.0 }
 0x213   : > { %2793 = vst.msk [vmem:[%s5545_s13] sm:$0xf] %vm2792_vm11, %v3560_v15  ;;  %v3561_v30 = vpack.c.bf16 %v2604_v43, %v2604_v43  ;;  %v2890_v17 = vsel %vm1026_vm2, %v2604_v43, 0.0  ;;  %1988 = vrot.lane.b32.xlu1 %v1973_v8, %s3876_s29  ;;  %1986 = vrot.lane.b32.xlu0 %v5455_v36, %s3876_s29  ;;  %v2959_v59 = vmul.f32 %v2604_v43, %v2604_v43  ;;  %v2990_v53 = vsel %vm1026_vm2, %v2958_v11, 0.0 }
 0x214   : > { %2796 = vst.msk [vmem:[%s5545_s13 + $0xc] sm:$0xf] %vm2792_vm11, %v3563_v24  ;;  %v2891_v20 = vadd.f32 %v2890_v17, %v2889_v4  ;;  %v2894_v36 = vsel %vm1026_vm2, %v3620_v5, 0.0  ;;  %v2995_v2 = vsel %vm1026_vm2, %v2961_v27, 0.0  ;;  %v3837_v27 = vld [vmem:[%s4084_s20 + $0x20] sm:$0xf] }
 0x215   : > { %2794 = vst.msk [vmem:[%s5545_s13 + $0x4] sm:$0xf] %vm2792_vm11, %v3561_v30  ;;  %v5570_v31 = vpop.permute.xlu1 %1758  ;;  %v2991_v38 = vsel %vm1026_vm2, %v2959_v59, 0.0 }
 0x216   : > { %v2893_v62 = vadd.f32 %v2892_v58, %v2891_v20  ;;  %v5574_v37 = vpop.permute.xlu0 %1744  ;;  %v2992_v9 = vadd.f32 %v2991_v38, %v2990_v53 }
 0x218   : > { %v2895_v63 = vadd.f32 %v2894_v36, %v2893_v62  ;;  %v2994_v6 = vadd.f32 %v2993_v40, %v2992_v9  ;;  %v2356_v62 = vsel %vm1001_vm1, %v3837_v27, %v5481_v51 }
 0x219   : > { %v5578_v8 = vpop.permute.xlu1 %2190  ;;  %v2375_v36 = vsel %vm1026_vm2, %v2356_v62, %v5522_v32 }
 0x21a   : > { %v5581_v49 = vpop.permute.xlu0 %2176  ;;  %v2996_v56 = vadd.f32 %v2995_v2, %v2994_v6  ;;  %v2391_v40 = vsel %vm1043_vm3, %v2375_v36, %v5552_v50  ;;  %v3839_v2 = vld [vmem:[%s4040_s16 + $0x20] sm:$0xf] }
 0x21b   : > { %v2407_v51 = vsel %vm1060_vm4, %v2391_v40, %v5578_v8 }
 0x21d   : > { %v5583_v10 = vpop.permute.xlu1 %1774 }
 0x21e   : > { %v5585_v28 = vpop.permute.xlu0 %1760 }
 0x221   : > { %v2207_v12 = vpop.permute.xlu1 %2206 }
 0x222   : > { %v5587_v14 = vpop.permute.xlu0 %2192 }
 0x225   : > { %v5589_v21 = vpop.permute.xlu1 %1790 }
 0x226   : > { %v5591_v39 = vpop.permute.xlu0 %1776 }
 0x227   : > { %v3623_v52 = vpop.f32.mrb[4].mxu0 }
 0x228   : > { %v3566_v42 = vpack.c.bf16 %v3623_v52, %v3623_v52  ;;  %v2617_v3 = vpop.f32.mrb[5].mxu0  ;;  %v2964_v34 = vmul.f32 %v3623_v52, %v3623_v52  ;;  %v2900_v46 = vsel %vm1026_vm2, %v3623_v52, 0.0 }
 0x229   : > { %v3564_v61 = vpack.c.bf16 %v2617_v3, %v2617_v3  ;;  %v2896_v1 = vsel %vm1026_vm2, %v2617_v3, 0.0  ;;  %v2962_v7 = vmul.f32 %v2617_v3, %v2617_v3  ;;  %v3624_v47 = vpop.f32.mrb[6].mxu0  ;;  %v2223_v0 = vpop.permute.xlu1 %2222  ;;  %v2423_v3 = vsel %vm1077_vm5, %v2407_v51, %v2207_v12 }
 0x22a   : > { %2799 = vst.msk [vmem:[%s5545_s13 + $0x18] sm:$0xf] %vm2792_vm11, %v3566_v42  ;;  %v2897_v41 = vadd.f32 %v2896_v1, %v2895_v63  ;;  %v3567_v48 = vpack.c.bf16 %v3624_v47, %v3624_v47  ;;  %v2620_v26 = vpop.f32.mrb[7].mxu0  ;;  %v2209_v35 = vpop.permute.xlu0 %2208  ;;  %v2965_v54 = vmul.f32 %v3624_v47, %v3624_v47  ;;  %v3001_v5 = vsel %vm1026_vm2, %v2964_v34, 0.0  ;;  %v3838_v63 = vld [vmem:[%s4084_s20 + $0x28] sm:$0xf] }
 0x22b   : > { %2797 = vst.msk [vmem:[%s5545_s13 + $0x10] sm:$0xf] %vm2792_vm11, %v3564_v61  ;;  %v2997_v44 = vsel %vm1026_vm2, %v2962_v7, 0.0  ;;  %v3565_v29 = vpack.c.bf16 %v2620_v26, %v2620_v26  ;;  %v2898_v18 = vsel %vm1026_vm2, %v2620_v26, 0.0  ;;  %v2963_v45 = vmul.f32 %v2620_v26, %v2620_v26  ;;  %v3840_v42 = vld [vmem:[%s4040_s16 + $0x28] sm:$0xf] }
 0x22c   : > { %v2998_v57 = vadd.f32 %v2997_v44, %v2996_v56  ;;  %2800 = vst.msk [vmem:[%s5545_s13 + $0x1c] sm:$0xf] %vm2792_vm11, %v3567_v48  ;;  %v2899_v19 = vadd.f32 %v2898_v18, %v2897_v41  ;;  %v2902_v11 = vsel %vm1026_vm2, %v3624_v47, 0.0  ;;  %v3003_v30 = vsel %vm1026_vm2, %v2965_v54, 0.0 }
 0x22d   : > { %2798 = vst.msk [vmem:[%s5545_s13 + $0x14] sm:$0xf] %vm2792_vm11, %v3565_v29  ;;  %v1807_v55 = vpop.permute.xlu1 %1806  ;;  %v2999_v13 = vsel %vm1026_vm2, %v2963_v45, 0.0  ;;  %v2359_v6 = vsel %vm1001_vm1, %v3838_v63, %v5524_v33  ;;  %v2004_v56 = vsel %vm1001_vm1, %v3839_v2, %v5537_v25  ;;  %v2007_v50 = vsel %vm1001_vm1, %v3840_v42, %v5574_v37 }
 0x22e   : > { %v5606_v22 = vpop.permute.xlu0 %1792  ;;  %v2901_v60 = vadd.f32 %v2900_v46, %v2899_v19  ;;  %v3000_v15 = vadd.f32 %v2999_v13, %v2998_v57  ;;  %v2377_v52 = vsel %vm1026_vm2, %v2359_v6, %v5556_v23  ;;  %v2023_v32 = vsel %vm1026_vm2, %v2004_v56, %v5570_v31 }
 0x22f   : > { %v2393_v61 = vsel %vm1043_vm3, %v2377_v52, %v5581_v49  ;;  %v2039_v25 = vsel %vm1043_vm3, %v2023_v32, %v5583_v10  ;;  %v2025_v8 = vsel %vm1026_vm2, %v2007_v50, %v5585_v28  ;;  %v2439_v23 = vsel %vm1094_vm6, %v2423_v3, %v2223_v0 }
 0x230   : > { %v3002_v24 = vadd.f32 %v3001_v5, %v3000_v15  ;;  %v2903_v4 = vadd.f32 %v2902_v11, %v2901_v60  ;;  %v2409_v31 = vsel %vm1060_vm4, %v2393_v61, %v5587_v14  ;;  %v2055_v37 = vsel %vm1060_vm4, %v2039_v25, %v5589_v21 }
 0x231   : > { %v2239_v43 = vpop.permute.xlu1 %2238  ;;  %v2041_v12 = vsel %vm1043_vm3, %v2025_v8, %v5591_v39  ;;  %v2425_v7 = vsel %vm1077_vm5, %v2409_v31, %v2209_v35  ;;  %v2071_v28 = vsel %vm1077_vm5, %v2055_v37, %v1807_v55 }
 0x232   : > { %v2225_v17 = vpop.permute.xlu0 %2224  ;;  %v3004_v16 = vadd.f32 %v3003_v30, %v3002_v24  ;;  %v2455_v49 = vsel %vm1111_vm7, %v2439_v23, %v2239_v43  ;;  %v2057_v11 = vsel %vm1060_vm4, %v2041_v12, %v5606_v22 }
 0x233   : > { %v2441_v29 = vsel %vm1094_vm6, %v2425_v7, %v2225_v17 }
 0x235   : > { %v1847_v20 = vpop.permute.xlu1 %1846 }
 0x236   : > { %v5611_v59 = vpop.permute.xlu0 %1808  ;;  %v2087_v14 = vsel %vm1094_vm6, %v2071_v28, %v1847_v20 }
 0x237   : > { %v2073_v22 = vsel %vm1077_vm5, %v2057_v11, %v5611_v59 }
 0x239   : > { %v2335_v58 = vpop.permute.xlu1 %2334 }
 0x23a   : > { %v2241_v53 = vpop.permute.xlu0 %2240  ;;  %v2471_v47 = vsel %vm1128_vm8, %v2455_v49, %v2335_v58 }
 0x23b   : > { %v2490_v19 = vrot.slane %v2471_v47, 4  ;;  %v2457_v24 = vsel %vm1111_vm7, %v2441_v29, %v2241_v53 }
 0x23d   : > { %v1887_v38 = vpop.permute.xlu1 %1886 }
 0x23e   : > { %v5618_v9 = vpop.permute.xlu0 %1848  ;;  %v2103_v35 = vsel %vm1111_vm7, %v2087_v14, %v1887_v38 }
 0x23f   : > { %v2089_v38 = vsel %vm1094_vm6, %v2073_v22, %v5618_v9 }
 0x241   : > { %v2337_v33 = vpop.permute.xlu1 %2336 }
 0x242   : > { %v5645_v1 = vpop.permute.xlu0 %2146  ;;  %v2473_v17 = vsel %vm1128_vm8, %v2457_v24, %v2337_v33 }
 0x243   : > { %v3627_v10 = vpop.f32.mrb[8].mxu0  ;;  %v2491_v63 = vrot.slane %v2473_v17, 4 }
 0x244   : > { %v3570_v0 = vpack.c.bf16 %v3627_v10, %v3627_v10  ;;  %v2633_v41 = vpop.f32.mrb[9].mxu0  ;;  %v2968_v13 = vmul.f32 %v3627_v10, %v3627_v10 }
 0x245   : > { %v3568_v48 = vpack.c.bf16 %v2633_v41, %v2633_v41  ;;  %v2904_v21 = vsel %vm1026_vm2, %v2633_v41, 0.0  ;;  %v2966_v26 = vmul.f32 %v2633_v41, %v2633_v41  ;;  %v3628_v39 = vpop.f32.mrb[10].mxu0  ;;  %v1983_v44 = vpop.permute.xlu1 %1982 }
 0x246   : > { %2803 = vst.msk [vmem:[%s5545_s13 + $0x28] sm:$0xf] %vm2792_vm11, %v3570_v0  ;;  %v2905_v34 = vadd.f32 %v2904_v21, %v2903_v4  ;;  %v3571_v57 = vpack.c.bf16 %v3628_v39, %v3628_v39  ;;  %v2636_v18 = vpop.f32.mrb[11].mxu0  ;;  %v1889_v45 = vpop.permute.xlu0 %1888  ;;  %v2119_v46 = vsel %vm1128_vm8, %v2103_v35, %v1983_v44  ;;  %v2969_v20 = vmul.f32 %v3628_v39, %v3628_v39 }
 0x247   : > { %2801 = vst.msk [vmem:[%s5545_s13 + $0x20] sm:$0xf] %vm2792_vm11, %v3568_v48  ;;  %v3005_v55 = vsel %vm1026_vm2, %v2966_v26, 0.0  ;;  %v3569_v54 = vpack.c.bf16 %v2636_v18, %v2636_v18  ;;  %v2906_v15 = vsel %vm1026_vm2, %v2636_v18, 0.0  ;;  %v2967_v5 = vmul.f32 %v2636_v18, %v2636_v18 }
 0x248   : > { %v3006_v60 = vadd.f32 %v3005_v55, %v3004_v16  ;;  %2804 = vst.msk [vmem:[%s5545_s13 + $0x2c] sm:$0xf] %vm2792_vm11, %v3571_v57  ;;  %v2907_v43 = vadd.f32 %v2906_v15, %v2905_v34  ;;  %v2503_v4 = vsel %vm1689_vm9, %v2119_v46, %v2490_v19  ;;  %v2908_v16 = vsel %vm1026_vm2, %v3627_v10, 0.0 }
 0x249   : > { %2802 = vst.msk [vmem:[%s5545_s13 + $0x24] sm:$0xf] %vm2792_vm11, %v3569_v54  ;;  %v5676_v30 = vpop.permute.xlu1 %2162  ;;  %v3007_v58 = vsel %vm1026_vm2, %v2967_v5, 0.0  ;;  %3641 = vmatprep.mubr.msk.bf16.mxu1 %vm2530_vm10, %v2503_v4  ;;  %v3009_v36 = vsel %vm1026_vm2, %v2968_v13, 0.0  ;;  %v2910_v40 = vsel %vm1026_vm2, %v3628_v39, 0.0  ;;  %v2105_v2 = vsel %vm1111_vm7, %v2089_v38, %v1889_v45 }
 0x24a   : > { %v5682_v27 = vpop.permute.xlu0 %2148  ;;  %v2909_v53 = vadd.f32 %v2908_v16, %v2907_v43  ;;  %v3008_v62 = vadd.f32 %v3007_v58, %v3006_v60  ;;  %v3011_v52 = vsel %vm1026_vm2, %v2969_v20, 0.0 }
 0x24c   : > { %v3010_v6 = vadd.f32 %v3009_v36, %v3008_v62  ;;  %v2911_v51 = vadd.f32 %v2910_v40, %v2909_v53  ;;  %v3841_v40 = vld [vmem:[%s4084_s20 + $0x30] sm:$0xf] }
 0x24d   : > { %v1985_v56 = vpop.permute.xlu1 %1984 }
 0x24e   : > { %v2121_v32 = vsel %vm1128_vm8, %v2105_v2, %v1985_v56  ;;  %v5693_v59 = vpop.permute.xlu0 %1746  ;;  %v3012_v50 = vadd.f32 %v3011_v52, %v3010_v6  ;;  %v3842_v6 = vld [vmem:[%s4084_s20 + $0x38] sm:$0xf]  ;;  %s3320_s20 = sshll.u32 %s6138_s24, 1 }
 0x24f   : > { %v2505_v42 = vsel %vm1689_vm9, %v2121_v32, %v2491_v63  ;;  %v2362_v63 = vsel %vm1001_vm1, %v3841_v40, %v5645_v1  ;;  %v2365_v2 = vsel %vm1001_vm1, %v3842_v6, %v5682_v27  ;;  %s407_s23 = scalar_lea.vmem %s5869_s7, %s3320_s20 }
 0x250   : > { %3642 = vmatmul.mubr.msk.bf16.gmra.mrb[8].mxu1 %vm2530_vm10, %v2505_v42  ;;  %v2379_v56 = vsel %vm1026_vm2, %v2362_v63, %v5676_v30 }
 0x251   : > { %v2179_v9 = vpop.permute.xlu1 %2178 }
 0x252   : > { %v2165_v3 = vpop.permute.xlu0 %2164  ;;  %v2395_v32 = vsel %vm1043_vm3, %v2379_v56, %v2179_v9 }
 0x255   : > { %v5697_v33 = vpop.permute.xlu1 %1762 }
 0x256   : > { %v5699_v61 = vpop.permute.xlu0 %1748 }
 0x259   : > { %v5701_v25 = vpop.permute.xlu1 %2194 }
 0x25a   : > { %v2181_v8 = vpop.permute.xlu0 %2180  ;;  %v2411_v1 = vsel %vm1060_vm4, %v2395_v32, %v5701_v25 }
 0x25d   : > { %v5703_v23 = vpop.permute.xlu1 %1778 }
 0x25e   : > { %v5705_v31 = vpop.permute.xlu0 %1764 }
 0x25f   : > { %v3631_v37 = vpop.f32.mrb[12].mxu0 }
 0x260   : > { %v3574_v12 = vpack.c.bf16 %v3631_v37, %v3631_v37  ;;  %v2649_v49 = vpop.f32.mrb[13].mxu0  ;;  %v2972_v44 = vmul.f32 %v3631_v37, %v3631_v37  ;;  %v2916_v45 = vsel %vm1026_vm2, %v3631_v37, 0.0  ;;  %v3843_v37 = vld [vmem:[%s4040_s16 + $0x38] sm:$0xf] }
 0x261   : > { %v3572_v10 = vpack.c.bf16 %v2649_v49, %v2649_v49  ;;  %v2912_v7 = vsel %vm1026_vm2, %v2649_v49, 0.0  ;;  %v2970_v28 = vmul.f32 %v2649_v49, %v2649_v49  ;;  %v3632_v47 = vpop.f32.mrb[14].mxu0  ;;  %v2211_v0 = vpop.permute.xlu1 %2210  ;;  %v3844_v49 = vld [vmem:[%s4040_s16 + $0x30] sm:$0xf] }
 0x262   : > { %2807 = vst.msk [vmem:[%s5545_s13 + $0x38] sm:$0xf] %vm2792_vm11, %v3574_v12  ;;  %v2913_v41 = vadd.f32 %v2912_v7, %v2911_v51  ;;  %v3575_v14 = vpack.c.bf16 %v3632_v47, %v3632_v47  ;;  %v2652_v48 = vpop.f32.mrb[15].mxu0  ;;  %v2197_v21 = vpop.permute.xlu0 %2196  ;;  %v2973_v19 = vmul.f32 %v3632_v47, %v3632_v47  ;;  %v3017_v60 = vsel %vm1026_vm2, %v2972_v44, 0.0 }
 0x263   : > { %2805 = vst.msk [vmem:[%s5545_s13 + $0x30] sm:$0xf] %vm2792_vm11, %v3572_v10  ;;  %v3013_v26 = vsel %vm1026_vm2, %v2970_v28, 0.0  ;;  %v3573_v39 = vpack.c.bf16 %v2652_v48, %v2652_v48  ;;  %v2914_v35 = vsel %vm1026_vm2, %v2652_v48, 0.0  ;;  %v2971_v34 = vmul.f32 %v2652_v48, %v2652_v48 }
 0x264   : > { %v3014_v29 = vadd.f32 %v3013_v26, %v3012_v50  ;;  %2808 = vst.msk [vmem:[%s5545_s13 + $0x3c] sm:$0xf] %vm2792_vm11, %v3575_v14  ;;  %v2915_v57 = vadd.f32 %v2914_v35, %v2913_v41  ;;  %v2918_v15 = vsel %vm1026_vm2, %v3632_v47, 0.0  ;;  %v3019_v43 = vsel %vm1026_vm2, %v2973_v19, 0.0 }
 0x265   : > { %2806 = vst.msk [vmem:[%s5545_s13 + $0x34] sm:$0xf] %vm2792_vm11, %v3573_v39  ;;  %v1795_v18 = vpop.permute.xlu1 %1794  ;;  %v3015_v55 = vsel %vm1026_vm2, %v2971_v34, 0.0  ;;  %v2381_v51 = vsel %vm1026_vm2, %v2365_v2, %v2165_v3  ;;  %v2013_v12 = vsel %vm1001_vm1, %v3843_v37, %v5699_v61  ;;  %v2010_v30 = vsel %vm1001_vm1, %v3844_v49, %v5693_v59 }
 0x266   : > { %v1781_v46 = vpop.permute.xlu0 %1780  ;;  %v2917_v54 = vadd.f32 %v2916_v45, %v2915_v57  ;;  %v3016_v13 = vadd.f32 %v3015_v55, %v3014_v29  ;;  %v2397_v42 = vsel %vm1043_vm3, %v2381_v51, %v2181_v8  ;;  %v2029_v3 = vsel %vm1026_vm2, %v2013_v12, %v5705_v31 }
 0x267   : > { %v2413_v27 = vsel %vm1060_vm4, %v2397_v42, %v2197_v21  ;;  %v2427_v9 = vsel %vm1077_vm5, %v2411_v1, %v2211_v0  ;;  %v2027_v10 = vsel %vm1026_vm2, %v2010_v30, %v5697_v33  ;;  %v2045_v61 = vsel %vm1043_vm3, %v2029_v3, %v1781_v46 }
 0x268   : > { %v3018_v5 = vadd.f32 %v3017_v60, %v3016_v13  ;;  %v5722_v24 = vadd.f32 %v2918_v15, %v2917_v54  ;;  %v2043_v59 = vsel %vm1043_vm3, %v2027_v10, %v5703_v23 }
 0x269   : > { %v2227_v11 = vpop.permute.xlu1 %2226  ;;  %v2059_v14 = vsel %vm1060_vm4, %v2043_v59, %v1795_v18 }
 0x26a   : > { %v2213_v4 = vpop.permute.xlu0 %2212  ;;  %v5725_v17 = vadd.f32 %v3019_v43, %v3018_v5  ;;  %v2443_v25 = vsel %vm1094_vm6, %v2427_v9, %v2227_v11 }
 0x26b   : > { %v2429_v8 = vsel %vm1077_vm5, %v2413_v27, %v2213_v4 }
 0x26d   : > { %v1811_v16 = vpop.permute.xlu1 %1810 }
 0x26e   : > { %v1797_v20 = vpop.permute.xlu0 %1796  ;;  %v2075_v26 = vsel %vm1077_vm5, %v2059_v14, %v1811_v16 }
 0x26f   : > { %v2061_v47 = vsel %vm1060_vm4, %v2045_v61, %v1797_v20 }
 0x271   : > { %v2243_v58 = vpop.permute.xlu1 %2242 }
 0x272   : > { %v2229_v22 = vpop.permute.xlu0 %2228  ;;  %v2459_v31 = vsel %vm1111_vm7, %v2443_v25, %v2243_v58 }
 0x273   : > { %v2445_v7 = vsel %vm1094_vm6, %v2429_v8, %v2229_v22 }
 0x275   : > { %v1851_v53 = vpop.permute.xlu1 %1850 }
 0x276   : > { %v1813_v62 = vpop.permute.xlu0 %1812  ;;  %v2091_v39 = vsel %vm1094_vm6, %v2075_v26, %v1851_v53 }
 0x277   : > { %v2077_v33 = vsel %vm1077_vm5, %v2061_v47, %v1813_v62 }
 0x279   : > { %v2339_v38 = vpop.permute.xlu1 %2338 }
 0x27a   : > { %v2245_v36 = vpop.permute.xlu0 %2244  ;;  %v2475_v48 = vsel %vm1128_vm8, %v2459_v31, %v2339_v38 }
 0x27b   : > { %v2461_v0 = vsel %vm1111_vm7, %v2445_v7, %v2245_v36  ;;  %v2492_v34 = vrot.slane %v2475_v48, 4 }
 0x27d   : > { %v1891_v52 = vpop.permute.xlu1 %1890 }
 0x27e   : > { %v1853_v50 = vpop.permute.xlu0 %1852  ;;  %v2107_v57 = vsel %vm1111_vm7, %v2091_v39, %v1891_v52 }
 0x27f   : > { %v2093_v23 = vsel %vm1094_vm6, %v2077_v33, %v1853_v50 }
 0x281   : > { %v1893_v28 = vpop.permute.xlu1 %1892 }
 0x282   : > { %v2341_v41 = vpop.permute.xlu0 %2340  ;;  %v2109_v44 = vsel %vm1111_vm7, %v2093_v23, %v1893_v28 }
 0x283   : > { %v2477_v21 = vsel %vm1128_vm8, %v2461_v0, %v2341_v41 }
 0x284   : > { %v2493_v29 = vrot.slane %v2477_v21, 4 }
 0x285   : > { %v1989_v35 = vpop.permute.xlu1 %1988 }
 0x286   : > { %v2125_v18 = vsel %vm1128_vm8, %v2109_v44, %v1989_v35  ;;  %v1987_v45 = vpop.permute.xlu0 %1986 }
 0x287   : > { %v2123_v19 = vsel %vm1128_vm8, %v2107_v57, %v1987_v45  ;;  %v2509_v55 = vsel %vm1689_vm9, %v2125_v18, %v2493_v29 }
 0x288   : > { %v2507_v46 = vsel %vm1689_vm9, %v2123_v19, %v2492_v34 }
 0x289   : > { %3645 = vmatprep.mubr.msk.bf16.mxu1 %vm2530_vm10, %v2507_v46 }
 0x28a   : > { %3646 = vmatmul.mubr.msk.bf16.gmra.mrb[12].mxu1 %vm2530_vm10, %v2509_v55 }
 0x2a3   : > { %v3635_v54 = vpop.f32.mrb[0].mxu1 }
 0x2a4   : > { %v3578_v13 = vpack.c.bf16 %v3635_v54, %v3635_v54  ;;  %v2665_v60 = vpop.f32.mrb[1].mxu1  ;;  %v2976_v62 = vmul.f32 %v3635_v54, %v3635_v54  ;;  %v2924_v63 = vsel %vm1026_vm2, %v3635_v54, 0.0 }
 0x2a5   : > { %v3576_v15 = vpack.c.bf16 %v2665_v60, %v2665_v60  ;;  %v2920_v5 = vsel %vm1026_vm2, %v2665_v60, 0.0  ;;  %v2974_v11 = vmul.f32 %v2665_v60, %v2665_v60  ;;  %v3636_v43 = vpop.f32.mrb[2].mxu1 }
 0x2a6   : > { %2875 = vst.msk [vmem:[%s5781_s19 + $0x8] sm:$0xf] %vm2792_vm11, %v3578_v13  ;;  %v2921_v4 = vadd.f32 %v2920_v5, %v5722_v24  ;;  %v3579_v16 = vpack.c.bf16 %v3636_v43, %v3636_v43  ;;  %v2668_v20 = vpop.f32.mrb[3].mxu1  ;;  %v2977_v24 = vmul.f32 %v3636_v43, %v3636_v43  ;;  %v2926_v56 = vsel %vm1026_vm2, %v3636_v43, 0.0 }
 0x2a7   : > { %2873 = vst.msk [vmem:[%s5781_s19] sm:$0xf] %vm2792_vm11, %v3576_v15  ;;  %v3021_v58 = vsel %vm1026_vm2, %v2974_v11, 0.0  ;;  %v3577_v22 = vpack.c.bf16 %v2668_v20, %v2668_v20  ;;  %v2922_v53 = vsel %vm1026_vm2, %v2668_v20, 0.0  ;;  %v2975_v40 = vmul.f32 %v2668_v20, %v2668_v20 }
 0x2a8   : > { %v3022_v38 = vadd.f32 %v3021_v58, %v5725_v17  ;;  %2876 = vst.msk [vmem:[%s5781_s19 + $0xc] sm:$0xf] %vm2792_vm11, %v3579_v16  ;;  %v2923_v36 = vadd.f32 %v2922_v53, %v2921_v4  ;;  %v3025_v52 = vsel %vm1026_vm2, %v2976_v62, 0.0  ;;  %v3027_v42 = vsel %vm1026_vm2, %v2977_v24, 0.0 }
 0x2a9   : > { %2874 = vst.msk [vmem:[%s5781_s19 + $0x4] sm:$0xf] %vm2792_vm11, %v3577_v22  ;;  %v3023_v2 = vsel %vm1026_vm2, %v2975_v40, 0.0 }
 0x2aa   : > { %v2925_v6 = vadd.f32 %v2924_v63, %v2923_v36  ;;  %v3024_v51 = vadd.f32 %v3023_v2, %v3022_v38 }
 0x2ac   : > { %v2927_v17 = vadd.f32 %v2926_v56, %v2925_v6  ;;  %v3026_v32 = vadd.f32 %v3025_v52, %v3024_v51 }
 0x2ae   : > { %v3028_v50 = vadd.f32 %v3027_v42, %v3026_v32 }
 0x2e3   : > { %v3639_v37 = vpop.f32.mrb[4].mxu1 }
 0x2e4   : > { %v3582_v12 = vpack.c.bf16 %v3639_v37, %v3639_v37  ;;  %v2681_v1 = vpop.f32.mrb[5].mxu1  ;;  %v2980_v28 = vmul.f32 %v3639_v37, %v3639_v37  ;;  %v2932_v0 = vsel %vm1026_vm2, %v3639_v37, 0.0 }
 0x2e5   : > { %v3580_v27 = vpack.c.bf16 %v2681_v1, %v2681_v1  ;;  %v2928_v49 = vsel %vm1026_vm2, %v2681_v1, 0.0  ;;  %v2978_v30 = vmul.f32 %v2681_v1, %v2681_v1  ;;  %v3640_v3 = vpop.f32.mrb[6].mxu1 }
 0x2e6   : > { %2879 = vst.msk [vmem:[%s5781_s19 + $0x18] sm:$0xf] %vm2792_vm11, %v3582_v12  ;;  %v2929_v9 = vadd.f32 %v2928_v49, %v2927_v17  ;;  %v3583_v8 = vpack.c.bf16 %v3640_v3, %v3640_v3  ;;  %v2684_v10 = vpop.f32.mrb[7].mxu1  ;;  %v2981_v41 = vmul.f32 %v3640_v3, %v3640_v3  ;;  %v2934_v48 = vsel %vm1026_vm2, %v3640_v3, 0.0 }
 0x2e7   : > { %2877 = vst.msk [vmem:[%s5781_s19 + $0x10] sm:$0xf] %vm2792_vm11, %v3580_v27  ;;  %v3029_v61 = vsel %vm1026_vm2, %v2978_v30, 0.0  ;;  %v3581_v25 = vpack.c.bf16 %v2684_v10, %v2684_v10  ;;  %v2930_v7 = vsel %vm1026_vm2, %v2684_v10, 0.0  ;;  %v2979_v31 = vmul.f32 %v2684_v10, %v2684_v10 }
 0x2e8   : > { %v3030_v59 = vadd.f32 %v3029_v61, %v3028_v50  ;;  %2880 = vst.msk [vmem:[%s5781_s19 + $0x1c] sm:$0xf] %vm2792_vm11, %v3583_v8  ;;  %v2931_v47 = vadd.f32 %v2930_v7, %v2929_v9  ;;  %v3033_v26 = vsel %vm1026_vm2, %v2980_v28, 0.0  ;;  %v3035_v44 = vsel %vm1026_vm2, %v2981_v41, 0.0 }
 0x2e9   : > { %2878 = vst.msk [vmem:[%s5781_s19 + $0x14] sm:$0xf] %vm2792_vm11, %v3581_v25  ;;  %v3031_v33 = vsel %vm1026_vm2, %v2979_v31, 0.0 }
 0x2ea   : > { %v2933_v14 = vadd.f32 %v2932_v0, %v2931_v47  ;;  %v3032_v21 = vadd.f32 %v3031_v33, %v3030_v59 }
 0x2ec   : > { %v2935_v23 = vadd.f32 %v2934_v48, %v2933_v14  ;;  %v3034_v39 = vadd.f32 %v3033_v26, %v3032_v21 }
 0x2ee   : > { %v3036_v29 = vadd.f32 %v3035_v44, %v3034_v39 }
 0x323   : > { %v3643_v35 = vpop.f32.mrb[8].mxu1 }
 0x324   : > { %v3586_v34 = vpack.c.bf16 %v3643_v35, %v3643_v35  ;;  %v2697_v57 = vpop.f32.mrb[9].mxu1  ;;  %v2984_v11 = vmul.f32 %v3643_v35, %v3643_v35  ;;  %v2940_v20 = vsel %vm1026_vm2, %v3643_v35, 0.0 }
 0x325   : > { %v3584_v18 = vpack.c.bf16 %v2697_v57, %v2697_v57  ;;  %v2936_v45 = vsel %vm1026_vm2, %v2697_v57, 0.0  ;;  %v2982_v19 = vmul.f32 %v2697_v57, %v2697_v57  ;;  %v3644_v55 = vpop.f32.mrb[10].mxu1 }
 0x326   : > { %2883 = vst.msk [vmem:[%s5781_s19 + $0x28] sm:$0xf] %vm2792_vm11, %v3586_v34  ;;  %v2937_v46 = vadd.f32 %v2936_v45, %v2935_v23  ;;  %v3587_v54 = vpack.c.bf16 %v3644_v55, %v3644_v55  ;;  %v2700_v13 = vpop.f32.mrb[11].mxu1  ;;  %v2985_v58 = vmul.f32 %v3644_v55, %v3644_v55  ;;  %v2942_v62 = vsel %vm1026_vm2, %v3644_v55, 0.0 }
 0x327   : > { %2881 = vst.msk [vmem:[%s5781_s19 + $0x20] sm:$0xf] %vm2792_vm11, %v3584_v18  ;;  %v3037_v60 = vsel %vm1026_vm2, %v2982_v19, 0.0  ;;  %v3585_v15 = vpack.c.bf16 %v2700_v13, %v2700_v13  ;;  %v2938_v5 = vsel %vm1026_vm2, %v2700_v13, 0.0  ;;  %v2983_v16 = vmul.f32 %v2700_v13, %v2700_v13 }
 0x328   : > { %v3038_v43 = vadd.f32 %v3037_v60, %v3036_v29  ;;  %2884 = vst.msk [vmem:[%s5781_s19 + $0x2c] sm:$0xf] %vm2792_vm11, %v3587_v54  ;;  %v2939_v4 = vadd.f32 %v2938_v5, %v2937_v46  ;;  %v3041_v36 = vsel %vm1026_vm2, %v2984_v11, 0.0  ;;  %v3043_v24 = vsel %vm1026_vm2, %v2985_v58, 0.0 }
 0x329   : > { %2882 = vst.msk [vmem:[%s5781_s19 + $0x24] sm:$0xf] %vm2792_vm11, %v3585_v15  ;;  %v3039_v53 = vsel %vm1026_vm2, %v2983_v16, 0.0 }
 0x32a   : > { %v2941_v22 = vadd.f32 %v2940_v20, %v2939_v4  ;;  %v3040_v38 = vadd.f32 %v3039_v53, %v3038_v43 }
 0x32c   : > { %v2943_v40 = vadd.f32 %v2942_v62, %v2941_v22  ;;  %v3042_v63 = vadd.f32 %v3041_v36, %v3040_v38 }
 0x32e   : > { %v3044_v6 = vadd.f32 %v3043_v24, %v3042_v63 }
 0x35d   : > { %v3647_v2 = vpop.f32.mrb[12].mxu1 }
 0x35e   : > { %v3590_v56 = vpack.c.bf16 %v3647_v2, %v3647_v2  ;;  %v2713_v51 = vpop.f32.mrb[13].mxu1  ;;  %v2988_v30 = vmul.f32 %v3647_v2, %v3647_v2  ;;  %v2948_v10 = vsel %vm1026_vm2, %v3647_v2, 0.0 }
 0x35f   : > { %v3588_v52 = vpack.c.bf16 %v2713_v51, %v2713_v51  ;;  %v2944_v17 = vsel %vm1026_vm2, %v2713_v51, 0.0  ;;  %v2986_v32 = vmul.f32 %v2713_v51, %v2713_v51  ;;  %v3648_v42 = vpop.f32.mrb[14].mxu1 }
 0x360   : > { %2887 = vst.msk [vmem:[%s5781_s19 + $0x38] sm:$0xf] %vm2792_vm11, %v3590_v56  ;;  %v2945_v50 = vadd.f32 %v2944_v17, %v2943_v40  ;;  %v3591_v37 = vpack.c.bf16 %v3648_v42, %v3648_v42  ;;  %v2716_v12 = vpop.f32.mrb[15].mxu1  ;;  %v2989_v61 = vmul.f32 %v3648_v42, %v3648_v42  ;;  %v2950_v28 = vsel %vm1026_vm2, %v3648_v42, 0.0 }
 0x361   : > { %2885 = vst.msk [vmem:[%s5781_s19 + $0x30] sm:$0xf] %vm2792_vm11, %v3588_v52  ;;  %v3045_v1 = vsel %vm1026_vm2, %v2986_v32, 0.0  ;;  %v3589_v27 = vpack.c.bf16 %v2716_v12, %v2716_v12  ;;  %v2946_v49 = vsel %vm1026_vm2, %v2716_v12, 0.0  ;;  %v2987_v8 = vmul.f32 %v2716_v12, %v2716_v12 }
 0x362   : > { %v3046_v3 = vadd.f32 %v3045_v1, %v3044_v6  ;;  %2888 = vst.msk [vmem:[%s5781_s19 + $0x3c] sm:$0xf] %vm2792_vm11, %v3591_v37  ;;  %v2947_v9 = vadd.f32 %v2946_v49, %v2945_v50  ;;  %v3049_v47 = vsel %vm1026_vm2, %v2988_v30, 0.0  ;;  %v3051_v41 = vsel %vm1026_vm2, %v2989_v61, 0.0 }
 0x363   : > { %2886 = vst.msk [vmem:[%s5781_s19 + $0x34] sm:$0xf] %vm2792_vm11, %v3589_v27  ;;  %v3047_v7 = vsel %vm1026_vm2, %v2987_v8, 0.0 }
 0x364   : > { %v2949_v25 = vadd.f32 %v2948_v10, %v2947_v9  ;;  %v3048_v59 = vadd.f32 %v3047_v7, %v3046_v3 }
 0x366   : > { %v2951_v31 = vadd.f32 %v2950_v28, %v2949_v25  ;;  %v3050_v0 = vadd.f32 %v3049_v47, %v3048_v59 }
 0x368   : > { %v2952_v14 = vrot.slane %v2951_v31, 4  ;;  %v3052_v33 = vadd.f32 %v3051_v41, %v3050_v0 }
 0x36a   : > { %v2953_v48 = vadd.f32 %v2952_v14, %v2951_v31  ;;  %v3053_v21 = vrot.slane %v3052_v33, 4 }
 0x36c   : > { %v2954_v26 = vrot.slane %v2953_v48, 2  ;;  %v3054_v23 = vadd.f32 %v3053_v21, %v3052_v33 }
 0x36e   : > { %v2955_v39 = vadd.f32 %v2954_v26, %v2953_v48  ;;  %v3055_v44 = vrot.slane %v3054_v23, 2 }
 0x370   : > { %v2956_v29 = vrot.slane %v2955_v39, 1  ;;  %v3056_v35 = vadd.f32 %v3055_v44, %v3054_v23 }
 0x372   : > { %v3057_v34 = vrot.slane %v3056_v35, 1  ;;  %v2957_v57 = vadd.f32 %v2956_v29, %v2955_v39 }
 0x374   : > { %v3058_v18 = vadd.f32 %v3057_v34, %v3056_v35 }
 0x376   : > { %v3060_v45 = vsel %vm3059_vm12, %v2957_v57, %v3058_v18 }
 0x377   : > { %3062 = vst.msk [vmem:[%s407_s23] sm:$0x3] %vm3061_vm13, %v3060_v45 }
 0x378 PF: > { %s18_s26 = sadd.s32 1, %s3867_s26   ;;  %s6133_s24 = smov %s3863_s25 }
 0x379   : > { %p15_p5 = scmp.ge.s32.totalorder %s18_s26, 4   ;;  %s6134_s25 = smov %s6136_s27 }
 0x37b   :  { %17 = sbr.rel (!%p15_p5) target bundleno = 2 (0x2), region = 111 }

</bundles_post_ra>
